<compile_context>
chip_gen: v7x
topology: tpu7x:2x2x1
jax: 0.10.0
libtpu: 0.0.40
codegen_flags: <defaults>
</compile_context>

<pallas_src>
import functools

import jax
import jax.numpy as jnp
from jax.experimental import pallas as pl
from jax.experimental.pallas import tpu as pltpu


# ----------------------------------------------------------------------------
# Kernel 1: tiled projection  h = X @ W  (bf16 MXU operands, f32 accumulate)
# plus one-time attention scores  dst_i = a_dst.h_i , src_j = a_src.h_j
# ----------------------------------------------------------------------------
def _proj_kernel(x_ref, w_ref, a_src_ref, a_dst_ref,
                 h_ref, dst_ref, src_ref, acc_ref):
    k = pl.program_id(1)

    @pl.when(k == 0)
    def _():
        acc_ref[...] = jnp.zeros_like(acc_ref)

    acc_ref[...] += jnp.dot(x_ref[...], w_ref[...],
                            preferred_element_type=jnp.float32)

    @pl.when(k == pl.num_programs(1) - 1)
    def _():
        acc = acc_ref[...]
        h_ref[...] = acc.astype(h_ref.dtype)
        dst_ref[...] = jnp.sum(acc * a_dst_ref[...], axis=-1, keepdims=True)
        src_ref[...] = jnp.sum(acc * a_src_ref[...], axis=-1, keepdims=True)


# ----------------------------------------------------------------------------
# Kernel 2: flash-style masked-softmax GAT attention + bias + ReLU
#   grid = (target_row_blocks [parallel], source_blocks [arbitrary])
#   out_ref doubles as the f32 accumulator (resident across the ki axis).
# ----------------------------------------------------------------------------
def _gat_attn_kernel(hk_ref, adjt_ref, dst_ref, src_ref, bias_ref,
                     out_ref, m_sc, l_sc, *, tile_k, h_resident):
    ki = pl.program_id(1)

    @pl.when(ki == 0)
    def _():
        m_sc[...] = jnp.full_like(m_sc, -1e30)
        l_sc[...] = jnp.zeros_like(l_sc)
        out_ref[...] = jnp.zeros_like(out_ref)

    if h_resident:
        start = pl.multiple_of(ki * tile_k, tile_k)
        hk = hk_ref[pl.ds(start, tile_k), :]          # slice of VMEM-resident h
    else:
        hk = hk_ref[...]                              # streamed (Tk, Dp) block

    # e[i, j] = LeakyReLU_{0.2}(a_dst.h_i + a_src.h_j)  for edge j -> i
    e = dst_ref[...] + src_ref[...]                   # (Tq,1)+(1,Tk) -> (Tq,Tk)
    e = jnp.where(e > 0, e, 0.2 * e)

    mask = adjt_ref[...] != 0                         # int8 -> bool
    e = jnp.where(mask, e, jnp.float32(-1e30))

    # online softmax update (accumulate straight into out_ref)
    m_prev = m_sc[...]
    m_new = jnp.maximum(m_prev, jnp.max(e, axis=-1, keepdims=True))
    corr = jnp.exp(m_prev - m_new)
    p = jnp.where(mask, jnp.exp(e - m_new), 0.0)      # load-bearing masking
    l_sc[...] = corr * l_sc[...] + jnp.sum(p, axis=-1, keepdims=True)
    out_ref[...] = corr * out_ref[...] + jnp.dot(
        p.astype(jnp.bfloat16), hk, preferred_element_type=jnp.float32)
    m_sc[...] = m_new

    @pl.when(ki == pl.num_programs(1) - 1)
    def _():
        inv_l = pl.reciprocal(l_sc[...], approx=True)               # EUP slot
        out_ref[...] = jnp.maximum(out_ref[...] * inv_l + bias_ref[...], 0.0)


# ----------------------------------------------------------------------------
# Host wrapper (layout plumbing + two pallas_calls)
# ----------------------------------------------------------------------------
def _round_up(v, m):
    return (v + m - 1) // m * m


def multi_graph_convolution_layer(x, adj, w, a_src, a_dst, bias,
                                  *, tile_n=256, tile_f=512):
    """ReLU(single-head dense GATConv(x, adj)) with a leading axis of size 1."""
    n, f = x.shape
    d = w.shape[1]

    tile_n = min(tile_n, _round_up(n, 128))   # row tile (targets & sources)
    tile_f = min(tile_f, _round_up(f, 128))   # projection contraction tile
    n_p = _round_up(n, tile_n)
    f_p = _round_up(f, tile_f)
    d_p = _round_up(d, 128)                   # full out-feature width per tile

    # ---- pad to lane/tile-aligned shapes (sliced back at the end) ----------
    x_p = jnp.pad(x, ((0, n_p - n), (0, f_p - f))).astype(jnp.bfloat16)
    w_p = jnp.pad(w, ((0, f_p - f), (0, d_p - d))).astype(jnp.bfloat16)
    a_src_p = jnp.pad(a_src, ((0, 0), (0, d_p - d)))
    a_dst_p = jnp.pad(a_dst, ((0, 0), (0, d_p - d)))
    bias_p = jnp.pad(bias, ((0, 0), (0, d_p - d)))

    # Target-major adjacency mask as int8: compare first (1-byte transpose),
    # then add self loops with a diagonal scatter (no eye materialization).
    # Padded rows also get a self loop so every softmax row stays finite.
    adjt = jnp.pad((adj != 0).T, ((0, n_p - n), (0, n_p - n)))
    diag = jnp.arange(n_p)
    adjt = adjt.at[diag, diag].set(True).astype(jnp.int8)

    # ---- kernel 1: h = X @ W and the per-node attention scores -------------
    h, dst_col, src_col = pl.pallas_call(
        _proj_kernel,
        out_shape=(
            jax.ShapeDtypeStruct((n_p, d_p), jnp.bfloat16),
            jax.ShapeDtypeStruct((n_p, 1), jnp.float32),
            jax.ShapeDtypeStruct((n_p, 1), jnp.float32),
        ),
        grid_spec=pltpu.PrefetchScalarGridSpec(
            num_scalar_prefetch=0,
            grid=(n_p // tile_n, f_p // tile_f),
            in_specs=[
                pl.BlockSpec((tile_n, tile_f), lambda i, k: (i, k)),   # X
                pl.BlockSpec((tile_f, d_p), lambda i, k: (k, 0)),      # W
                pl.BlockSpec((1, d_p), lambda i, k: (0, 0)),           # a_src
                pl.BlockSpec((1, d_p), lambda i, k: (0, 0)),           # a_dst
            ],
            out_specs=[
                pl.BlockSpec((tile_n, d_p), lambda i, k: (i, 0)),      # h
                pl.BlockSpec((tile_n, 1), lambda i, k: (i, 0)),        # dst
                pl.BlockSpec((tile_n, 1), lambda i, k: (i, 0)),        # src
            ],
            scratch_shapes=[pltpu.VMEM((tile_n, d_p), jnp.float32)]),
        compiler_params=pltpu.CompilerParams(
            dimension_semantics=("parallel", "arbitrary"),
            vmem_limit_bytes=32 * 1024 * 1024),
    )(x_p, w_p, a_src_p, a_dst_p)

    src_row = src_col.reshape(1, n_p)          # lane-aligned (1, N) source row

    # ---- kernel 2: flash-style masked attention + bias + ReLU --------------
    # Keep h fully VMEM-resident for the alpha @ h operand when it fits
    # (constant index_map -> DMA'd once); otherwise stream (Tk, Dp) blocks.
    h_resident = (n_p * d_p * 2) <= 16 * 1024 * 1024
    if h_resident:
        hk_spec = pl.BlockSpec((n_p, d_p), lambda qi, ki: (0, 0))
        vmem_limit = 48 * 1024 * 1024          # still well under v7x's 64 MiB
    else:
        hk_spec = pl.BlockSpec((tile_n, d_p), lambda qi, ki: (ki, 0))
        vmem_limit = 32 * 1024 * 1024

    attn_kernel = functools.partial(_gat_attn_kernel,
                                    tile_k=tile_n, h_resident=h_resident)

    out_p = pl.pallas_call(
        attn_kernel,
        out_shape=jax.ShapeDtypeStruct((n_p, d_p), jnp.float32),
        grid_spec=pltpu.PrefetchScalarGridSpec(
            num_scalar_prefetch=0,
            grid=(n_p // tile_n, n_p // tile_n),
            in_specs=[
                hk_spec,                                                 # h
                pl.BlockSpec((tile_n, tile_n), lambda qi, ki: (qi, ki)),  # adjT
                pl.BlockSpec((tile_n, 1), lambda qi, ki: (qi, 0)),       # dst
                pl.BlockSpec((1, tile_n), lambda qi, ki: (0, ki)),       # src
                pl.BlockSpec((1, d_p), lambda qi, ki: (0, 0)),           # bias
            ],
            out_specs=pl.BlockSpec((tile_n, d_p), lambda qi, ki: (qi, 0)),
            scratch_shapes=[
                pltpu.VMEM((tile_n, 1), jnp.float32),     # running max
                pltpu.VMEM((tile_n, 1), jnp.float32),     # running denominator
            ]),
        compiler_params=pltpu.CompilerParams(
            dimension_semantics=("parallel", "arbitrary"),
            vmem_limit_bytes=vmem_limit),
    )(h, adjt, dst_col, src_row, bias_p)

    # torch: unsqueeze(dim=0) + cat with the empty (0, N, D) tensor  ==  [None]
    return out_p[:n, :d][None]


# ----------------------------------------------------------------------------
# Pure-JAX reference (same bf16 matmul operands / f32 scores as the kernel)
# ----------------------------------------------------------------------------
def _reference(x, adj, w, a_src, a_dst, bias):
    n = x.shape[0]
    h32 = jnp.dot(x.astype(jnp.bfloat16), w.astype(jnp.bfloat16),
                  preferred_element_type=jnp.float32)
    s = jnp.sum(h32 * a_src, axis=-1)
    d_ = jnp.sum(h32 * a_dst, axis=-1)
    e = d_[:, None] + s[None, :]
    e = jnp.where(e > 0, e, 0.2 * e)
    mask = (adj.T != 0) | jnp.eye(n, dtype=bool)
    e = jnp.where(mask, e, -jnp.inf)
    alpha = jax.nn.softmax(e, axis=-1)
    out = jnp.dot(alpha.astype(jnp.bfloat16), h32.astype(jnp.bfloat16),
                  preferred_element_type=jnp.float32) + bias
    return jnp.maximum(out, 0.0)[None]


# ----------------------------------------------------------------------------
if __name__ == "__main__":
    # Small config consistent with MultiGraphConvolution_Layer; feature dims
    # deliberately NOT 128-aligned to exercise the padding path.
    N, IN_FEATS, OUT_FEATS = 384, 200, 120

    key = jax.random.PRNGKey(0)
    kx, ka, kw, ks, kd, kb = jax.random.split(key, 6)

    x = jax.random.normal(kx, (N, IN_FEATS), jnp.float32)
    # random sparse adjacency with zero diagonal (GATConv adds self loops)
    adj = (jax.random.uniform(ka, (N, N)) < 0.05).astype(jnp.float32)
    adj = adj * (1.0 - jnp.eye(N, dtype=jnp.float32))

    w = 0.1 * jax.random.normal(kw, (IN_FEATS, OUT_FEATS), jnp.float32)
    a_src = 0.1 * jax.random.normal(ks, (1, OUT_FEATS), jnp.float32)
    a_dst = 0.1 * jax.random.normal(kd, (1, OUT_FEATS), jnp.float32)
    bias = 0.01 * jax.random.normal(kb, (1, OUT_FEATS), jnp.float32)

    fwd = jax.jit(multi_graph_convolution_layer)
    out = jax.block_until_ready(fwd(x, adj, w, a_src, a_dst, bias))

    assert out.shape == (1, N, OUT_FEATS) and out.dtype == jnp.float32
    assert bool(jnp.all(jnp.isfinite(out)))

    ref = _reference(x, adj, w, a_src, a_dst, bias)
    max_err = float(jnp.max(jnp.abs(out - ref)))
    assert max_err < 5e-2, f"max abs error vs reference: {max_err}"

    print("KERNEL_OK")
</pallas_src>

<mosaic_0001>
module attributes {stable_mosaic.version = 11 : i64} {
  func.func @_proj_kernel(%arg0: i32, %arg1: i32, %arg2: memref<256x256xbf16, #tpu.memory_space<vmem>>, %arg3: memref<256x128xbf16, #tpu.memory_space<vmem>>, %arg4: memref<1x128xf32, #tpu.memory_space<vmem>>, %arg5: memref<1x128xf32, #tpu.memory_space<vmem>>, %arg6: memref<256x128xbf16, #tpu.memory_space<vmem>>, %arg7: memref<256x1xf32, #tpu.memory_space<vmem>>, %arg8: memref<256x1xf32, #tpu.memory_space<vmem>>, %arg9: memref<256x128xf32, #tpu.memory_space<vmem>>) attributes {dimension_semantics = [#tpu.dimension_semantics<parallel>, #tpu.dimension_semantics<arbitrary>], iteration_bounds = array<i64: 2, 1>, scalar_prefetch = 0 : i64, scratch_operands = 1 : i64, tpu.core_type = #tpu.core_type<tc>, window_params = [{transform_indices = @transform_0, window_bounds = array<i64: 256, 256>}, {transform_indices = @transform_1, window_bounds = array<i64: 256, 128>}, {pipeline_mode = #tpu.pipeline_mode<synchronous>, transform_indices = @transform_2, window_bounds = array<i64: 1, 128>}, {pipeline_mode = #tpu.pipeline_mode<synchronous>, transform_indices = @transform_3, window_bounds = array<i64: 1, 128>}, {transform_indices = @transform_4, window_bounds = array<i64: 256, 128>}, {transform_indices = @transform_5, window_bounds = array<i64: 256, 1>}, {transform_indices = @transform_6, window_bounds = array<i64: 256, 1>}]} {
    %c0_i32 = arith.constant 0 : i32
    %0 = arith.cmpi eq, %arg1, %c0_i32 : i32
    %1 = arith.extui %0 : i1 to i32
    %c0_i32_0 = arith.constant 0 : i32
    %2 = arith.cmpi ne, %1, %c0_i32_0 : i32
    scf.if %2 {
      %cst_10 = arith.constant 0.000000e+00 : f32
      %12 = vector.broadcast %cst_10 : f32 to vector<256x128xf32>
      %c0_11 = arith.constant 0 : index
      %c0_12 = arith.constant 0 : index
      %13 = vector.load %arg9[%c0_11, %c0_12] : memref<256x128xf32, #tpu.memory_space<vmem>>, vector<256x128xf32>
      tpu.vector_store %arg9[%c0_11, %c0_12], %12 {strides = array<i32>} : memref<256x128xf32, #tpu.memory_space<vmem>>, vector<256x128xf32>,
    } else {
    }
    %c0 = arith.constant 0 : index
    %c0_1 = arith.constant 0 : index
    %3 = vector.load %arg9[%c0, %c0_1] : memref<256x128xf32, #tpu.memory_space<vmem>>, vector<256x128xf32>
    %c0_2 = arith.constant 0 : index
    %c0_3 = arith.constant 0 : index
    %4 = vector.load %arg2[%c0_2, %c0_3] : memref<256x256xbf16, #tpu.memory_space<vmem>>, vector<256x256xbf16>
    %c0_4 = arith.constant 0 : index
    %c0_5 = arith.constant 0 : index
    %5 = vector.load %arg3[%c0_4, %c0_5] : memref<256x128xbf16, #tpu.memory_space<vmem>>, vector<256x128xbf16>
    %cst = arith.constant dense<0.000000e+00> : vector<256x128xf32>
    %6 = tpu.matmul %4, %5, %cst {dimension_numbers = #tpu.dot_dimension_numbers<[1], [0], [0], [1], [0, 0, 1, 1], [], []>} : vector<256x256xbf16>, vector<256x128xbf16>, vector<256x128xf32> -> vector<256x128xf32>
    %7 = arith.addf %3, %6 : vector<256x128xf32>
    %c0_6 = arith.constant 0 : index
    %c0_7 = arith.constant 0 : index
    %8 = vector.load %arg9[%c0_6, %c0_7] : memref<256x128xf32, #tpu.memory_space<vmem>>, vector<256x128xf32>
    tpu.vector_store %arg9[%c0_6, %c0_7], %7 {strides = array<i32>} : memref<256x128xf32, #tpu.memory_space<vmem>>, vector<256x128xf32>,
    %c0_i32_8 = arith.constant 0 : i32
    %9 = arith.cmpi eq, %arg1, %c0_i32_8 : i32
    %10 = arith.extui %9 : i1 to i32
    %c0_i32_9 = arith.constant 0 : i32
    %11 = arith.cmpi ne, %10, %c0_i32_9 : i32
    scf.if %11 {
      %c0_10 = arith.constant 0 : index
      %c0_11 = arith.constant 0 : index
      %12 = vector.load %arg9[%c0_10, %c0_11] : memref<256x128xf32, #tpu.memory_space<vmem>>, vector<256x128xf32>
      %13 = arith.truncf %12 : vector<256x128xf32> to vector<256x128xbf16>
      %c0_12 = arith.constant 0 : index
      %c0_13 = arith.constant 0 : index
      %14 = vector.load %arg6[%c0_12, %c0_13] : memref<256x128xbf16, #tpu.memory_space<vmem>>, vector<256x128xbf16>
      tpu.vector_store %arg6[%c0_12, %c0_13], %13 {strides = array<i32>} : memref<256x128xbf16, #tpu.memory_space<vmem>>, vector<256x128xbf16>,
      %c0_14 = arith.constant 0 : index
      %c0_15 = arith.constant 0 : index
      %15 = vector.load %arg5[%c0_14, %c0_15] : memref<1x128xf32, #tpu.memory_space<vmem>>, vector<1x128xf32>
      %16 = vector.broadcast %15 : vector<1x128xf32> to vector<256x128xf32>
      %17 = arith.mulf %12, %16 : vector<256x128xf32>
      %cst_16 = arith.constant dense<0.000000e+00> : vector<256xf32>
      %18 = vector.multi_reduction <add>, %17, %cst_16 [1] : vector<256x128xf32> to vector<256xf32>
      %19 = vector.shape_cast %18 : vector<256xf32> to vector<256x1xf32>
      %c0_17 = arith.constant 0 : index
      %c0_18 = arith.constant 0 : index
      %20 = vector.load %arg7[%c0_17, %c0_18] : memref<256x1xf32, #tpu.memory_space<vmem>>, vector<256x1xf32>
      tpu.vector_store %arg7[%c0_17, %c0_18], %19 {strides = array<i32>} : memref<256x1xf32, #tpu.memory_space<vmem>>, vector<256x1xf32>,
      %c0_19 = arith.constant 0 : index
      %c0_20 = arith.constant 0 : index
      %21 = vector.load %arg4[%c0_19, %c0_20] : memref<1x128xf32, #tpu.memory_space<vmem>>, vector<1x128xf32>
      %22 = vector.broadcast %21 : vector<1x128xf32> to vector<256x128xf32>
      %23 = arith.mulf %12, %22 : vector<256x128xf32>
      %cst_21 = arith.constant dense<0.000000e+00> : vector<256xf32>
      %24 = vector.multi_reduction <add>, %23, %cst_21 [1] : vector<256x128xf32> to vector<256xf32>
      %25 = vector.shape_cast %24 : vector<256xf32> to vector<256x1xf32>
      %c0_22 = arith.constant 0 : index
      %c0_23 = arith.constant 0 : index
      %26 = vector.load %arg8[%c0_22, %c0_23] : memref<256x1xf32, #tpu.memory_space<vmem>>, vector<256x1xf32>
      tpu.vector_store %arg8[%c0_22, %c0_23], %25 {strides = array<i32>} : memref<256x1xf32, #tpu.memory_space<vmem>>, vector<256x1xf32>,
    } else {
    }
    return
  }
  func.func @transform_0(%arg0: i32, %arg1: i32) -> (i32, i32) {
    %c0_i32 = arith.constant 0 : i32
    return %arg0, %arg1 : i32, i32
  }
  func.func @transform_1(%arg0: i32, %arg1: i32) -> (i32, i32) {
    %c0_i32 = arith.constant 0 : i32
    %c0_i32_0 = arith.constant 0 : i32
    return %arg1, %c0_i32 : i32, i32
  }
  func.func @transform_2(%arg0: i32, %arg1: i32) -> (i32, i32) {
    %c0_i32 = arith.constant 0 : i32
    %c0_i32_0 = arith.constant 0 : i32
    %c0_i32_1 = arith.constant 0 : i32
    return %c0_i32, %c0_i32_0 : i32, i32
  }
  func.func @transform_3(%arg0: i32, %arg1: i32) -> (i32, i32) {
    %c0_i32 = arith.constant 0 : i32
    %c0_i32_0 = arith.constant 0 : i32
    %c0_i32_1 = arith.constant 0 : i32
    return %c0_i32, %c0_i32_0 : i32, i32
  }
  func.func @transform_4(%arg0: i32, %arg1: i32) -> (i32, i32) {
    %c0_i32 = arith.constant 0 : i32
    %c0_i32_0 = arith.constant 0 : i32
    return %arg0, %c0_i32 : i32, i32
  }
  func.func @transform_5(%arg0: i32, %arg1: i32) -> (i32, i32) {
    %c0_i32 = arith.constant 0 : i32
    %c0_i32_0 = arith.constant 0 : i32
    return %arg0, %c0_i32 : i32, i32
  }
  func.func @transform_6(%arg0: i32, %arg1: i32) -> (i32, i32) {
    %c0_i32 = arith.constant 0 : i32
    %c0_i32_0 = arith.constant 0 : i32
    return %arg0, %c0_i32 : i32, i32
  }
}

module attributes {stable_mosaic.version = 11 : i64} {
  func.func @_gat_attn_kernel(%arg0: i32, %arg1: i32, %arg2: memref<512x128xbf16, #tpu.memory_space<vmem>>, %arg3: memref<256x256xi8, #tpu.memory_space<vmem>>, %arg4: memref<256x1xf32, #tpu.memory_space<vmem>>, %arg5: memref<1x256xf32, #tpu.memory_space<vmem>>, %arg6: memref<1x128xf32, #tpu.memory_space<vmem>>, %arg7: memref<256x128xf32, #tpu.memory_space<vmem>>, %arg8: memref<256x1xf32, #tpu.memory_space<vmem>>, %arg9: memref<256x1xf32, #tpu.memory_space<vmem>>) attributes {dimension_semantics = [#tpu.dimension_semantics<parallel>, #tpu.dimension_semantics<arbitrary>], iteration_bounds = array<i64: 2, 2>, scalar_prefetch = 0 : i64, scratch_operands = 2 : i64, tpu.core_type = #tpu.core_type<tc>, window_params = [{pipeline_mode = #tpu.pipeline_mode<synchronous>, transform_indices = @transform_0, window_bounds = array<i64: 512, 128>}, {transform_indices = @transform_1, window_bounds = array<i64: 256, 256>}, {transform_indices = @transform_2, window_bounds = array<i64: 256, 1>}, {transform_indices = @transform_3, window_bounds = array<i64: 1, 256>}, {pipeline_mode = #tpu.pipeline_mode<synchronous>, transform_indices = @transform_4, window_bounds = array<i64: 1, 128>}, {transform_indices = @transform_5, window_bounds = array<i64: 256, 128>}]} {
    %c0_i32 = arith.constant 0 : i32
    %0 = arith.cmpi eq, %arg1, %c0_i32 : i32
    %1 = arith.extui %0 : i1 to i32
    %c0_i32_0 = arith.constant 0 : i32
    %2 = arith.cmpi ne, %1, %c0_i32_0 : i32
    scf.if %2 {
      %cst_26 = arith.constant -1.000000e+30 : f32
      %50 = vector.broadcast %cst_26 : f32 to vector<256x1xf32>
      %c0_27 = arith.constant 0 : index
      %c0_28 = arith.constant 0 : index
      %51 = vector.load %arg8[%c0_27, %c0_28] : memref<256x1xf32, #tpu.memory_space<vmem>>, vector<256x1xf32>
      tpu.vector_store %arg8[%c0_27, %c0_28], %50 {strides = array<i32>} : memref<256x1xf32, #tpu.memory_space<vmem>>, vector<256x1xf32>,
      %cst_29 = arith.constant 0.000000e+00 : f32
      %52 = vector.broadcast %cst_29 : f32 to vector<256x1xf32>
      %c0_30 = arith.constant 0 : index
      %c0_31 = arith.constant 0 : index
      %53 = vector.load %arg9[%c0_30, %c0_31] : memref<256x1xf32, #tpu.memory_space<vmem>>, vector<256x1xf32>
      tpu.vector_store %arg9[%c0_30, %c0_31], %52 {strides = array<i32>} : memref<256x1xf32, #tpu.memory_space<vmem>>, vector<256x1xf32>,
      %cst_32 = arith.constant 0.000000e+00 : f32
      %54 = vector.broadcast %cst_32 : f32 to vector<256x128xf32>
      %c0_33 = arith.constant 0 : index
      %c0_34 = arith.constant 0 : index
      %55 = vector.load %arg7[%c0_33, %c0_34] : memref<256x128xf32, #tpu.memory_space<vmem>>, vector<256x128xf32>
      tpu.vector_store %arg7[%c0_33, %c0_34], %54 {strides = array<i32>} : memref<256x128xf32, #tpu.memory_space<vmem>>, vector<256x128xf32>,
    } else {
    }
    %c256_i32 = arith.constant 256 : i32
    %3 = arith.muli %arg1, %c256_i32 : i32
    %4 = tpu.assume_multiple %3, 256 : i32
    %5 = arith.index_cast %4 : i32 to index
    %c0 = arith.constant 0 : index
    %6 = vector.load %arg2[%5, %c0] : memref<512x128xbf16, #tpu.memory_space<vmem>>, vector<256x128xbf16>
    %c0_1 = arith.constant 0 : index
    %c0_2 = arith.constant 0 : index
    %7 = vector.load %arg4[%c0_1, %c0_2] : memref<256x1xf32, #tpu.memory_space<vmem>>, vector<256x1xf32>
    %c0_3 = arith.constant 0 : index
    %c0_4 = arith.constant 0 : index
    %8 = vector.load %arg5[%c0_3, %c0_4] : memref<1x256xf32, #tpu.memory_space<vmem>>, vector<1x256xf32>
    %9 = vector.broadcast %7 : vector<256x1xf32> to vector<256x256xf32>
    %10 = vector.broadcast %8 : vector<1x256xf32> to vector<256x256xf32>
    %11 = arith.addf %9, %10 : vector<256x256xf32>
    %cst = arith.constant 0.000000e+00 : f32
    %12 = vector.broadcast %cst : f32 to vector<256x256xf32>
    %13 = arith.cmpf ogt, %11, %12 : vector<256x256xf32>
    %cst_5 = arith.constant 2.000000e-01 : f32
    %14 = vector.broadcast %cst_5 : f32 to vector<256x256xf32>
    %15 = arith.mulf %14, %11 : vector<256x256xf32>
    %16 = arith.select %13, %11, %15 : vector<256x256xi1>, vector<256x256xf32>
    %c0_6 = arith.constant 0 : index
    %c0_7 = arith.constant 0 : index
    %17 = vector.load %arg3[%c0_6, %c0_7] : memref<256x256xi8, #tpu.memory_space<vmem>>, vector<256x256xi8>
    %c0_i8 = arith.constant 0 : i8
    %18 = vector.broadcast %c0_i8 : i8 to vector<256x256xi8>
    %19 = arith.cmpi ne, %17, %18 : vector<256x256xi8>
    %cst_8 = arith.constant -1.000000e+30 : f32
    %20 = vector.broadcast %cst_8 : f32 to vector<256x256xf32>
    %21 = arith.select %19, %16, %20 : vector<256x256xi1>, vector<256x256xf32>
    %c0_9 = arith.constant 0 : index
    %c0_10 = arith.constant 0 : index
    %22 = vector.load %arg8[%c0_9, %c0_10] : memref<256x1xf32, #tpu.memory_space<vmem>>, vector<256x1xf32>
    %cst_11 = arith.constant dense<0xFF800000> : vector<256xf32>
    %23 = vector.multi_reduction <maximumf>, %21, %cst_11 [1] : vector<256x256xf32> to vector<256xf32>
    %24 = vector.shape_cast %23 : vector<256xf32> to vector<256x1xf32>
    %25 = arith.maximumf %22, %24 : vector<256x1xf32>
    %26 = arith.subf %22, %25 : vector<256x1xf32>
    %27 = math.exp %26 : vector<256x1xf32>
    %28 = vector.broadcast %25 : vector<256x1xf32> to vector<256x256xf32>
    %29 = arith.subf %21, %28 : vector<256x256xf32>
    %30 = math.exp %29 : vector<256x256xf32>
    %cst_12 = arith.constant 0.000000e+00 : f32
    %31 = vector.broadcast %cst_12 : f32 to vector<256x256xf32>
    %32 = arith.select %19, %30, %31 : vector<256x256xi1>, vector<256x256xf32>
    %c0_13 = arith.constant 0 : index
    %c0_14 = arith.constant 0 : index
    %33 = vector.load %arg9[%c0_13, %c0_14] : memref<256x1xf32, #tpu.memory_space<vmem>>, vector<256x1xf32>
    %34 = arith.mulf %27, %33 : vector<256x1xf32>
    %cst_15 = arith.constant dense<0.000000e+00> : vector<256xf32>
    %35 = vector.multi_reduction <add>, %32, %cst_15 [1] : vector<256x256xf32> to vector<256xf32>
    %36 = vector.shape_cast %35 : vector<256xf32> to vector<256x1xf32>
    %37 = arith.addf %34, %36 : vector<256x1xf32>
    %c0_16 = arith.constant 0 : index
    %c0_17 = arith.constant 0 : index
    %38 = vector.load %arg9[%c0_16, %c0_17] : memref<256x1xf32, #tpu.memory_space<vmem>>, vector<256x1xf32>
    tpu.vector_store %arg9[%c0_16, %c0_17], %37 {strides = array<i32>} : memref<256x1xf32, #tpu.memory_space<vmem>>, vector<256x1xf32>,
    %c0_18 = arith.constant 0 : index
    %c0_19 = arith.constant 0 : index
    %39 = vector.load %arg7[%c0_18, %c0_19] : memref<256x128xf32, #tpu.memory_space<vmem>>, vector<256x128xf32>
    %40 = vector.broadcast %27 : vector<256x1xf32> to vector<256x128xf32>
    %41 = arith.mulf %40, %39 : vector<256x128xf32>
    %42 = arith.truncf %32 : vector<256x256xf32> to vector<256x256xbf16>
    %cst_20 = arith.constant dense<0.000000e+00> : vector<256x128xf32>
    %43 = tpu.matmul %42, %6, %cst_20 {dimension_numbers = #tpu.dot_dimension_numbers<[1], [0], [0], [1], [0, 0, 1, 1], [], []>} : vector<256x256xbf16>, vector<256x128xbf16>, vector<256x128xf32> -> vector<256x128xf32>
    %44 = arith.addf %41, %43 : vector<256x128xf32>
    %c0_21 = arith.constant 0 : index
    %c0_22 = arith.constant 0 : index
    %45 = vector.load %arg7[%c0_21, %c0_22] : memref<256x128xf32, #tpu.memory_space<vmem>>, vector<256x128xf32>
    tpu.vector_store %arg7[%c0_21, %c0_22], %44 {strides = array<i32>} : memref<256x128xf32, #tpu.memory_space<vmem>>, vector<256x128xf32>,
    %c0_23 = arith.constant 0 : index
    %c0_24 = arith.constant 0 : index
    %46 = vector.load %arg8[%c0_23, %c0_24] : memref<256x1xf32, #tpu.memory_space<vmem>>, vector<256x1xf32>
    tpu.vector_store %arg8[%c0_23, %c0_24], %25 {strides = array<i32>} : memref<256x1xf32, #tpu.memory_space<vmem>>, vector<256x1xf32>,
    %c1_i32 = arith.constant 1 : i32
    %47 = arith.cmpi eq, %arg1, %c1_i32 : i32
    %48 = arith.extui %47 : i1 to i32
    %c0_i32_25 = arith.constant 0 : i32
    %49 = arith.cmpi ne, %48, %c0_i32_25 : i32
    scf.if %49 {
      %c0_26 = arith.constant 0 : index
      %c0_27 = arith.constant 0 : index
      %50 = vector.load %arg9[%c0_26, %c0_27] : memref<256x1xf32, #tpu.memory_space<vmem>>, vector<256x1xf32>
      %51 = tpu.reciprocal %50 {approx = true} : vector<256x1xf32> -> vector<256x1xf32>
      %c0_28 = arith.constant 0 : index
      %c0_29 = arith.constant 0 : index
      %52 = vector.load %arg7[%c0_28, %c0_29] : memref<256x128xf32, #tpu.memory_space<vmem>>, vector<256x128xf32>
      %53 = vector.broadcast %51 : vector<256x1xf32> to vector<256x128xf32>
      %54 = arith.mulf %52, %53 : vector<256x128xf32>
      %c0_30 = arith.constant 0 : index
      %c0_31 = arith.constant 0 : index
      %55 = vector.load %arg6[%c0_30, %c0_31] : memref<1x128xf32, #tpu.memory_space<vmem>>, vector<1x128xf32>
      %56 = vector.broadcast %55 : vector<1x128xf32> to vector<256x128xf32>
      %57 = arith.addf %54, %56 : vector<256x128xf32>
      %cst_32 = arith.constant 0.000000e+00 : f32
      %58 = vector.broadcast %cst_32 : f32 to vector<256x128xf32>
      %59 = arith.maximumf %57, %58 : vector<256x128xf32>
      %c0_33 = arith.constant 0 : index
      %c0_34 = arith.constant 0 : index
      %60 = vector.load %arg7[%c0_33, %c0_34] : memref<256x128xf32, #tpu.memory_space<vmem>>, vector<256x128xf32>
      tpu.vector_store %arg7[%c0_33, %c0_34], %59 {strides = array<i32>} : memref<256x128xf32, #tpu.memory_space<vmem>>, vector<256x128xf32>,
    } else {
    }
    return
  }
  func.func @transform_0(%arg0: i32, %arg1: i32) -> (i32, i32) {
    %c0_i32 = arith.constant 0 : i32
    %c0_i32_0 = arith.constant 0 : i32
    %c0_i32_1 = arith.constant 0 : i32
    return %c0_i32, %c0_i32_0 : i32, i32
  }
  func.func @transform_1(%arg0: i32, %arg1: i32) -> (i32, i32) {
    %c0_i32 = arith.constant 0 : i32
    return %arg0, %arg1 : i32, i32
  }
  func.func @transform_2(%arg0: i32, %arg1: i32) -> (i32, i32) {
    %c0_i32 = arith.constant 0 : i32
    %c0_i32_0 = arith.constant 0 : i32
    return %arg0, %c0_i32 : i32, i32
  }
  func.func @transform_3(%arg0: i32, %arg1: i32) -> (i32, i32) {
    %c0_i32 = arith.constant 0 : i32
    %c0_i32_0 = arith.constant 0 : i32
    return %c0_i32, %arg1 : i32, i32
  }
  func.func @transform_4(%arg0: i32, %arg1: i32) -> (i32, i32) {
    %c0_i32 = arith.constant 0 : i32
    %c0_i32_0 = arith.constant 0 : i32
    %c0_i32_1 = arith.constant 0 : i32
    return %c0_i32, %c0_i32_0 : i32, i32
  }
  func.func @transform_5(%arg0: i32, %arg1: i32) -> (i32, i32) {
    %c0_i32 = arith.constant 0 : i32
    %c0_i32_0 = arith.constant 0 : i32
    return %arg0, %c0_i32 : i32, i32
  }
}

</mosaic_0001>

<bundles_post_ra>
// kernel: multi_graph_convolution_layer.2
= control target key start
LH: loop header
LB: loop body
LE: loop exit
PB: predicated region body
PF: predicated region fallthrough
CT: control target
= control target key end

     0   :  { %s2071_s21 = smov 0   ;;  %s2073_s22 = smov 0   ;;  %s2525_s0 = inlined_call_operand.vmem [shape: bf16[512,256], index: 0, kind: input, shape index: {}]   ;;  %s2526_s1 = inlined_call_operand.vmem [shape: bf16[256,128], index: 1, kind: input, shape index: {}]   ;;  %s2527_s2 = inlined_call_operand.vmem [shape: f32[1,128], index: 2, kind: input, shape index: {}]   ;;  %s2528_s3 = inlined_call_operand.vmem [shape: f32[1,128], index: 3, kind: input, shape index: {}]   ;;  %s2529_s4 = inlined_call_operand.vmem [shape: bf16[512,128], index: 4, kind: output, shape index: {0}]   ;;  %s2530_s5 = inlined_call_operand.vmem [shape: f32[512,1], index: 5, kind: output, shape index: {1}]   ;;  %s2531_s6 = inlined_call_operand.vmem [shape: f32[512,1], index: 6, kind: output, shape index: {2}]  }
   0x1   :  { %s2075_s23 = smov 0  }
   0x2 LB: > { %s29_s24 = sadd.s32 1, %s2030_s22  ;;  %p1574_p0 = scmp.ge.s32.totalorder %s2034_s23, 1  ;;  %s2034_s23 = sphi %s2075_s23, %s17_s23   ;;  %s2030_s22 = sphi %s2073_s22, %s2533_s22   ;;  %s2026_s21 = sphi %s2071_s21, %s2532_s21  }
   0x3   : > { %p31_p1 = scmp.ge.s32.totalorder %s29_s24, 2  ;;  %p249_p2 = scmp.lt.s32.totalorder %s2034_s23, 3 }
   0x5   : > { %s2535_s24 = smov (%p31_p1, %s29_s24), 0  ;;  %p250_p3 = pnand %p1574_p0, %p249_p2 }
   0x6   : > { %v1948_v0 = vld [vmem:[%s2526_s1 + $0x40] sm:$0xff] (!%p250_p3)   ;;  %s1575_s27 = sshll.u32 (!%p250_p3), %s2026_s21, 5  ;;  %v1950_v2 = vld [vmem:[%s2526_s1 + $0x48] sm:$0xff] (!%p250_p3)   ;;  %v1952_v4 = vld [vmem:[%s2526_s1 + $0x50] sm:$0xff] (!%p250_p3)   ;;  %vm1247_vm0 = vcmask (!%p250_p3), 7168  }
   0x7   : > { %253 = sbr.rel (%p250_p3) target bundleno = 525 (0x20d), region = 36  ;;  %v1949_v1 = vld [vmem:[%s2526_s1] sm:$0xff] (!%p250_p3)   ;;  %1796 = vmatprep.subr.bf16.mxu0 (!%p250_p3), %v1948_v0  ;;  %1908 = vmatprep.subr.bf16.mxu1 (!%p250_p3), %v1948_v0  ;;  %v1951_v3 = vld [vmem:[%s2526_s1 + $0x8] sm:$0xff] (!%p250_p3)   ;;  %p301_p4 = scmp.lt.s32.totalorder (!%p250_p3), %s1575_s27, 63  ;;  %v1953_v5 = vld [vmem:[%s2526_s1 + $0x10] sm:$0xff] (!%p250_p3)  }
   0x8   : > { %1797 = vmatpush3.bf16.msra.mxu0 (!%p250_p3), %v1949_v1  ;;  %1916 = vmatpush3.bf16.msra.mxu1 (!%p250_p3), %v1949_v1  ;;  %v1954_v6 = vld [vmem:[%s2526_s1 + $0x58] sm:$0xff] (!%p250_p3)   ;;  %v1956_v8 = vld [vmem:[%s2526_s1 + $0x60] sm:$0xff] (!%p250_p3)   ;;  %v1958_v10 = vld [vmem:[%s2526_s1 + $0x68] sm:$0xff] (!%p250_p3)  }
   0x9   : > { %1798 = vmatprep.subr.bf16.mxu0 (!%p250_p3), %v1950_v2  ;;  %1909 = vmatprep.subr.bf16.mxu1 (!%p250_p3), %v1950_v2  ;;  %v1955_v7 = vld [vmem:[%s2526_s1 + $0x18] sm:$0xff] (!%p250_p3)   ;;  %v1957_v9 = vld [vmem:[%s2526_s1 + $0x20] sm:$0xff] (!%p250_p3)   ;;  %v1959_v13 = vld [vmem:[%s2526_s1 + $0x28] sm:$0xff] (!%p250_p3)  }
   0xa   : > { %v1960_v14 = vld [vmem:[%s2526_s1 + $0x70] sm:$0xff] (!%p250_p3)   ;;  %v1962_v16 = vld [vmem:[%s2526_s1 + $0x78] sm:$0xff] (!%p250_p3)   ;;  %v2183_v52 = vld [vmem:[%s2528_s3] ss:$0 sm:$0xff] (!%p250_p3) }
   0xb   : > { %v1961_v15 = vld [vmem:[%s2526_s1 + $0x30] sm:$0xff] (!%p250_p3)   ;;  %v1963_v17 = vld [vmem:[%s2526_s1 + $0x38] sm:$0xff] (!%p250_p3)  }
   0xc   : > { %1799 = vmatpush3.bf16.msra.mxu0 (!%p250_p3), %v1951_v3  ;;  %1917 = vmatpush3.bf16.msra.mxu1 (!%p250_p3), %v1951_v3 }
   0xd   : > { %1800 = vmatprep.subr.bf16.mxu0 (!%p250_p3), %v1952_v4  ;;  %1910 = vmatprep.subr.bf16.mxu1 (!%p250_p3), %v1952_v4 }
   0xe   : > { %s2537_s27 = smov (!%p301_p4, %s1575_s27), 63 }
   0xf   : > { %s2116_s18 = sshll.u32 %s2537_s27, 3  ;;  %s1579_s21 = sshll.u32 %s2537_s27, 2 }
  0x10   : > { %1801 = vmatpush3.bf16.msra.mxu0 %v1953_v5  ;;  %1918 = vmatpush3.bf16.msra.mxu1 %v1953_v5  ;;  %s2125_s26 = scalar_lea.vmem %s2525_s0, %s2116_s18  ;;  %s2190_s28 = scalar_lea.vmem %s2529_s4, %s1579_s21  ;;  %v2199_v5 = vld [vmem:[%s2527_s2] ss:$0 sm:$0xff] }
  0x11   : > { %1802 = vmatprep.subr.bf16.mxu0 %v1954_v6  ;;  %1911 = vmatprep.subr.bf16.mxu1 %v1954_v6  ;;  %v1966_v11 = vld [vmem:[%s2125_s26 + $0x4] ss:$8 sps:$4 sm:$0xff]   ;;  %v1964_v18 = vld [vmem:[%s2125_s26] ss:$8 sps:$4 sm:$0xff]   ;;  %v1970_v20 = vld [vmem:[%s2125_s26 + $0x14] ss:$8 sps:$4 sm:$0xff]   ;;  %s2380_s8 = scalar_lea.vmem %s2530_s5, %s2116_s18  ;;  %s2390_s11 = scalar_lea.vmem %s2531_s6, %s2116_s18 }
  0x12   : > { %v1969_v12 = vld [vmem:[%s2125_s26 + $0x84] ss:$8 sps:$4 sm:$0xff]   ;;  %756 = vmatprep.mubr.bf16.mxu0 %v1966_v11  ;;  %v1967_v19 = vld [vmem:[%s2125_s26 + $0x80] ss:$8 sps:$4 sm:$0xff]   ;;  %v1973_v21 = vld [vmem:[%s2125_s26 + $0x94] ss:$8 sps:$4 sm:$0xff]  }
  0x13   : > { %820 = vmatprep.mubr.bf16.mxu1 %v1969_v12  ;;  %v1972_v22 = vld [vmem:[%s2125_s26 + $0x10] ss:$8 sps:$4 sm:$0xff]   ;;  %v1976_v24 = vld [vmem:[%s2125_s26 + $0x24] ss:$8 sps:$4 sm:$0xff]   ;;  %v1978_v26 = vld [vmem:[%s2125_s26 + $0x20] ss:$8 sps:$4 sm:$0xff]  }
  0x14   : > { %1803 = vmatpush3.bf16.msra.mxu0 %v1955_v7  ;;  %1919 = vmatpush3.bf16.msra.mxu1 %v1955_v7  ;;  %v1975_v23 = vld [vmem:[%s2125_s26 + $0x90] ss:$8 sps:$4 sm:$0xff]   ;;  %v1979_v25 = vld [vmem:[%s2125_s26 + $0xa4] ss:$8 sps:$4 sm:$0xff]   ;;  %v1981_v27 = vld [vmem:[%s2125_s26 + $0xa0] ss:$8 sps:$4 sm:$0xff]  }
  0x15   : > { %1804 = vmatprep.subr.bf16.mxu0 %v1956_v8  ;;  %1912 = vmatprep.subr.bf16.mxu1 %v1956_v8  ;;  %v1982_v28 = vld [vmem:[%s2125_s26 + $0x34] ss:$8 sps:$4 sm:$0xff]   ;;  %v1984_v30 = vld [vmem:[%s2125_s26 + $0x30] ss:$8 sps:$4 sm:$0xff]   ;;  %v1988_v32 = vld [vmem:[%s2125_s26 + $0x44] ss:$8 sps:$4 sm:$0xff]  }
  0x16   : > { %v1985_v29 = vld [vmem:[%s2125_s26 + $0xb4] ss:$8 sps:$4 sm:$0xff]   ;;  %v1987_v31 = vld [vmem:[%s2125_s26 + $0xb0] ss:$8 sps:$4 sm:$0xff]   ;;  %v1991_v33 = vld [vmem:[%s2125_s26 + $0xc4] ss:$8 sps:$4 sm:$0xff]  }
  0x17   : > { %v1990_v34 = vld [vmem:[%s2125_s26 + $0x40] ss:$8 sps:$4 sm:$0xff]   ;;  %v1994_v36 = vld [vmem:[%s2125_s26 + $0x54] ss:$8 sps:$4 sm:$0xff]   ;;  %v1996_v38 = vld [vmem:[%s2125_s26 + $0x50] ss:$8 sps:$4 sm:$0xff]  }
  0x18   : > { %1805 = vmatpush3.bf16.msra.mxu0 %v1957_v9  ;;  %1920 = vmatpush3.bf16.msra.mxu1 %v1957_v9  ;;  %v1993_v35 = vld [vmem:[%s2125_s26 + $0xc0] ss:$8 sps:$4 sm:$0xff]   ;;  %v1997_v37 = vld [vmem:[%s2125_s26 + $0xd4] ss:$8 sps:$4 sm:$0xff]   ;;  %v1999_v39 = vld [vmem:[%s2125_s26 + $0xd0] ss:$8 sps:$4 sm:$0xff]  }
  0x19   : > { %1806 = vmatprep.subr.bf16.mxu0 %v1958_v10  ;;  %1913 = vmatprep.subr.bf16.mxu1 %v1958_v10  ;;  %v2000_v40 = vld [vmem:[%s2125_s26 + $0x64] ss:$8 sps:$4 sm:$0xff]   ;;  %v2002_v42 = vld [vmem:[%s2125_s26 + $0x60] ss:$8 sps:$4 sm:$0xff]   ;;  %v2006_v44 = vld [vmem:[%s2125_s26 + $0x74] ss:$8 sps:$4 sm:$0xff]  }
  0x1a   : > { %v2003_v41 = vld [vmem:[%s2125_s26 + $0xe4] ss:$8 sps:$4 sm:$0xff]   ;;  %v2005_v43 = vld [vmem:[%s2125_s26 + $0xe0] ss:$8 sps:$4 sm:$0xff]   ;;  %v2009_v45 = vld [vmem:[%s2125_s26 + $0xf4] ss:$8 sps:$4 sm:$0xff]  }
  0x1b   : > { %v2008_v46 = vld [vmem:[%s2125_s26 + $0x70] ss:$8 sps:$4 sm:$0xff]  }
  0x1c   : > { %1807 = vmatpush3.bf16.msra.mxu0 %v1959_v13  ;;  %1921 = vmatpush3.bf16.msra.mxu1 %v1959_v13  ;;  %v2011_v47 = vld [vmem:[%s2125_s26 + $0xf0] ss:$8 sps:$4 sm:$0xff]  }
  0x1d   : > { %1808 = vmatprep.subr.bf16.mxu0 %v1960_v14  ;;  %1914 = vmatprep.subr.bf16.mxu1 %v1960_v14 }
  0x20   : > { %1809 = vmatpush3.bf16.msra.mxu0 %v1961_v15  ;;  %1922 = vmatpush3.bf16.msra.mxu1 %v1961_v15 }
  0x21   : > { %1810 = vmatprep.subr.bf16.mxu0 %v1962_v16  ;;  %1915 = vmatprep.subr.bf16.mxu1 %v1962_v16 }
  0x24   : > { %1811 = vmatpush3.bf16.msra.mxu0 %v1963_v17  ;;  %1923 = vmatpush3.bf16.msra.mxu1 %v1963_v17 }
  0x27   : > { %757 = vmatmul.mubr.bf16.vlgmr.msra.gmra.mrb[0].mxu0 %v1964_v18  ;;  %821 = vmatmul.mubr.bf16.vlgmr.msra.gmra.mrb[0].mxu1 %v1967_v19 }
  0x28   : > { %764 = vmatprep.mubr.bf16.mxu0 %v1970_v20  ;;  %828 = vmatprep.mubr.bf16.mxu1 %v1973_v21 }
  0x2f   : > { %765 = vmatmul.mubr.bf16.gmra.mrb[4].mxu0 %v1972_v22  ;;  %829 = vmatmul.mubr.bf16.gmra.mrb[4].mxu1 %v1975_v23 }
  0x30   : > { %772 = vmatprep.mubr.bf16.mxu0 %v1976_v24  ;;  %836 = vmatprep.mubr.bf16.mxu1 %v1979_v25 }
  0x37   : > { %773 = vmatmul.mubr.bf16.gmra.mrb[8].mxu0 %v1978_v26  ;;  %837 = vmatmul.mubr.bf16.gmra.mrb[8].mxu1 %v1981_v27 }
  0x38   : > { %780 = vmatprep.mubr.bf16.mxu0 %v1982_v28  ;;  %844 = vmatprep.mubr.bf16.mxu1 %v1985_v29 }
  0x3f   : > { %781 = vmatmul.mubr.bf16.gmra.mrb[12].mxu0 %v1984_v30  ;;  %845 = vmatmul.mubr.bf16.gmra.mrb[12].mxu1 %v1987_v31 }
  0x40   : > { %788 = vmatprep.mubr.bf16.mxu0 %v1988_v32  ;;  %852 = vmatprep.mubr.bf16.mxu1 %v1991_v33 }
  0x47   : > { %789 = vmatmul.mubr.bf16.gmra.mrb[16].mxu0 %v1990_v34  ;;  %853 = vmatmul.mubr.bf16.gmra.mrb[16].mxu1 %v1993_v35 }
  0x48   : > { %796 = vmatprep.mubr.bf16.mxu0 %v1994_v36  ;;  %860 = vmatprep.mubr.bf16.mxu1 %v1997_v37 }
  0x4f   : > { %797 = vmatmul.mubr.bf16.gmra.mrb[20].mxu0 %v1996_v38  ;;  %861 = vmatmul.mubr.bf16.gmra.mrb[20].mxu1 %v1999_v39 }
  0x50   : > { %804 = vmatprep.mubr.bf16.mxu0 %v2000_v40  ;;  %868 = vmatprep.mubr.bf16.mxu1 %v2003_v41 }
  0x57   : > { %805 = vmatmul.mubr.bf16.gmra.mrb[24].mxu0 %v2002_v42  ;;  %869 = vmatmul.mubr.bf16.gmra.mrb[24].mxu1 %v2005_v43 }
  0x58   : > { %812 = vmatprep.mubr.bf16.mxu0 %v2006_v44  ;;  %876 = vmatprep.mubr.bf16.mxu1 %v2009_v45 }
  0x5f   : > { %813 = vmatmul.mubr.bf16.gmra.mrb[28].mxu0 %v2008_v46  ;;  %877 = vmatmul.mubr.bf16.gmra.mrb[28].mxu1 %v2011_v47 }
  0xfa   : > { %v1812_v48 = vpop.f32.mrb[0].mxu0  ;;  %v1860_v49 = vpop.f32.mrb[0].mxu1 }
  0xfb   : > { %v1813_v50 = vpop.f32.mrb[1].mxu0  ;;  %v1861_v51 = vpop.f32.mrb[1].mxu1 }
  0xfc   : > { %v1814_v53 = vadd.f32 %v1813_v50, %v1812_v48  ;;  %v1862_v54 = vadd.f32 %v1861_v51, %v1860_v49  ;;  %v1815_v55 = vpop.f32.mrb[2].mxu0  ;;  %v1863_v56 = vpop.f32.mrb[2].mxu1 }
  0xfd   : > { %v1816_v57 = vpop.f32.mrb[3].mxu0  ;;  %v1864_v58 = vpop.f32.mrb[3].mxu1 }
  0xfe   : > { %v1817_v59 = vadd.f32 %v1816_v57, %v1815_v55  ;;  %v1865_v60 = vadd.f32 %v1864_v58, %v1863_v56  ;;  %v1151_v61 = vmul.f32 %v1814_v53, %v2183_v52  ;;  %v1167_v1 = vmul.f32 %v1862_v54, %v2183_v52 }
  0xff   : > { %v1287_v15 = vmul.f32 %v1814_v53, %v2199_v5  ;;  %v1303_v20 = vmul.f32 %v1862_v54, %v2199_v5 }
 0x100   : > { %v1704_v62 = vpack.c.bf16 %v1817_v59, %v1814_v53  ;;  %v1744_v63 = vpack.c.bf16 %v1865_v60, %v1862_v54  ;;  %1183 = vadd.xlane.f32.xlu0 %v1151_v61  ;;  %v1168_v0 = vmul.f32 %v1865_v60, %v2183_v52  ;;  %v1288_v8 = vmul.f32 %v1817_v59, %v2199_v5 }
 0x101   : > { %v1304_v18 = vmul.f32 %v1865_v60, %v2199_v5  ;;  %v1152_v32 = vmul.f32 %v1817_v59, %v2183_v52 }
 0x102   : > { %1705 = vst [vmem:[%s2190_s28] sm:$0xff] %v1704_v62   ;;  %1788 = vst [vmem:[%s2190_s28 + $0x40] sm:$0xff] %v1744_v63   ;;  %1217 = vadd.xlane.f32.xlu1 %v1168_v0  ;;  %v1818_v2 = vpop.f32.mrb[4].mxu0  ;;  %v1866_v3 = vpop.f32.mrb[4].mxu1 }
 0x103   : > { %v1819_v4 = vpop.f32.mrb[5].mxu0  ;;  %v1867_v6 = vpop.f32.mrb[5].mxu1 }
 0x104   : > { %1215 = vadd.xlane.f32.xlu0 %v1167_v1  ;;  %v1820_v7 = vadd.f32 %v1819_v4, %v1818_v2  ;;  %v1821_v9 = vpop.f32.mrb[6].mxu0  ;;  %v1868_v10 = vadd.f32 %v1867_v6, %v1866_v3  ;;  %v1869_v11 = vpop.f32.mrb[6].mxu1 }
 0x105   : > { %v1822_v12 = vpop.f32.mrb[7].mxu0  ;;  %v1870_v13 = vpop.f32.mrb[7].mxu1 }
 0x106   : > { %1321 = vadd.xlane.f32.xlu1 %v1288_v8  ;;  %v1823_v14 = vadd.f32 %v1822_v12, %v1821_v9  ;;  %v1871_v16 = vadd.f32 %v1870_v13, %v1869_v11  ;;  %v1153_v21 = vmul.f32 %v1820_v7, %v2183_v52  ;;  %v1169_v36 = vmul.f32 %v1868_v10, %v2183_v52 }
 0x107   : > { %v1289_v50 = vmul.f32 %v1820_v7, %v2199_v5  ;;  %v1305_v57 = vmul.f32 %v1868_v10, %v2199_v5 }
 0x108   : > { %v1709_v17 = vpack.c.bf16 %v1823_v14, %v1820_v7  ;;  %1319 = vadd.xlane.f32.xlu0 %v1287_v15  ;;  %v1749_v19 = vpack.c.bf16 %v1871_v16, %v1868_v10  ;;  %v1154_v35 = vmul.f32 %v1823_v14, %v2183_v52  ;;  %v1170_v43 = vmul.f32 %v1871_v16, %v2183_v52 }
 0x109   : > { %v1290_v54 = vmul.f32 %v1823_v14, %v2199_v5  ;;  %v1306_v62 = vmul.f32 %v1871_v16, %v2199_v5 }
 0x10a   : > { %1781 = vst [vmem:[%s2190_s28 + $0x8] sm:$0xff] %v1709_v17   ;;  %1353 = vadd.xlane.f32.xlu1 %v1304_v18  ;;  %1789 = vst [vmem:[%s2190_s28 + $0x48] sm:$0xff] %v1749_v19   ;;  %v1824_v22 = vpop.f32.mrb[8].mxu0  ;;  %v1872_v23 = vpop.f32.mrb[8].mxu1 }
 0x10b   : > { %v1825_v24 = vpop.f32.mrb[9].mxu0  ;;  %v1873_v25 = vpop.f32.mrb[9].mxu1 }
 0x10c   : > { %1351 = vadd.xlane.f32.xlu0 %v1303_v20  ;;  %v2208_v26 = vadd.f32 %v1825_v24, %v1824_v22  ;;  %v1827_v27 = vpop.f32.mrb[10].mxu0  ;;  %v2210_v28 = vadd.f32 %v1873_v25, %v1872_v23  ;;  %v1875_v29 = vpop.f32.mrb[10].mxu1 }
 0x10d   : > { %v1828_v30 = vpop.f32.mrb[11].mxu0  ;;  %v1876_v31 = vpop.f32.mrb[11].mxu1 }
 0x10e   : > { %1187 = vadd.xlane.f32.xlu1 %v1153_v21  ;;  %v2213_v33 = vadd.f32 %v1828_v30, %v1827_v27  ;;  %v2215_v34 = vadd.f32 %v1876_v31, %v1875_v29  ;;  %v1155_v63 = vmul.f32 %v2208_v26, %v2183_v52  ;;  %v1171_v12 = vmul.f32 %v2210_v28, %v2183_v52 }
 0x110   : > { %1185 = vadd.xlane.f32.xlu0 %v1152_v32  ;;  %v1714_v37 = vpack.c.bf16 %v2213_v33, %v2208_v26  ;;  %v1754_v38 = vpack.c.bf16 %v2215_v34, %v2210_v28  ;;  %v1156_v11 = vmul.f32 %v2213_v33, %v2183_v52  ;;  %v1172_v25 = vmul.f32 %v2215_v34, %v2183_v52 }
 0x111   : > { %v1291_v32 = vmul.f32 %v2208_v26, %v2199_v5 }
 0x112   : > { %1189 = vadd.xlane.f32.xlu1 %v1154_v35  ;;  %1782 = vst [vmem:[%s2190_s28 + $0x10] sm:$0xff] %v1714_v37   ;;  %1790 = vst [vmem:[%s2190_s28 + $0x50] sm:$0xff] %v1754_v38   ;;  %v1830_v39 = vpop.f32.mrb[12].mxu0  ;;  %v1878_v40 = vpop.f32.mrb[12].mxu1 }
 0x113   : > { %v1831_v41 = vpop.f32.mrb[13].mxu0  ;;  %v1879_v42 = vpop.f32.mrb[13].mxu1 }
 0x114   : > { %1219 = vadd.xlane.f32.xlu0 %v1169_v36  ;;  %v2226_v44 = vadd.f32 %v1831_v41, %v1830_v39  ;;  %v1833_v45 = vpop.f32.mrb[14].mxu0  ;;  %v2228_v46 = vadd.f32 %v1879_v42, %v1878_v40  ;;  %v1881_v47 = vpop.f32.mrb[14].mxu1  ;;  %v1292_v41 = vmul.f32 %v2213_v33, %v2199_v5 }
 0x115   : > { %v1834_v48 = vpop.f32.mrb[15].mxu0  ;;  %v1882_v49 = vpop.f32.mrb[15].mxu1 }
 0x116   : > { %1221 = vadd.xlane.f32.xlu1 %v1170_v43  ;;  %v2231_v51 = vadd.f32 %v1834_v48, %v1833_v45  ;;  %v2233_v53 = vadd.f32 %v1882_v49, %v1881_v47 }
 0x118   : > { %1323 = vadd.xlane.f32.xlu0 %v1289_v50  ;;  %v1719_v55 = vpack.c.bf16 %v2231_v51, %v2226_v44  ;;  %v1759_v56 = vpack.c.bf16 %v2233_v53, %v2228_v46  ;;  %v1307_v50 = vmul.f32 %v2210_v28, %v2199_v5 }
 0x11a   : > { %1325 = vadd.xlane.f32.xlu1 %v1290_v54  ;;  %1783 = vst [vmem:[%s2190_s28 + $0x18] sm:$0xff] %v1719_v55   ;;  %1791 = vst [vmem:[%s2190_s28 + $0x58] sm:$0xff] %v1759_v56   ;;  %v1836_v58 = vpop.f32.mrb[16].mxu0  ;;  %v1884_v59 = vpop.f32.mrb[16].mxu1 }
 0x11b   : > { %v1837_v60 = vpop.f32.mrb[17].mxu0  ;;  %v1885_v61 = vpop.f32.mrb[17].mxu1 }
 0x11c   : > { %1355 = vadd.xlane.f32.xlu0 %v1305_v57  ;;  %v1838_v0 = vadd.f32 %v1837_v60, %v1836_v58  ;;  %v1839_v1 = vpop.f32.mrb[18].mxu0  ;;  %v1886_v2 = vadd.f32 %v1885_v61, %v1884_v59  ;;  %v1887_v3 = vpop.f32.mrb[18].mxu1  ;;  %v1308_v58 = vmul.f32 %v2215_v34, %v2199_v5  ;;  %v1157_v59 = vmul.f32 %v2226_v44, %v2183_v52 }
 0x11d   : > { %v1840_v4 = vpop.f32.mrb[19].mxu0  ;;  %v1888_v6 = vpop.f32.mrb[19].mxu1  ;;  %v1158_v34 = vmul.f32 %v2231_v51, %v2183_v52 }
 0x11e   : > { %1357 = vadd.xlane.f32.xlu1 %v1306_v62  ;;  %v1841_v7 = vadd.f32 %v1840_v4, %v1839_v1  ;;  %v1889_v8 = vadd.f32 %v1888_v6, %v1887_v3  ;;  %v2247_v9 = vmul.f32 %v1838_v0, %v2183_v52  ;;  %v2250_v10 = vmul.f32 %v1886_v2, %v2183_v52 }
 0x11f   : > { %v2257_v13 = vmul.f32 %v1838_v0, %v2199_v5  ;;  %v2260_v14 = vmul.f32 %v1886_v2, %v2199_v5  ;;  %v1173_v6 = vmul.f32 %v2228_v46, %v2183_v52 }
 0x120   : > { %1191 = vadd.xlane.f32.xlu0 %v1155_v63  ;;  %v1724_v15 = vpack.c.bf16 %v1841_v7, %v1838_v0  ;;  %v1764_v16 = vpack.c.bf16 %v1889_v8, %v1886_v2  ;;  %v2263_v17 = vmul.f32 %v1841_v7, %v2183_v52  ;;  %v2266_v18 = vmul.f32 %v1889_v8, %v2183_v52 }
 0x121   : > { %v2269_v19 = vmul.f32 %v1841_v7, %v2199_v5  ;;  %v2272_v20 = vmul.f32 %v1889_v8, %v2199_v5 }
 0x122   : > { %1193 = vadd.xlane.f32.xlu1 %v1156_v11  ;;  %1784 = vst [vmem:[%s2190_s28 + $0x20] sm:$0xff] %v1724_v15   ;;  %1792 = vst [vmem:[%s2190_s28 + $0x60] sm:$0xff] %v1764_v16   ;;  %v1842_v21 = vpop.f32.mrb[20].mxu0  ;;  %v1890_v22 = vpop.f32.mrb[20].mxu1 }
 0x123   : > { %v1843_v23 = vpop.f32.mrb[21].mxu0  ;;  %v1891_v24 = vpop.f32.mrb[21].mxu1 }
 0x124   : > { %1223 = vadd.xlane.f32.xlu0 %v1171_v12  ;;  %v1844_v27 = vadd.f32 %v1843_v23, %v1842_v21  ;;  %v1845_v29 = vpop.f32.mrb[22].mxu0  ;;  %v1892_v30 = vadd.f32 %v1891_v24, %v1890_v22  ;;  %v1893_v31 = vpop.f32.mrb[22].mxu1 }
 0x125   : > { %v1846_v35 = vpop.f32.mrb[23].mxu0  ;;  %v1894_v36 = vpop.f32.mrb[23].mxu1 }
 0x126   : > { %1225 = vadd.xlane.f32.xlu1 %v1172_v25  ;;  %v1847_v37 = vadd.f32 %v1846_v35, %v1845_v29  ;;  %v1895_v38 = vadd.f32 %v1894_v36, %v1893_v31  ;;  %v2281_v39 = vmul.f32 %v1844_v27, %v2183_v52  ;;  %v2284_v40 = vmul.f32 %v1892_v30, %v2183_v52 }
 0x127   : > { %v2289_v42 = vmul.f32 %v1844_v27, %v2199_v5  ;;  %v2292_v26 = vmul.f32 %v1892_v30, %v2199_v5  ;;  %v1174_v29 = vmul.f32 %v2233_v53, %v2183_v52  ;;  %v1293_v36 = vmul.f32 %v2226_v44, %v2199_v5 }
 0x128   : > { %1327 = vadd.xlane.f32.xlu0 %v1291_v32  ;;  %v1729_v43 = vpack.c.bf16 %v1847_v37, %v1844_v27  ;;  %v1769_v45 = vpack.c.bf16 %v1895_v38, %v1892_v30  ;;  %v2295_v47 = vmul.f32 %v1847_v37, %v2183_v52  ;;  %v2298_v48 = vmul.f32 %v1895_v38, %v2183_v52 }
 0x129   : > { %v2301_v49 = vmul.f32 %v1847_v37, %v2199_v5  ;;  %v2304_v33 = vmul.f32 %v1895_v38, %v2199_v5 }
 0x12a   : > { %1329 = vadd.xlane.f32.xlu1 %v1292_v41  ;;  %1785 = vst [vmem:[%s2190_s28 + $0x28] sm:$0xff] %v1729_v43   ;;  %1793 = vst [vmem:[%s2190_s28 + $0x68] sm:$0xff] %v1769_v45   ;;  %v1848_v54 = vpop.f32.mrb[24].mxu0  ;;  %v1896_v55 = vpop.f32.mrb[24].mxu1 }
 0x12b   : > { %v1849_v56 = vpop.f32.mrb[25].mxu0  ;;  %v1897_v57 = vpop.f32.mrb[25].mxu1 }
 0x12c   : > { %1359 = vadd.xlane.f32.xlu0 %v1307_v50  ;;  %v1850_v60 = vadd.f32 %v1849_v56, %v1848_v54  ;;  %v1851_v61 = vpop.f32.mrb[26].mxu0  ;;  %v1898_v62 = vadd.f32 %v1897_v57, %v1896_v55  ;;  %v1899_v63 = vpop.f32.mrb[26].mxu1  ;;  %v1294_v54 = vmul.f32 %v2231_v51, %v2199_v5  ;;  %v1310_v51 = vmul.f32 %v2233_v53, %v2199_v5 }
 0x12d   : > { %v1852_v0 = vpop.f32.mrb[27].mxu0  ;;  %v1900_v1 = vpop.f32.mrb[27].mxu1 }
 0x12e   : > { %1361 = vadd.xlane.f32.xlu1 %v1308_v58  ;;  %v1853_v28 = vadd.f32 %v1852_v0, %v1851_v61  ;;  %v1901_v2 = vadd.f32 %v1900_v1, %v1899_v63  ;;  %v2315_v3 = vmul.f32 %v1850_v60, %v2183_v52  ;;  %v2318_v4 = vmul.f32 %v1898_v62, %v2183_v52 }
 0x12f   : > { %v2325_v7 = vmul.f32 %v1850_v60, %v2199_v5  ;;  %v2328_v8 = vmul.f32 %v1898_v62, %v2199_v5 }
 0x130   : > { %1195 = vadd.xlane.f32.xlu0 %v1157_v59  ;;  %v1734_v11 = vpack.c.bf16 %v1853_v28, %v1850_v60  ;;  %v1774_v12 = vpack.c.bf16 %v1901_v2, %v1898_v62  ;;  %v1164_v15 = vmul.f32 %v1853_v28, %v2183_v52  ;;  %v1180_v16 = vmul.f32 %v1901_v2, %v2183_v52 }
 0x131   : > { %v1300_v21 = vmul.f32 %v1853_v28, %v2199_v5  ;;  %v1316_v22 = vmul.f32 %v1901_v2, %v2199_v5  ;;  %v1309_v62 = vmul.f32 %v2228_v46, %v2199_v5 }
 0x132   : > { %1197 = vadd.xlane.f32.xlu1 %v1158_v34  ;;  %1786 = vst [vmem:[%s2190_s28 + $0x30] sm:$0xff] %v1734_v11   ;;  %1794 = vst [vmem:[%s2190_s28 + $0x70] sm:$0xff] %v1774_v12   ;;  %v1854_v23 = vpop.f32.mrb[28].mxu0  ;;  %v1902_v24 = vpop.f32.mrb[28].mxu1 }
 0x133   : > { %v1855_v25 = vpop.f32.mrb[29].mxu0  ;;  %v1903_v27 = vpop.f32.mrb[29].mxu1 }
 0x134   : > { %1227 = vadd.xlane.f32.xlu0 %v1173_v6  ;;  %v1856_v30 = vadd.f32 %v1855_v25, %v1854_v23  ;;  %v1857_v31 = vpop.f32.mrb[30].mxu0  ;;  %v1904_v32 = vadd.f32 %v1903_v27, %v1902_v24  ;;  %v1905_v35 = vpop.f32.mrb[30].mxu1 }
 0x135   : > { %v1858_v37 = vpop.f32.mrb[31].mxu0  ;;  %v1906_v38 = vpop.f32.mrb[31].mxu1 }
 0x136   : > { %1229 = vadd.xlane.f32.xlu1 %v1174_v29  ;;  %v1859_v41 = vadd.f32 %v1858_v37, %v1857_v31  ;;  %v1907_v43 = vadd.f32 %v1906_v38, %v1905_v35  ;;  %v1165_v45 = vmul.f32 %v1856_v30, %v2183_v52  ;;  %v1181_v50 = vmul.f32 %v1904_v32, %v2183_v52 }
 0x137   : > { %v1301_v55 = vmul.f32 %v1856_v30, %v2199_v5  ;;  %v1317_v56 = vmul.f32 %v1904_v32, %v2199_v5 }
 0x138   : > { %1331 = vadd.xlane.f32.xlu0 %v1293_v36  ;;  %v1739_v44 = vpack.c.bf16 %v1859_v41, %v1856_v30  ;;  %v1779_v57 = vpack.c.bf16 %v1907_v43, %v1904_v32  ;;  %v1166_v58 = vmul.f32 %v1859_v41, %v2183_v52  ;;  %v1182_v59 = vmul.f32 %v1907_v43, %v2183_v52 }
 0x139   : > { %v1302_v60 = vmul.f32 %v1859_v41, %v2199_v5  ;;  %v1318_v61 = vmul.f32 %v1907_v43, %v2199_v5 }
 0x13a   : > { %1333 = vadd.xlane.f32.xlu1 %v1294_v54  ;;  %1787 = vst [vmem:[%s2190_s28 + $0x38] sm:$0xff] %v1739_v44   ;;  %1795 = vst [vmem:[%s2190_s28 + $0x78] sm:$0xff] %v1779_v57  }
 0x13c   : > { %1363 = vadd.xlane.f32.xlu0 %v1309_v62 }
 0x13e   : > { %1365 = vadd.xlane.f32.xlu1 %v1310_v51 }
 0x140   : > { %1199 = vadd.xlane.f32.xlu0 %v2247_v9 }
 0x142   : > { %1201 = vadd.xlane.f32.xlu1 %v2263_v17 }
 0x144   : > { %1231 = vadd.xlane.f32.xlu0 %v2250_v10 }
 0x146   : > { %1233 = vadd.xlane.f32.xlu1 %v2266_v18 }
 0x148   : > { %1335 = vadd.xlane.f32.xlu0 %v2257_v13 }
 0x14a   : > { %1337 = vadd.xlane.f32.xlu1 %v2269_v19 }
 0x14c   : > { %1367 = vadd.xlane.f32.xlu0 %v2260_v14 }
 0x14e   : > { %1369 = vadd.xlane.f32.xlu1 %v2272_v20 }
 0x150   : > { %1203 = vadd.xlane.f32.xlu0 %v2281_v39 }
 0x152   : > { %1205 = vadd.xlane.f32.xlu1 %v2295_v47 }
 0x154   : > { %1235 = vadd.xlane.f32.xlu0 %v2284_v40 }
 0x156   : > { %1237 = vadd.xlane.f32.xlu1 %v2298_v48 }
 0x158   : > { %1339 = vadd.xlane.f32.xlu0 %v2289_v42 }
 0x15a   : > { %1341 = vadd.xlane.f32.xlu1 %v2301_v49 }
 0x15c   : > { %1371 = vadd.xlane.f32.xlu0 %v2292_v26 }
 0x15e   : > { %1373 = vadd.xlane.f32.xlu1 %v2304_v33 }
 0x160   : > { %1207 = vadd.xlane.f32.xlu0 %v2315_v3 }
 0x162   : > { %1209 = vadd.xlane.f32.xlu1 %v1164_v15 }
 0x164   : > { %1239 = vadd.xlane.f32.xlu0 %v2318_v4 }
 0x166   : > { %1241 = vadd.xlane.f32.xlu1 %v1180_v16 }
 0x168   : > { %1343 = vadd.xlane.f32.xlu0 %v2325_v7 }
 0x16a   : > { %1345 = vadd.xlane.f32.xlu1 %v1300_v21 }
 0x16c   : > { %1375 = vadd.xlane.f32.xlu0 %v2328_v8 }
 0x16e   : > { %1377 = vadd.xlane.f32.xlu1 %v1316_v22 }
 0x170   : > { %1211 = vadd.xlane.f32.xlu0 %v1165_v45 }
 0x172   : > { %1213 = vadd.xlane.f32.xlu1 %v1166_v58 }
 0x174   : > { %1243 = vadd.xlane.f32.xlu0 %v1181_v50 }
 0x176   : > { %1245 = vadd.xlane.f32.xlu1 %v1182_v59 }
 0x178   : > { %1347 = vadd.xlane.f32.xlu0 %v1301_v55 }
 0x17a   : > { %1349 = vadd.xlane.f32.xlu1 %v1302_v60 }
 0x17c   : > { %1379 = vadd.xlane.f32.xlu0 %v1317_v56 }
 0x17e   : > { %1381 = vadd.xlane.f32.xlu1 %v1318_v61 }
 0x18d   : > { %v1184_v52 = vpop.xlane.xlu0 %1183 }
 0x18e   : > { %1248 = vst.msk [vmem:[%s2380_s8] sm:$0xff] %vm1247_vm0, %v1184_v52 }
 0x18f   : > { %v1218_v5 = vpop.xlane.xlu1 %1217 }
 0x190   : > { %1265 = vst.msk [vmem:[%s2380_s8 + $0x88] sm:$0xff] %vm1247_vm0, %v1218_v5 }
 0x191   : > { %v1216_v46 = vpop.xlane.xlu0 %1215 }
 0x192   : > { %1264 = vst.msk [vmem:[%s2380_s8 + $0x80] sm:$0xff] %vm1247_vm0, %v1216_v46 }
 0x193   : > { %v1322_v53 = vpop.xlane.xlu1 %1321 }
 0x194   : > { %1384 = vst.msk [vmem:[%s2390_s11 + $0x8] sm:$0xff] %vm1247_vm0, %v1322_v53 }
 0x195   : > { %v1320_v9 = vpop.xlane.xlu0 %1319 }
 0x196   : > { %1383 = vst.msk [vmem:[%s2390_s11] sm:$0xff] %vm1247_vm0, %v1320_v9 }
 0x197   : > { %v1354_v10 = vpop.xlane.xlu1 %1353 }
 0x198   : > { %1400 = vst.msk [vmem:[%s2390_s11 + $0x88] sm:$0xff] %vm1247_vm0, %v1354_v10 }
 0x199   : > { %v1352_v13 = vpop.xlane.xlu0 %1351 }
 0x19a   : > { %1399 = vst.msk [vmem:[%s2390_s11 + $0x80] sm:$0xff] %vm1247_vm0, %v1352_v13 }
 0x19b   : > { %v1188_v14 = vpop.xlane.xlu1 %1187 }
 0x19c   : > { %1250 = vst.msk [vmem:[%s2380_s8 + $0x10] sm:$0xff] %vm1247_vm0, %v1188_v14 }
 0x19d   : > { %v1186_v17 = vpop.xlane.xlu0 %1185 }
 0x19e   : > { %1249 = vst.msk [vmem:[%s2380_s8 + $0x8] sm:$0xff] %vm1247_vm0, %v1186_v17 }
 0x19f   : > { %v1190_v18 = vpop.xlane.xlu1 %1189 }
 0x1a0   : > { %1251 = vst.msk [vmem:[%s2380_s8 + $0x18] sm:$0xff] %vm1247_vm0, %v1190_v18 }
 0x1a1   : > { %v1220_v19 = vpop.xlane.xlu0 %1219 }
 0x1a2   : > { %1266 = vst.msk [vmem:[%s2380_s8 + $0x90] sm:$0xff] %vm1247_vm0, %v1220_v19 }
 0x1a3   : > { %v1222_v20 = vpop.xlane.xlu1 %1221 }
 0x1a4   : > { %1267 = vst.msk [vmem:[%s2380_s8 + $0x98] sm:$0xff] %vm1247_vm0, %v1222_v20 }
 0x1a5   : > { %v1324_v39 = vpop.xlane.xlu0 %1323 }
 0x1a6   : > { %1385 = vst.msk [vmem:[%s2390_s11 + $0x10] sm:$0xff] %vm1247_vm0, %v1324_v39 }
 0x1a7   : > { %v1326_v40 = vpop.xlane.xlu1 %1325 }
 0x1a8   : > { %1386 = vst.msk [vmem:[%s2390_s11 + $0x18] sm:$0xff] %vm1247_vm0, %v1326_v40 }
 0x1a9   : > { %v1356_v42 = vpop.xlane.xlu0 %1355 }
 0x1aa   : > { %1401 = vst.msk [vmem:[%s2390_s11 + $0x90] sm:$0xff] %vm1247_vm0, %v1356_v42 }
 0x1ab   : > { %v1358_v26 = vpop.xlane.xlu1 %1357 }
 0x1ac   : > { %1402 = vst.msk [vmem:[%s2390_s11 + $0x98] sm:$0xff] %vm1247_vm0, %v1358_v26 }
 0x1ad   : > { %v1192_v47 = vpop.xlane.xlu0 %1191 }
 0x1ae   : > { %1252 = vst.msk [vmem:[%s2380_s8 + $0x20] sm:$0xff] %vm1247_vm0, %v1192_v47 }
 0x1af   : > { %v1194_v48 = vpop.xlane.xlu1 %1193 }
 0x1b0   : > { %1253 = vst.msk [vmem:[%s2380_s8 + $0x28] sm:$0xff] %vm1247_vm0, %v1194_v48 }
 0x1b1   : > { %v1224_v49 = vpop.xlane.xlu0 %1223 }
 0x1b2   : > { %1268 = vst.msk [vmem:[%s2380_s8 + $0xa0] sm:$0xff] %vm1247_vm0, %v1224_v49 }
 0x1b3   : > { %v1226_v33 = vpop.xlane.xlu1 %1225 }
 0x1b4   : > { %1269 = vst.msk [vmem:[%s2380_s8 + $0xa8] sm:$0xff] %vm1247_vm0, %v1226_v33 }
 0x1b5   : > { %v1328_v63 = vpop.xlane.xlu0 %1327 }
 0x1b6   : > { %1387 = vst.msk [vmem:[%s2390_s11 + $0x20] sm:$0xff] %vm1247_vm0, %v1328_v63 }
 0x1b7   : > { %v1330_v0 = vpop.xlane.xlu1 %1329 }
 0x1b8   : > { %1388 = vst.msk [vmem:[%s2390_s11 + $0x28] sm:$0xff] %vm1247_vm0, %v1330_v0 }
 0x1b9   : > { %v1360_v1 = vpop.xlane.xlu0 %1359 }
 0x1ba   : > { %1403 = vst.msk [vmem:[%s2390_s11 + $0xa0] sm:$0xff] %vm1247_vm0, %v1360_v1 }
 0x1bb   : > { %v1362_v28 = vpop.xlane.xlu1 %1361 }
 0x1bc   : > { %1404 = vst.msk [vmem:[%s2390_s11 + $0xa8] sm:$0xff] %vm1247_vm0, %v1362_v28 }
 0x1bd   : > { %v1196_v2 = vpop.xlane.xlu0 %1195 }
 0x1be   : > { %1254 = vst.msk [vmem:[%s2380_s8 + $0x30] sm:$0xff] %vm1247_vm0, %v1196_v2 }
 0x1bf   : > { %v1198_v3 = vpop.xlane.xlu1 %1197 }
 0x1c0   : > { %1255 = vst.msk [vmem:[%s2380_s8 + $0x38] sm:$0xff] %vm1247_vm0, %v1198_v3 }
 0x1c1   : > { %v1228_v4 = vpop.xlane.xlu0 %1227 }
 0x1c2   : > { %1270 = vst.msk [vmem:[%s2380_s8 + $0xb0] sm:$0xff] %vm1247_vm0, %v1228_v4 }
 0x1c3   : > { %v1230_v34 = vpop.xlane.xlu1 %1229 }
 0x1c4   : > { %1271 = vst.msk [vmem:[%s2380_s8 + $0xb8] sm:$0xff] %vm1247_vm0, %v1230_v34 }
 0x1c5   : > { %v1332_v6 = vpop.xlane.xlu0 %1331 }
 0x1c6   : > { %1389 = vst.msk [vmem:[%s2390_s11 + $0x30] sm:$0xff] %vm1247_vm0, %v1332_v6 }
 0x1c7   : > { %v1334_v7 = vpop.xlane.xlu1 %1333 }
 0x1c8   : > { %1390 = vst.msk [vmem:[%s2390_s11 + $0x38] sm:$0xff] %vm1247_vm0, %v1334_v7 }
 0x1c9   : > { %v1364_v8 = vpop.xlane.xlu0 %1363 }
 0x1ca   : > { %1405 = vst.msk [vmem:[%s2390_s11 + $0xb0] sm:$0xff] %vm1247_vm0, %v1364_v8 }
 0x1cb   : > { %v1366_v11 = vpop.xlane.xlu1 %1365 }
 0x1cc   : > { %1406 = vst.msk [vmem:[%s2390_s11 + $0xb8] sm:$0xff] %vm1247_vm0, %v1366_v11 }
 0x1cd   : > { %v1200_v12 = vpop.xlane.xlu0 %1199 }
 0x1ce   : > { %1256 = vst.msk [vmem:[%s2380_s8 + $0x40] sm:$0xff] %vm1247_vm0, %v1200_v12 }
 0x1cf   : > { %v1202_v15 = vpop.xlane.xlu1 %1201 }
 0x1d0   : > { %1257 = vst.msk [vmem:[%s2380_s8 + $0x48] sm:$0xff] %vm1247_vm0, %v1202_v15 }
 0x1d1   : > { %v1232_v16 = vpop.xlane.xlu0 %1231 }
 0x1d2   : > { %1272 = vst.msk [vmem:[%s2380_s8 + $0xc0] sm:$0xff] %vm1247_vm0, %v1232_v16 }
 0x1d3   : > { %v1234_v21 = vpop.xlane.xlu1 %1233 }
 0x1d4   : > { %1273 = vst.msk [vmem:[%s2380_s8 + $0xc8] sm:$0xff] %vm1247_vm0, %v1234_v21 }
 0x1d5   : > { %v1336_v22 = vpop.xlane.xlu0 %1335 }
 0x1d6   : > { %1391 = vst.msk [vmem:[%s2390_s11 + $0x40] sm:$0xff] %vm1247_vm0, %v1336_v22 }
 0x1d7   : > { %v1338_v23 = vpop.xlane.xlu1 %1337 }
 0x1d8   : > { %1392 = vst.msk [vmem:[%s2390_s11 + $0x48] sm:$0xff] %vm1247_vm0, %v1338_v23 }
 0x1d9   : > { %v1368_v24 = vpop.xlane.xlu0 %1367 }
 0x1da   : > { %1407 = vst.msk [vmem:[%s2390_s11 + $0xc0] sm:$0xff] %vm1247_vm0, %v1368_v24 }
 0x1db   : > { %v1370_v25 = vpop.xlane.xlu1 %1369 }
 0x1dc   : > { %1408 = vst.msk [vmem:[%s2390_s11 + $0xc8] sm:$0xff] %vm1247_vm0, %v1370_v25 }
 0x1dd   : > { %v1204_v27 = vpop.xlane.xlu0 %1203 }
 0x1de   : > { %1258 = vst.msk [vmem:[%s2380_s8 + $0x50] sm:$0xff] %vm1247_vm0, %v1204_v27 }
 0x1df   : > { %v1206_v29 = vpop.xlane.xlu1 %1205 }
 0x1e0   : > { %1259 = vst.msk [vmem:[%s2380_s8 + $0x58] sm:$0xff] %vm1247_vm0, %v1206_v29 }
 0x1e1   : > { %v1236_v30 = vpop.xlane.xlu0 %1235 }
 0x1e2   : > { %1274 = vst.msk [vmem:[%s2380_s8 + $0xd0] sm:$0xff] %vm1247_vm0, %v1236_v30 }
 0x1e3   : > { %v1238_v31 = vpop.xlane.xlu1 %1237 }
 0x1e4   : > { %1275 = vst.msk [vmem:[%s2380_s8 + $0xd8] sm:$0xff] %vm1247_vm0, %v1238_v31 }
 0x1e5   : > { %v1340_v32 = vpop.xlane.xlu0 %1339 }
 0x1e6   : > { %1393 = vst.msk [vmem:[%s2390_s11 + $0x50] sm:$0xff] %vm1247_vm0, %v1340_v32 }
 0x1e7   : > { %v1342_v35 = vpop.xlane.xlu1 %1341 }
 0x1e8   : > { %1394 = vst.msk [vmem:[%s2390_s11 + $0x58] sm:$0xff] %vm1247_vm0, %v1342_v35 }
 0x1e9   : > { %v1372_v36 = vpop.xlane.xlu0 %1371 }
 0x1ea   : > { %1409 = vst.msk [vmem:[%s2390_s11 + $0xd0] sm:$0xff] %vm1247_vm0, %v1372_v36 }
 0x1eb   : > { %v1374_v37 = vpop.xlane.xlu1 %1373 }
 0x1ec   : > { %1410 = vst.msk [vmem:[%s2390_s11 + $0xd8] sm:$0xff] %vm1247_vm0, %v1374_v37 }
 0x1ed   : > { %v1208_v38 = vpop.xlane.xlu0 %1207 }
 0x1ee   : > { %1260 = vst.msk [vmem:[%s2380_s8 + $0x60] sm:$0xff] %vm1247_vm0, %v1208_v38 }
 0x1ef   : > { %v1210_v41 = vpop.xlane.xlu1 %1209 }
 0x1f0   : > { %1261 = vst.msk [vmem:[%s2380_s8 + $0x68] sm:$0xff] %vm1247_vm0, %v1210_v41 }
 0x1f1   : > { %v1240_v43 = vpop.xlane.xlu0 %1239 }
 0x1f2   : > { %1276 = vst.msk [vmem:[%s2380_s8 + $0xe0] sm:$0xff] %vm1247_vm0, %v1240_v43 }
 0x1f3   : > { %v1242_v45 = vpop.xlane.xlu1 %1241 }
 0x1f4   : > { %1277 = vst.msk [vmem:[%s2380_s8 + $0xe8] sm:$0xff] %vm1247_vm0, %v1242_v45 }
 0x1f5   : > { %v1344_v50 = vpop.xlane.xlu0 %1343 }
 0x1f6   : > { %1395 = vst.msk [vmem:[%s2390_s11 + $0x60] sm:$0xff] %vm1247_vm0, %v1344_v50 }
 0x1f7   : > { %v1346_v54 = vpop.xlane.xlu1 %1345 }
 0x1f8   : > { %1396 = vst.msk [vmem:[%s2390_s11 + $0x68] sm:$0xff] %vm1247_vm0, %v1346_v54 }
 0x1f9   : > { %v1376_v55 = vpop.xlane.xlu0 %1375 }
 0x1fa   : > { %1411 = vst.msk [vmem:[%s2390_s11 + $0xe0] sm:$0xff] %vm1247_vm0, %v1376_v55 }
 0x1fb   : > { %v1378_v56 = vpop.xlane.xlu1 %1377 }
 0x1fc   : > { %1412 = vst.msk [vmem:[%s2390_s11 + $0xe8] sm:$0xff] %vm1247_vm0, %v1378_v56 }
 0x1fd   : > { %v1212_v44 = vpop.xlane.xlu0 %1211 }
 0x1fe   : > { %1262 = vst.msk [vmem:[%s2380_s8 + $0x70] sm:$0xff] %vm1247_vm0, %v1212_v44 }
 0x1ff   : > { %v1214_v57 = vpop.xlane.xlu1 %1213 }
 0x200   : > { %1263 = vst.msk [vmem:[%s2380_s8 + $0x78] sm:$0xff] %vm1247_vm0, %v1214_v57 }
 0x201   : > { %v1244_v58 = vpop.xlane.xlu0 %1243 }
 0x202   : > { %1278 = vst.msk [vmem:[%s2380_s8 + $0xf0] sm:$0xff] %vm1247_vm0, %v1244_v58 }
 0x203   : > { %v1246_v59 = vpop.xlane.xlu1 %1245 }
 0x204   : > { %1279 = vst.msk [vmem:[%s2380_s8 + $0xf8] sm:$0xff] %vm1247_vm0, %v1246_v59 }
 0x205   : > { %v1348_v60 = vpop.xlane.xlu0 %1347 }
 0x206   : > { %1397 = vst.msk [vmem:[%s2390_s11 + $0x70] sm:$0xff] %vm1247_vm0, %v1348_v60 }
 0x207   : > { %v1350_v61 = vpop.xlane.xlu1 %1349 }
 0x208   : > { %1398 = vst.msk [vmem:[%s2390_s11 + $0x78] sm:$0xff] %vm1247_vm0, %v1350_v61 }
 0x209   : > { %v1380_v62 = vpop.xlane.xlu0 %1379 }
 0x20a   : > { %1413 = vst.msk [vmem:[%s2390_s11 + $0xf0] sm:$0xff] %vm1247_vm0, %v1380_v62 }
 0x20b   : > { %v1382_v51 = vpop.xlane.xlu1 %1381 }
 0x20c   : > { %1414 = vst.msk [vmem:[%s2390_s11 + $0xf8] sm:$0xff] %vm1247_vm0, %v1382_v51 }
 0x20d PF: > { %s17_s23 = sadd.s32 1, %s2034_s23   ;;  %s2532_s21 = smov %s2030_s22 }
 0x20e   : > { %p14_p5 = scmp.ge.s32.totalorder %s17_s23, 4   ;;  %s2533_s22 = smov %s2535_s24 }
 0x210   :  { %16 = sbr.rel (!%p14_p5) target bundleno = 2 (0x2), region = 101 }

// kernel: multi_graph_convolution_layer.3
= control target key start
LH: loop header
LB: loop body
LE: loop exit
PB: predicated region body
PF: predicated region fallthrough
CT: control target
= control target key end

     0   :  { %s4060_s18 = smov 0   ;;  %s4062_s19 = smov 0   ;;  %s7139_s0 = inlined_call_operand.vmem [shape: bf16[512,128], index: 0, kind: input, shape index: {}]   ;;  %s7140_s1 = inlined_call_operand.vmem [shape: s8[512,512], index: 1, kind: input, shape index: {}]   ;;  %s7141_s2 = inlined_call_operand.vmem [shape: f32[512,1], index: 2, kind: input, shape index: {}]   ;;  %s7142_s3 = inlined_call_operand.vmem [shape: f32[1,512], index: 3, kind: input, shape index: {}]   ;;  %s7143_s4 = inlined_call_operand.vmem [shape: f32[1,128], index: 4, kind: input, shape index: {}]   ;;  %s7144_s5 = inlined_call_operand.vmem [shape: f32[512,128], index: 5, kind: output, shape index: {}]  }
   0x1   :  { %s4064_s20 = smov 0   ;;  %s4066_s21 = smov 0  }
   0x2   :  { %s4068_s22 = smov 0   ;;  %s4070_s23 = smov 0  }
   0x3   :  { %s4072_s24 = smov 0  }
   0x4 LB: > { %s24_s25 = sadd.s32 1, %s4016_s22  ;;  %s27_s26 = sadd.s32 1, %s4020_s23  ;;  %s4024_s24 = sphi %s4072_s24, %s15_s24   ;;  %s4020_s23 = sphi %s4070_s23, %s8307_s23   ;;  %s4016_s22 = sphi %s4068_s22, %s8306_s22   ;;  %s4012_s21 = sphi %s4066_s21, %s8305_s21   ;;  %s4008_s20 = sphi %s4064_s20, %s8304_s20   ;;  %s4004_s19 = sphi %s4062_s19, %s8303_s19   ;;  %s4000_s18 = sphi %s4060_s18, %s8302_s18  }
   0x5   : > { %p25_p0 = scmp.ge.s32.totalorder %s24_s25, 2  ;;  %p64_p1 = scmp.ne.s32.totalorder %s4004_s19, %s4000_s18 }
   0x6   : > { %p65_p2 = scmp.eq.s32.totalorder %s4024_s24, 0  ;;  %s57_s30 = sadd.s32 1, %s4004_s19 }
   0x7   : > { %s8309_s25 = smov (%p25_p0, %s24_s25), 0  ;;  %s8311_s26 = smov (!%p25_p0, %s27_s26), %s4020_s23 }
   0x8   : > { %p66_p3 = por %p65_p2, %p64_p1  ;;  %p29_p4 = scmp.ge.s32.totalorder %s8311_s26, 2 }
   0x9   : > { %s53_s27 = ssub.s32 %s4016_s22, %s8309_s25  ;;  %p3373_p6 = scmp.ge.s32.totalorder %s4024_s24, 4 }
   0xa   : > { %s8313_s26 = smov (%p29_p4, %s8311_s26), 0 }
   0xb   : > { %s52_s28 = ssub.s32 %s4020_s23, %s8313_s26  ;;  %195 = sbr.rel (%p3373_p6) target bundleno = 33 (0x21), region = 24 }
   0xc   : > { %s54_s29 = sor.u32 %s53_s27, %s52_s28 }
   0xd   : > { %p55_p5 = scmp.eq.s32.totalorder %s54_s29, 0 }
   0xf   : > { %s4111_s6 = scalar_select %p55_p5, %s4004_s19, %s57_s30  }
  0x12   : > { %198 = sbr.rel (!%p66_p3) target bundleno = 33 (0x21), region = 28  ;;  %s200_s7 = sand.u32 (%p66_p3), 1, %s4004_s19  }
  0x13   : > { %s3376_s8 = sshll.u32 (%p66_p3), %s4016_s22, 1  ;;  %s3374_s9 = sshll.u32 (%p66_p3), %s200_s7, 7 }
  0x14   : > { %s3505_s10 = sshll.u32 (%p66_p3), %s4020_s23, 5  ;;  %s202_s16 = scalar_lea.vmem (%p66_p3), [#allocation4], %s3374_s9 }
  0x15   : > { %s206_s11 = sadd.s32 (%p66_p3), %s3505_s10, %s3376_s8 }
  0x16   : > { %s3378_s12 = sshll.u32 (%p66_p3), %s206_s11, 3 }
  0x17   : > { %s4120_s15 = scalar_lea.vmem (%p66_p3), %s7140_s1, %s3378_s12 }
  0x18   : > { %v221_v0 = vld [vmem:[%s4120_s15] sm:$0xff] (%p66_p3)  ;;  %v223_v1 = vld [vmem:[%s4120_s15 + $0x8] sm:$0xff] (%p66_p3) }
  0x19   : > { %v225_v2 = vld [vmem:[%s4120_s15 + $0x20] sm:$0xff]  ;;  %222 = vst [vmem:[%s202_s16] sm:$0xff] %v221_v0  ;;  %224 = vst [vmem:[%s202_s16 + $0x8] sm:$0xff] %v223_v1  ;;  %v227_v3 = vld [vmem:[%s4120_s15 + $0x28] sm:$0xff] }
  0x1a   : > { %226 = vst [vmem:[%s202_s16 + $0x10] sm:$0xff] %v225_v2  ;;  %v229_v4 = vld [vmem:[%s4120_s15 + $0x40] sm:$0xff]  ;;  %v231_v5 = vld [vmem:[%s4120_s15 + $0x48] sm:$0xff]  ;;  %228 = vst [vmem:[%s202_s16 + $0x18] sm:$0xff] %v227_v3 }
  0x1b   : > { %230 = vst [vmem:[%s202_s16 + $0x20] sm:$0xff] %v229_v4  ;;  %232 = vst [vmem:[%s202_s16 + $0x28] sm:$0xff] %v231_v5  ;;  %v233_v6 = vld [vmem:[%s4120_s15 + $0x60] sm:$0xff]  ;;  %v235_v7 = vld [vmem:[%s4120_s15 + $0x68] sm:$0xff] }
  0x1c   : > { %v237_v8 = vld [vmem:[%s4120_s15 + $0x80] sm:$0xff]  ;;  %234 = vst [vmem:[%s202_s16 + $0x30] sm:$0xff] %v233_v6  ;;  %236 = vst [vmem:[%s202_s16 + $0x38] sm:$0xff] %v235_v7  ;;  %v239_v9 = vld [vmem:[%s4120_s15 + $0x88] sm:$0xff] }
  0x1d   : > { %238 = vst [vmem:[%s202_s16 + $0x40] sm:$0xff] %v237_v8  ;;  %v241_v10 = vld [vmem:[%s4120_s15 + $0xa0] sm:$0xff]  ;;  %v243_v11 = vld [vmem:[%s4120_s15 + $0xa8] sm:$0xff]  ;;  %240 = vst [vmem:[%s202_s16 + $0x48] sm:$0xff] %v239_v9 }
  0x1e   : > { %242 = vst [vmem:[%s202_s16 + $0x50] sm:$0xff] %v241_v10  ;;  %244 = vst [vmem:[%s202_s16 + $0x58] sm:$0xff] %v243_v11  ;;  %v245_v12 = vld [vmem:[%s4120_s15 + $0xc0] sm:$0xff]  ;;  %v247_v13 = vld [vmem:[%s4120_s15 + $0xc8] sm:$0xff] }
  0x1f   : > { %v249_v14 = vld [vmem:[%s4120_s15 + $0xe0] sm:$0xff]  ;;  %246 = vst [vmem:[%s202_s16 + $0x60] sm:$0xff] %v245_v12  ;;  %248 = vst [vmem:[%s202_s16 + $0x68] sm:$0xff] %v247_v13  ;;  %v251_v15 = vld [vmem:[%s4120_s15 + $0xe8] sm:$0xff] }
  0x20   : > { %250 = vst [vmem:[%s202_s16 + $0x70] sm:$0xff] %v249_v14  ;;  %252 = vst [vmem:[%s202_s16 + $0x78] sm:$0xff] %v251_v15 }
  0x21 PF: > { %p3379_p7 = scmp.ge.s32.totalorder %s4024_s24, 1  ;;  %p274_p8 = scmp.lt.s32.totalorder %s4024_s24, 5 }
  0x23   : > { %p275_p9 = pnand %p3379_p7, %p274_p8 }
  0x25   : > { %278 = sbr.rel (%p275_p9) target bundleno = 1085 (0x43d), region = 59 }
  0x2c   : > { %s281_s17 = sand.u32 1, %s4000_s18   ;;  %s3381_s27 = sshll.u32 %s4012_s21, 5 }
  0x2d   : > { %s3380_s28 = sshll.u32 %s281_s17, 7  ;;  %p320_p10 = scmp.lt.s32.totalorder %s3381_s27, 63 }
  0x2e   : > { %s3383_s29 = sshll.u32 %s4008_s20, 1  ;;  %s4159_s14 = scalar_lea.vmem [#allocation4], %s3380_s28 }
  0x2f   : > { %s8315_s27 = smov (!%p320_p10, %s3381_s27), 63  ;;  %p326_p11 = scmp.lt.s32.totalorder %s3383_s29, 3 }
  0x30   : > { %s3382_s30 = sshll.u32 %s8315_s27, 3  ;;  %p3386_p12 = scmp.ne.s32.totalorder %s4008_s20, 0 }
  0x31   : > { %s4146_s9 = scalar_lea.vmem %s7141_s2, %s3382_s30  ;;  %s4151_s12 = scalar_lea.vmem %s7144_s5, %s3382_s30  ;;  %vm343_vm0 = vcmask (!%p3386_p12), 7168   ;;  %v4026_v16 = vmov (!%p3386_p12), -1e+30   ;;  %v4027_v17 = vmov (!%p3386_p12), 0.0  }
  0x32   : > { %s8317_s29 = smov (!%p326_p11, %s3383_s29), 3  ;;  %342 = sbr.rel (%p3386_p12) target bundleno = 99 (0x63), region = 67 }
  0x33   : > { %s328_s13 = scalar_lea.vmem %s7142_s3, %s8317_s29  ;;  %344 = vst.msk [vmem:[#allocation2] sm:$0xff] (!%p3386_p12), %vm343_vm0, %v4026_v16  ;;  %345 = vst.msk [vmem:[#allocation2 + $0x8] sm:$0xff] (!%p3386_p12), %vm343_vm0, %v4026_v16 }
  0x34   : > { %346 = vst.msk [vmem:[#allocation2 + $0x10] sm:$0xff] (!%p3386_p12), %vm343_vm0, %v4026_v16  ;;  %347 = vst.msk [vmem:[#allocation2 + $0x18] sm:$0xff] (!%p3386_p12), %vm343_vm0, %v4026_v16 }
  0x35   : > { %348 = vst.msk [vmem:[#allocation2 + $0x20] sm:$0xff] (!%p3386_p12), %vm343_vm0, %v4026_v16  ;;  %349 = vst.msk [vmem:[#allocation2 + $0x28] sm:$0xff] (!%p3386_p12), %vm343_vm0, %v4026_v16 }
  0x36   : > { %350 = vst.msk [vmem:[#allocation2 + $0x30] sm:$0xff] (!%p3386_p12), %vm343_vm0, %v4026_v16  ;;  %351 = vst.msk [vmem:[#allocation2 + $0x38] sm:$0xff] (!%p3386_p12), %vm343_vm0, %v4026_v16 }
  0x37   : > { %352 = vst.msk [vmem:[#allocation2 + $0x40] sm:$0xff] (!%p3386_p12), %vm343_vm0, %v4026_v16  ;;  %353 = vst.msk [vmem:[#allocation2 + $0x48] sm:$0xff] (!%p3386_p12), %vm343_vm0, %v4026_v16 }
  0x38   : > { %354 = vst.msk [vmem:[#allocation2 + $0x50] sm:$0xff] (!%p3386_p12), %vm343_vm0, %v4026_v16  ;;  %355 = vst.msk [vmem:[#allocation2 + $0x58] sm:$0xff] (!%p3386_p12), %vm343_vm0, %v4026_v16 }
  0x39   : > { %356 = vst.msk [vmem:[#allocation2 + $0x60] sm:$0xff] %vm343_vm0, %v4026_v16  ;;  %357 = vst.msk [vmem:[#allocation2 + $0x68] sm:$0xff] %vm343_vm0, %v4026_v16 }
  0x3a   : > { %358 = vst.msk [vmem:[#allocation2 + $0x70] sm:$0xff] %vm343_vm0, %v4026_v16  ;;  %359 = vst.msk [vmem:[#allocation2 + $0x78] sm:$0xff] %vm343_vm0, %v4026_v16 }
  0x3b   : > { %360 = vst.msk [vmem:[#allocation2 + $0x80] sm:$0xff] %vm343_vm0, %v4026_v16  ;;  %361 = vst.msk [vmem:[#allocation2 + $0x88] sm:$0xff] %vm343_vm0, %v4026_v16 }
  0x3c   : > { %362 = vst.msk [vmem:[#allocation2 + $0x90] sm:$0xff] %vm343_vm0, %v4026_v16  ;;  %363 = vst.msk [vmem:[#allocation2 + $0x98] sm:$0xff] %vm343_vm0, %v4026_v16 }
  0x3d   : > { %364 = vst.msk [vmem:[#allocation2 + $0xa0] sm:$0xff] %vm343_vm0, %v4026_v16  ;;  %365 = vst.msk [vmem:[#allocation2 + $0xa8] sm:$0xff] %vm343_vm0, %v4026_v16 }
  0x3e   : > { %366 = vst.msk [vmem:[#allocation2 + $0xb0] sm:$0xff] %vm343_vm0, %v4026_v16  ;;  %367 = vst.msk [vmem:[#allocation2 + $0xb8] sm:$0xff] %vm343_vm0, %v4026_v16 }
  0x3f   : > { %368 = vst.msk [vmem:[#allocation2 + $0xc0] sm:$0xff] %vm343_vm0, %v4026_v16  ;;  %369 = vst.msk [vmem:[#allocation2 + $0xc8] sm:$0xff] %vm343_vm0, %v4026_v16 }
  0x40   : > { %370 = vst.msk [vmem:[#allocation2 + $0xd0] sm:$0xff] %vm343_vm0, %v4026_v16  ;;  %371 = vst.msk [vmem:[#allocation2 + $0xd8] sm:$0xff] %vm343_vm0, %v4026_v16 }
  0x41   : > { %372 = vst.msk [vmem:[#allocation2 + $0xe0] sm:$0xff] %vm343_vm0, %v4026_v16  ;;  %373 = vst.msk [vmem:[#allocation2 + $0xe8] sm:$0xff] %vm343_vm0, %v4026_v16 }
  0x42   : > { %374 = vst.msk [vmem:[#allocation2 + $0xf0] sm:$0xff] %vm343_vm0, %v4026_v16  ;;  %375 = vst.msk [vmem:[#allocation2 + $0xf8] sm:$0xff] %vm343_vm0, %v4026_v16 }
  0x43   : > { %376 = vst.msk [vmem:[#allocation3] sm:$0xff] %vm343_vm0, %v4027_v17  ;;  %377 = vst.msk [vmem:[#allocation3 + $0x8] sm:$0xff] %vm343_vm0, %v4027_v17 }
  0x44   : > { %378 = vst.msk [vmem:[#allocation3 + $0x10] sm:$0xff] %vm343_vm0, %v4027_v17  ;;  %379 = vst.msk [vmem:[#allocation3 + $0x18] sm:$0xff] %vm343_vm0, %v4027_v17 }
  0x45   : > { %380 = vst.msk [vmem:[#allocation3 + $0x20] sm:$0xff] %vm343_vm0, %v4027_v17  ;;  %381 = vst.msk [vmem:[#allocation3 + $0x28] sm:$0xff] %vm343_vm0, %v4027_v17 }
  0x46   : > { %382 = vst.msk [vmem:[#allocation3 + $0x30] sm:$0xff] %vm343_vm0, %v4027_v17  ;;  %383 = vst.msk [vmem:[#allocation3 + $0x38] sm:$0xff] %vm343_vm0, %v4027_v17 }
  0x47   : > { %384 = vst.msk [vmem:[#allocation3 + $0x40] sm:$0xff] %vm343_vm0, %v4027_v17  ;;  %385 = vst.msk [vmem:[#allocation3 + $0x48] sm:$0xff] %vm343_vm0, %v4027_v17 }
  0x48   : > { %386 = vst.msk [vmem:[#allocation3 + $0x50] sm:$0xff] %vm343_vm0, %v4027_v17  ;;  %387 = vst.msk [vmem:[#allocation3 + $0x58] sm:$0xff] %vm343_vm0, %v4027_v17 }
  0x49   : > { %388 = vst.msk [vmem:[#allocation3 + $0x60] sm:$0xff] %vm343_vm0, %v4027_v17  ;;  %389 = vst.msk [vmem:[#allocation3 + $0x68] sm:$0xff] %vm343_vm0, %v4027_v17 }
  0x4a   : > { %390 = vst.msk [vmem:[#allocation3 + $0x70] sm:$0xff] %vm343_vm0, %v4027_v17  ;;  %391 = vst.msk [vmem:[#allocation3 + $0x78] sm:$0xff] %vm343_vm0, %v4027_v17 }
  0x4b   : > { %392 = vst.msk [vmem:[#allocation3 + $0x80] sm:$0xff] %vm343_vm0, %v4027_v17  ;;  %393 = vst.msk [vmem:[#allocation3 + $0x88] sm:$0xff] %vm343_vm0, %v4027_v17 }
  0x4c   : > { %394 = vst.msk [vmem:[#allocation3 + $0x90] sm:$0xff] %vm343_vm0, %v4027_v17  ;;  %395 = vst.msk [vmem:[#allocation3 + $0x98] sm:$0xff] %vm343_vm0, %v4027_v17 }
  0x4d   : > { %396 = vst.msk [vmem:[#allocation3 + $0xa0] sm:$0xff] %vm343_vm0, %v4027_v17  ;;  %397 = vst.msk [vmem:[#allocation3 + $0xa8] sm:$0xff] %vm343_vm0, %v4027_v17 }
  0x4e   : > { %398 = vst.msk [vmem:[#allocation3 + $0xb0] sm:$0xff] %vm343_vm0, %v4027_v17  ;;  %399 = vst.msk [vmem:[#allocation3 + $0xb8] sm:$0xff] %vm343_vm0, %v4027_v17 }
  0x4f   : > { %400 = vst.msk [vmem:[#allocation3 + $0xc0] sm:$0xff] %vm343_vm0, %v4027_v17  ;;  %401 = vst.msk [vmem:[#allocation3 + $0xc8] sm:$0xff] %vm343_vm0, %v4027_v17 }
  0x50   : > { %402 = vst.msk [vmem:[#allocation3 + $0xd0] sm:$0xff] %vm343_vm0, %v4027_v17  ;;  %403 = vst.msk [vmem:[#allocation3 + $0xd8] sm:$0xff] %vm343_vm0, %v4027_v17 }
  0x51   : > { %404 = vst.msk [vmem:[#allocation3 + $0xe0] sm:$0xff] %vm343_vm0, %v4027_v17  ;;  %405 = vst.msk [vmem:[#allocation3 + $0xe8] sm:$0xff] %vm343_vm0, %v4027_v17 }
  0x52   : > { %406 = vst.msk [vmem:[#allocation3 + $0xf0] sm:$0xff] %vm343_vm0, %v4027_v17  ;;  %407 = vst.msk [vmem:[#allocation3 + $0xf8] sm:$0xff] %vm343_vm0, %v4027_v17 }
  0x53   : > { %408 = vst [vmem:[%s4151_s12] sm:$0xff] %v4027_v17  ;;  %409 = vst [vmem:[%s4151_s12 + $0x8] sm:$0xff] %v4027_v17 }
  0x54   : > { %410 = vst [vmem:[%s4151_s12 + $0x10] sm:$0xff] %v4027_v17  ;;  %411 = vst [vmem:[%s4151_s12 + $0x18] sm:$0xff] %v4027_v17 }
  0x55   : > { %412 = vst [vmem:[%s4151_s12 + $0x20] sm:$0xff] %v4027_v17  ;;  %413 = vst [vmem:[%s4151_s12 + $0x28] sm:$0xff] %v4027_v17 }
  0x56   : > { %414 = vst [vmem:[%s4151_s12 + $0x30] sm:$0xff] %v4027_v17  ;;  %415 = vst [vmem:[%s4151_s12 + $0x38] sm:$0xff] %v4027_v17 }
  0x57   : > { %416 = vst [vmem:[%s4151_s12 + $0x40] sm:$0xff] %v4027_v17  ;;  %417 = vst [vmem:[%s4151_s12 + $0x48] sm:$0xff] %v4027_v17 }
  0x58   : > { %418 = vst [vmem:[%s4151_s12 + $0x50] sm:$0xff] %v4027_v17  ;;  %419 = vst [vmem:[%s4151_s12 + $0x58] sm:$0xff] %v4027_v17 }
  0x59   : > { %420 = vst [vmem:[%s4151_s12 + $0x60] sm:$0xff] %v4027_v17  ;;  %421 = vst [vmem:[%s4151_s12 + $0x68] sm:$0xff] %v4027_v17 }
  0x5a   : > { %422 = vst [vmem:[%s4151_s12 + $0x70] sm:$0xff] %v4027_v17  ;;  %423 = vst [vmem:[%s4151_s12 + $0x78] sm:$0xff] %v4027_v17 }
  0x5b   : > { %424 = vst [vmem:[%s4151_s12 + $0x80] sm:$0xff] %v4027_v17  ;;  %425 = vst [vmem:[%s4151_s12 + $0x88] sm:$0xff] %v4027_v17 }
  0x5c   : > { %426 = vst [vmem:[%s4151_s12 + $0x90] sm:$0xff] %v4027_v17  ;;  %427 = vst [vmem:[%s4151_s12 + $0x98] sm:$0xff] %v4027_v17 }
  0x5d   : > { %428 = vst [vmem:[%s4151_s12 + $0xa0] sm:$0xff] %v4027_v17  ;;  %429 = vst [vmem:[%s4151_s12 + $0xa8] sm:$0xff] %v4027_v17 }
  0x5e   : > { %430 = vst [vmem:[%s4151_s12 + $0xb0] sm:$0xff] %v4027_v17  ;;  %431 = vst [vmem:[%s4151_s12 + $0xb8] sm:$0xff] %v4027_v17 }
  0x5f   : > { %432 = vst [vmem:[%s4151_s12 + $0xc0] sm:$0xff] %v4027_v17  ;;  %433 = vst [vmem:[%s4151_s12 + $0xc8] sm:$0xff] %v4027_v17 }
  0x60   : > { %434 = vst [vmem:[%s4151_s12 + $0xd0] sm:$0xff] %v4027_v17  ;;  %435 = vst [vmem:[%s4151_s12 + $0xd8] sm:$0xff] %v4027_v17 }
  0x61   : > { %436 = vst [vmem:[%s4151_s12 + $0xe0] sm:$0xff] %v4027_v17  ;;  %437 = vst [vmem:[%s4151_s12 + $0xe8] sm:$0xff] %v4027_v17 }
  0x62   : > { %438 = vst [vmem:[%s4151_s12 + $0xf0] sm:$0xff] %v4027_v17  ;;  %439 = vst [vmem:[%s4151_s12 + $0xf8] sm:$0xff] %v4027_v17 }
  0x63 PF: > { %v479_v18 = vld [vmem:[%s4146_s9 + $0x10] sm:$0xff]  ;;  %v477_v19 = vld [vmem:[%s4146_s9] sm:$0xff]  ;;  %v7145_v20 = vmov 0   ;;  %v480_v21 = vld [vmem:[%s4146_s9 + $0x18] sm:$0xff]  ;;  %v671_v0 = vlaneseq  ;;  %s3387_s17 = sshll.u32 %s4008_s20, 8  ;;  %p3501_p13 = scmp.ne.s32.totalorder %s4008_s20, 1 }
  0x64   : > { %3695 = vset.pattern.permute.xlu1 %v7145_v20  ;;  %3694 = vset.pattern.permute.xlu0 %v7145_v20  ;;  %v478_v22 = vld [vmem:[%s4146_s9 + $0x8] sm:$0xff]  ;;  %v481_v24 = vld [vmem:[%s4146_s9 + $0x20] sm:$0xff]  ;;  %v484_v25 = vld [vmem:[%s4146_s9 + $0x38] sm:$0xff]  ;;  %s441_s27 = sshra.s32 %s3387_s17, 3 }
  0x65   : > { %522 = vperm.xlu1 %3695, %v479_v18   ;;  %512 = vperm.xlu0 %3694, %v477_v19   ;;  %v482_v23 = vld [vmem:[%s4146_s9 + $0x28] sm:$0xff]  ;;  %v483_v26 = vld [vmem:[%s4146_s9 + $0x30] sm:$0xff]  ;;  %v485_v28 = vld [vmem:[%s4146_s9 + $0x40] sm:$0xff]  ;;  %v672_v10 = vshrl.u32 %v671_v0, 7  ;;  %s3388_s28 = sshll.u32 %s441_s27, 2 }
  0x66   : > { %v486_v27 = vld [vmem:[%s4146_s9 + $0x48] sm:$0xff]  ;;  %v488_v29 = vld [vmem:[%s4146_s9 + $0x58] sm:$0xff]  ;;  %v487_v30 = vld [vmem:[%s4146_s9 + $0x50] sm:$0xff]  ;;  %s5726_s7 = scalar_lea.vmem %s7139_s0, %s3388_s28 }
  0x67   : > { %v490_v31 = vld [vmem:[%s4146_s9 + $0x68] sm:$0xff]  ;;  %v489_v32 = vld [vmem:[%s4146_s9 + $0x60] sm:$0xff]  ;;  %v492_v33 = vld [vmem:[%s4146_s9 + $0x78] sm:$0xff]  ;;  %v673_v18 = vsub.s32 0, %v672_v10  ;;  %v677_v19 = vsub.s32 1, %v672_v10 }
  0x68   : > { %v491_v34 = vld [vmem:[%s4146_s9 + $0x70] sm:$0xff]  ;;  %v494_v35 = vld [vmem:[%s4146_s9 + $0x88] sm:$0xff]  ;;  %v493_v36 = vld [vmem:[%s4146_s9 + $0x80] sm:$0xff] }
  0x69   : > { %527 = vperm.xlu1 %3695, %v480_v21   ;;  %517 = vperm.xlu0 %3694, %v478_v22   ;;  %v496_v37 = vld [vmem:[%s4146_s9 + $0x98] sm:$0xff]  ;;  %v495_v38 = vld [vmem:[%s4146_s9 + $0x90] sm:$0xff]  ;;  %v498_v39 = vld [vmem:[%s4146_s9 + $0xa8] sm:$0xff] }
  0x6a   : > { %v497_v40 = vld [vmem:[%s4146_s9 + $0xa0] sm:$0xff]  ;;  %v500_v41 = vld [vmem:[%s4146_s9 + $0xb8] sm:$0xff]  ;;  %v499_v42 = vld [vmem:[%s4146_s9 + $0xb0] sm:$0xff] }
  0x6b   : > { %v502_v43 = vld [vmem:[%s4146_s9 + $0xc8] sm:$0xff]  ;;  %v501_v44 = vld [vmem:[%s4146_s9 + $0xc0] sm:$0xff]  ;;  %v504_v47 = vld [vmem:[%s4146_s9 + $0xd8] sm:$0xff] }
  0x6c   : > { %v937_v45 = vld [vmem:[%s4159_s14] sm:$0xff]  ;;  %v938_v46 = vld [vmem:[%s4159_s14 + $0x8] sm:$0xff]  ;;  %v503_v48 = vld [vmem:[%s4146_s9 + $0xd0] sm:$0xff] }
  0x6d   : > { %537 = vperm.xlu1 %3695, %v482_v23   ;;  %532 = vperm.xlu0 %3694, %v481_v24   ;;  %vm953_vm1 = vnez %v937_v45  ;;  %vm954_vm2 = vnez %v938_v46  ;;  %v506_v49 = vld [vmem:[%s4146_s9 + $0xe8] sm:$0xff]  ;;  %v505_v50 = vld [vmem:[%s4146_s9 + $0xe0] sm:$0xff]  ;;  %v939_v55 = vld [vmem:[%s4159_s14 + $0x10] sm:$0xff] }
  0x6e   : > { %v969_v51 = vsel %vm953_vm1, 16843009, %v7145_v20  ;;  %v970_v52 = vsel %vm954_vm2, 16843009, %v7145_v20  ;;  %v508_v56 = vld [vmem:[%s4146_s9 + $0xf8] sm:$0xff]  ;;  %v507_v57 = vld [vmem:[%s4146_s9 + $0xf0] sm:$0xff]  ;;  %vm955_vm3 = vnez %v939_v55 }
  0x6f   : > { %v985_v53 = vunpack.c.0.s8 %v969_v51  ;;  %v986_v54 = vunpack.c.0.s8 %v970_v52  ;;  %v940_v58 = vld [vmem:[%s4159_s14 + $0x18] sm:$0xff]  ;;  %v987_v59 = vunpack.c.1.s8 %v969_v51  ;;  %v988_v60 = vunpack.c.1.s8 %v970_v52  ;;  %v945_v6 = vld [vmem:[%s4159_s14 + $0x40] sm:$0xff]  ;;  %v946_v7 = vld [vmem:[%s4159_s14 + $0x48] sm:$0xff] }
  0x70   : > { %v989_v61 = vunpack.c.2.s8 %v969_v51  ;;  %v990_v62 = vunpack.c.2.s8 %v970_v52  ;;  %vm956_vm4 = vnez %v940_v58  ;;  %v991_v1 = vunpack.c.3.s8 %v969_v51  ;;  %v509_v23 = vld [vmem:[%s328_s13] sm:$0x3] }
  0x71   : > { %547 = vperm.xlu1 %3695, %v484_v25   ;;  %542 = vperm.xlu0 %3694, %v483_v26   ;;  %v1049_v63 = vpack.c.b16 %v986_v54, %v985_v53  ;;  %v992_v2 = vunpack.c.3.s8 %v970_v52  ;;  %v1051_v3 = vpack.c.b16 %v988_v60, %v987_v59  ;;  %v4363_v4 = vsel %vm955_vm3, 16843009, %v7145_v20  ;;  %v941_v54 = vld [vmem:[%s4159_s14 + $0x20] sm:$0xff] }
  0x72   : > { %v1053_v5 = vpack.c.b16 %v990_v62, %v989_v61  ;;  %v4368_v8 = vsel %vm956_vm4, 16843009, %v7145_v20  ;;  %v993_v12 = vunpack.c.0.s8 %v4363_v4  ;;  %vm961_vm5 = vnez %v945_v6 }
  0x73   : > { %v1050_v9 = vpack.c.b8 %v1049_v63, %v1049_v63  ;;  %v1055_v11 = vpack.c.b16 %v992_v2, %v991_v1  ;;  %v1052_v13 = vpack.c.b8 %v1051_v3, %v1051_v3  ;;  %vm962_vm6 = vnez %v946_v7  ;;  %v942_v2 = vld [vmem:[%s4159_s14 + $0x28] sm:$0xff] }
  0x74   : > { %v994_v14 = vunpack.c.0.s8 %v4368_v8  ;;  %v1054_v15 = vpack.c.b8 %v1053_v5, %v1053_v5  ;;  %v995_v16 = vunpack.c.1.s8 %v4363_v4  ;;  %v996_v17 = vunpack.c.1.s8 %v4368_v8 }
  0x75   : > { %557 = vperm.xlu1 %3695, %v486_v27   ;;  %552 = vperm.xlu0 %3694, %v485_v28   ;;  %vm1113_vm7 = vnez %v1050_v9  ;;  %v977_v21 = vsel %vm961_vm5, 16843009, %v7145_v20  ;;  %v978_v22 = vsel %vm962_vm6, 16843009, %v7145_v20  ;;  %vm1114_vm8 = vnez %v1052_v13 }
  0x76   : > { %v1056_v24 = vpack.c.b8 %v1055_v11, %v1055_v11  ;;  %v1057_v25 = vpack.c.b16 %v994_v14, %v993_v12  ;;  %v997_v26 = vunpack.c.2.s8 %v4363_v4  ;;  %v4383_v27 = vsel %vm1113_vm7, 16843009, %v7145_v20 }
  0x77   : > { %vm1115_vm9 = vnez %v1054_v15  ;;  %v1059_v28 = vpack.c.b16 %v996_v17, %v995_v16  ;;  %v1022_v51 = vunpack.c.2.s8 %v978_v22  ;;  %v1023_v52 = vunpack.c.3.s8 %v977_v21 }
  0x78   : > { %vm4401_vm10 = vnez %v1056_v24  ;;  %v1024_v53 = vunpack.c.3.s8 %v978_v22  ;;  %vm957_vm15 = vnez %v941_v54  ;;  %vm958_vm0 = vnez %v942_v2 }
  0x79   : > { %567 = vperm.xlu1 %3695, %v488_v29   ;;  %562 = vperm.xlu0 %3694, %v487_v30   ;;  %v998_v29 = vunpack.c.2.s8 %v4368_v8  ;;  %v1017_v30 = vunpack.c.0.s8 %v977_v21  ;;  %v1060_v45 = vpack.c.b8 %v1059_v28, %v1059_v28  ;;  %v4413_v58 = vsel %vm4401_vm10, 16843009, %v7145_v20 }
  0x7a   : > { %v1087_v6 = vpack.c.b16 %v1024_v53, %v1023_v52  ;;  %v1183_v11 = vunpack.c.0.s8 %v4413_v58  ;;  %v4457_v24 = vsel %vm958_vm0, 16843009, %v7145_v20 }
  0x7b   : > { %v1061_v46 = vpack.c.b16 %v998_v29, %v997_v26  ;;  %vm4426_vm14 = vnez %v1060_v45 }
  0x7c   : > { %v4446_v15 = vsel %vm4426_vm14, 16843009, %v7145_v20 }
  0x7d   : > { %577 = vperm.xlu1 %3695, %v490_v31   ;;  %572 = vperm.xlu0 %3694, %v489_v32   ;;  %v1018_v31 = vunpack.c.0.s8 %v978_v22  ;;  %v1019_v32 = vunpack.c.1.s8 %v977_v21  ;;  %v1062_v0 = vpack.c.b8 %v1061_v46, %v1061_v46 }
  0x7f   : > { %vm4448_vm1 = vnez %v1062_v0 }
  0x81   : > { %587 = vperm.xlu1 %3695, %v492_v33   ;;  %582 = vperm.xlu0 %3694, %v491_v34   ;;  %v1020_v33 = vunpack.c.1.s8 %v978_v22  ;;  %v4386_v34 = vrot.slane %v509_v23, %v673_v18 }
  0x85   : > { %597 = vperm.xlu1 %3695, %v494_v35   ;;  %592 = vperm.xlu0 %3694, %v493_v36   ;;  %v4388_v35 = vrot.slane %v509_v23, %v677_v19  ;;  %v4391_v36 = vsel %vm1114_vm8, 16843009, %v7145_v20  ;;  %v4454_v19 = vsel %vm957_vm15, 16843009, %v7145_v20 }
  0x86   : > { %v1179_v55 = vunpack.c.0.s8 %v4391_v36 }
  0x89   : > { %607 = vperm.xlu1 %3695, %v496_v37   ;;  %602 = vperm.xlu0 %3694, %v495_v38   ;;  %v947_v37 = vld [vmem:[%s4159_s14 + $0x50] sm:$0xff]  ;;  %v948_v38 = vld [vmem:[%s4159_s14 + $0x58] sm:$0xff] }
  0x8a   : > { %vm963_vm11 = vnez %v947_v37  ;;  %vm964_vm12 = vnez %v948_v38  ;;  %v1004_v37 = vunpack.c.1.s8 %v4457_v24  ;;  %v1005_v38 = vunpack.c.2.s8 %v4454_v19 }
  0x8b   : > { %v4421_v61 = vsel %vm963_vm11, 16843009, %v7145_v20  ;;  %v4424_v62 = vsel %vm964_vm12, 16843009, %v7145_v20 }
  0x8c   : > { %v1025_v7 = vunpack.c.0.s8 %v4421_v61  ;;  %v1027_v9 = vunpack.c.1.s8 %v4421_v61  ;;  %v1028_v10 = vunpack.c.1.s8 %v4424_v62  ;;  %v1029_v12 = vunpack.c.2.s8 %v4421_v61 }
  0x8d   : > { %617 = vperm.xlu1 %3695, %v498_v39   ;;  %612 = vperm.xlu0 %3694, %v497_v40   ;;  %v999_v39 = vunpack.c.3.s8 %v4363_v4  ;;  %v1177_v40 = vunpack.c.0.s8 %v4383_v27  ;;  %v1030_v13 = vunpack.c.2.s8 %v4424_v62  ;;  %v1031_v2 = vunpack.c.3.s8 %v4421_v61 }
  0x8e   : > { %v1091_v23 = vpack.c.b16 %v1028_v10, %v1027_v9 }
  0x8f   : > { %v1093_v29 = vpack.c.b16 %v1030_v13, %v1029_v12 }
  0x90   : > { %v1092_v46 = vpack.c.b8 %v1091_v23, %v1091_v23 }
  0x91   : > { %627 = vperm.xlu1 %3695, %v500_v41   ;;  %622 = vperm.xlu0 %3694, %v499_v42   ;;  %v1178_v41 = vunpack.c.1.s8 %v4383_v27  ;;  %v4399_v42 = vsel %vm1115_vm9, 16843009, %v7145_v20  ;;  %v1094_v52 = vpack.c.b8 %v1093_v29, %v1093_v29  ;;  %v1003_v29 = vunpack.c.1.s8 %v4454_v19 }
  0x92   : > { %v1182_v59 = vunpack.c.1.s8 %v4399_v42  ;;  %vm1134_vm10 = vnez %v1092_v46  ;;  %v7579_v27 = vmov 0 }
  0x93   : > { %vm1135_vm11 = vnez %v1094_v52  ;;  %v4525_v16 = vsel %vm1134_vm10, 16843009, %v7145_v20  ;;  %v1067_v46 = vpack.c.b16 %v1004_v37, %v1003_v29 }
  0x95   : > { %637 = vperm.xlu1 %3695, %v502_v43   ;;  %632 = vperm.xlu0 %3694, %v501_v44   ;;  %v1058_v44 = vpack.c.b8 %v1057_v25, %v1057_v25  ;;  %v1002_v43 = vunpack.c.0.s8 %v4457_v24  ;;  %v1068_v37 = vpack.c.b8 %v1067_v46, %v1067_v46 }
  0x97   : > { %vm4416_vm13 = vnez %v1058_v44 }
  0x98   : > { %v4441_v14 = vsel %vm4416_vm13, 16843009, %v7145_v20 }
  0x99   : > { %647 = vperm.xlu1 %3695, %v504_v47   ;;  %642 = vperm.xlu0 %3694, %v503_v48   ;;  %v1000_v47 = vunpack.c.3.s8 %v4368_v8  ;;  %v1081_v48 = vpack.c.b16 %v1018_v31, %v1017_v30  ;;  %v1026_v8 = vunpack.c.0.s8 %v4424_v62 }
  0x9b   : > { %v1063_v1 = vpack.c.b16 %v1000_v47, %v999_v39  ;;  %v1082_v3 = vpack.c.b8 %v1081_v48, %v1081_v48  ;;  %v1089_v22 = vpack.c.b16 %v1026_v8, %v1025_v7  ;;  %v1001_v39 = vunpack.c.0.s8 %v4454_v19  ;;  %v949_v47 = vld [vmem:[%s4159_s14 + $0x60] sm:$0xff]  ;;  %v950_v48 = vld [vmem:[%s4159_s14 + $0x68] sm:$0xff]  ;;  %v943_v7 = vld [vmem:[%s4159_s14 + $0x30] sm:$0xff] }
  0x9c   : > { %vm965_vm7 = vnez %v949_v47  ;;  %vm966_vm8 = vnez %v950_v48  ;;  %v944_v8 = vld [vmem:[%s4159_s14 + $0x38] sm:$0xff]  ;;  %vm959_vm12 = vnez %v943_v7 }
  0x9d   : > { %657 = vperm.xlu1 %3695, %v506_v49   ;;  %652 = vperm.xlu0 %3694, %v505_v50   ;;  %v1083_v49 = vpack.c.b16 %v1020_v33, %v1019_v32  ;;  %v1021_v50 = vunpack.c.2.s8 %v977_v21  ;;  %v1064_v17 = vpack.c.b8 %v1063_v1, %v1063_v1  ;;  %vm1129_vm2 = vnez %v1082_v3 }
  0x9e   : > { %v1088_v21 = vpack.c.b8 %v1087_v6, %v1087_v6  ;;  %v4463_v30 = vsel %vm1129_vm2, 16843009, %v7145_v20  ;;  %v4472_v33 = vsel %vm4448_vm1, 16843009, %v7145_v20  ;;  %v1090_v44 = vpack.c.b8 %v1089_v22, %v1089_v22 }
  0x9f   : > { %v1084_v4 = vpack.c.b8 %v1083_v49, %v1083_v49  ;;  %v1085_v5 = vpack.c.b16 %v1022_v51, %v1021_v50  ;;  %vm4478_vm5 = vnez %v1064_v17  ;;  %v1065_v1 = vpack.c.b16 %v1002_v43, %v1001_v39  ;;  %v952_v49 = vld [vmem:[%s4159_s14 + $0x78] sm:$0xff] }
  0xa0   : > { %vm1132_vm6 = vnez %v1088_v21  ;;  %v4500_v63 = vsel %vm4478_vm5, 16843009, %v7145_v20  ;;  %vm1133_vm9 = vnez %v1090_v44  ;;  %v1032_v3 = vunpack.c.3.s8 %v4424_v62 }
  0xa1   : > { %667 = vperm.xlu1 %3695, %v508_v56   ;;  %662 = vperm.xlu0 %3694, %v507_v57   ;;  %v1180_v56 = vunpack.c.1.s8 %v4391_v36  ;;  %v1181_v57 = vunpack.c.0.s8 %v4399_v42  ;;  %vm1130_vm3 = vnez %v1084_v4  ;;  %v1086_v18 = vpack.c.b8 %v1085_v5, %v1085_v5 }
  0xa2   : > { %v4466_v31 = vsel %vm1130_vm3, 16843009, %v7145_v20  ;;  %v4503_v0 = vsel %vm1132_vm6, 16843009, %v7145_v20  ;;  %v4515_v12 = vsel %vm965_vm7, 16843009, %v7145_v20  ;;  %v1066_v17 = vpack.c.b8 %v1065_v1, %v1065_v1 }
  0xa3   : > { %vm4474_vm4 = vnez %v1086_v18  ;;  %v4518_v61 = vsel %vm966_vm8, 16843009, %v7145_v20  ;;  %v4522_v13 = vsel %vm1133_vm9, 16843009, %v7145_v20  ;;  %v4528_v18 = vsel %vm1135_vm11, 16843009, %v7145_v20 }
  0xa4   : > { %v4495_v60 = vsel %vm4474_vm4, 16843009, %v7145_v20  ;;  %v1095_v21 = vpack.c.b16 %v1032_v3, %v1031_v2  ;;  %vm960_vm13 = vnez %v944_v8  ;;  %v1033_v22 = vunpack.c.0.s8 %v4515_v12 }
  0xa5   : > { %v1034_v23 = vunpack.c.0.s8 %v4518_v61  ;;  %v1006_v39 = vunpack.c.2.s8 %v4457_v24  ;;  %v1007_v43 = vunpack.c.3.s8 %v4454_v19  ;;  %v1008_v44 = vunpack.c.3.s8 %v4457_v24 }
  0xa6   : > { %v975_v48 = vsel %vm959_vm12, 16843009, %v7145_v20  ;;  %v976_v52 = vsel %vm960_vm13, 16843009, %v7145_v20  ;;  %vm4546_vm14 = vnez %v1066_v17  ;;  %v1096_v24 = vpack.c.b8 %v1095_v21, %v1095_v21  ;;  %v951_v21 = vld [vmem:[%s4159_s14 + $0x70] sm:$0xff] }
  0xa7   : > { %v1097_v8 = vpack.c.b16 %v1034_v23, %v1033_v22  ;;  %v1069_v62 = vpack.c.b16 %v1006_v39, %v1005_v38  ;;  %v1071_v9 = vpack.c.b16 %v1008_v44, %v1007_v43  ;;  %v1009_v6 = vunpack.c.0.s8 %v975_v48 }
  0xa8   : > { %v1010_v5 = vunpack.c.0.s8 %v976_v52  ;;  %v1011_v1 = vunpack.c.1.s8 %v975_v48  ;;  %v1012_v4 = vunpack.c.1.s8 %v976_v52  ;;  %v1013_v2 = vunpack.c.2.s8 %v975_v48 }
  0xa9   : > { %v1014_v54 = vunpack.c.2.s8 %v976_v52  ;;  %v1035_v3 = vunpack.c.1.s8 %v4515_v12  ;;  %v1036_v17 = vunpack.c.1.s8 %v4518_v61  ;;  %v1037_v7 = vunpack.c.2.s8 %v4515_v12 }
  0xaa   : > { %v1038_v53 = vunpack.c.2.s8 %v4518_v61  ;;  %v4560_v23 = vsel %vm4546_vm14, 16843009, %v7145_v20  ;;  %vm1136_vm15 = vnez %v1096_v24  ;;  %v1098_v29 = vpack.c.b8 %v1097_v8, %v1097_v8 }
  0xab   : > { %v1070_v38 = vpack.c.b8 %v1069_v62, %v1069_v62  ;;  %v1072_v39 = vpack.c.b8 %v1071_v9, %v1071_v9  ;;  %v1073_v43 = vpack.c.b16 %v1010_v5, %v1009_v6  ;;  %vm967_vm0 = vnez %v951_v21 }
  0xac   : > { %vm968_vm1 = vnez %v952_v49  ;;  %v1075_v44 = vpack.c.b16 %v1012_v4, %v1011_v1  ;;  %v1077_v47 = vpack.c.b16 %v1014_v54, %v1013_v2  ;;  %v1099_v10 = vpack.c.b16 %v1036_v17, %v1035_v3 }
  0xad   : > { %v1101_v51 = vpack.c.b16 %v1038_v53, %v1037_v7  ;;  %v1015_v50 = vunpack.c.3.s8 %v975_v48  ;;  %v1016_v45 = vunpack.c.3.s8 %v976_v52  ;;  %v4564_v19 = vsel %vm1136_vm15, 16843009, %v7145_v20 }
  0xae   : > { %v1039_v24 = vunpack.c.3.s8 %v4515_v12  ;;  %v1040_v46 = vunpack.c.3.s8 %v4518_v61  ;;  %vm4568_vm2 = vnez %v1098_v29  ;;  %vm4572_vm3 = vnez %v1068_v37 }
  0xaf   : > { %v4577_v53 = vsel %vm967_vm0, 16843009, %v7145_v20  ;;  %v4580_v54 = vsel %vm968_vm1, 16843009, %v7145_v20  ;;  %vm4582_vm4 = vnez %v1070_v38  ;;  %vm4586_vm5 = vnez %v1072_v39 }
  0xb0   : > { %v1074_v6 = vpack.c.b8 %v1073_v43, %v1073_v43  ;;  %v1076_v12 = vpack.c.b8 %v1075_v44, %v1075_v44  ;;  %v1100_v61 = vpack.c.b8 %v1099_v10, %v1099_v10  ;;  %v1102_v62 = vpack.c.b8 %v1101_v51, %v1101_v51 }
  0xb1   : > { %v1078_v48 = vpack.c.b8 %v1077_v47, %v1077_v47  ;;  %v1079_v52 = vpack.c.b16 %v1016_v45, %v1015_v50  ;;  %v1103_v2 = vpack.c.b16 %v1040_v46, %v1039_v24  ;;  %v1041_v3 = vunpack.c.0.s8 %v4577_v53 }
  0xb2   : > { %v1042_v7 = vunpack.c.0.s8 %v4580_v54  ;;  %v4598_v21 = vsel %vm4568_vm2, 16843009, %v7145_v20  ;;  %v4603_v45 = vsel %vm4572_vm3, 16843009, %v7145_v20  ;;  %v4608_v50 = vsel %vm4582_vm4, 16843009, %v7145_v20 }
  0xb3   : > { %v4613_v51 = vsel %vm4586_vm5, 16843009, %v7145_v20  ;;  %vm4615_vm6 = vnez %v1074_v6  ;;  %vm4619_vm7 = vnez %v1076_v12  ;;  %vm4623_vm8 = vnez %v1100_v61 }
  0xb4   : > { %vm4627_vm9 = vnez %v1102_v62  ;;  %vm4631_vm10 = vnez %v1078_v48  ;;  %v1080_v39 = vpack.c.b8 %v1079_v52, %v1079_v52  ;;  %v1104_v43 = vpack.c.b8 %v1103_v2, %v1103_v2 }
  0xb5   : > { %v1105_v44 = vpack.c.b16 %v1042_v7, %v1041_v3  ;;  %v1043_v24 = vunpack.c.1.s8 %v4577_v53  ;;  %v1044_v46 = vunpack.c.1.s8 %v4580_v54  ;;  %v4646_v61 = vsel %vm4615_vm6, 16843009, %v7145_v20 }
  0xb6   : > { %7568 = vst [vmem:[#allocation5_spill] sm:$0xff] %v4646_v61  ;;  %v4651_v62 = vsel %vm4619_vm7, 16843009, %v7145_v20  ;;  %v4656_v48 = vsel %vm4623_vm8, 16843009, %v7145_v20  ;;  %vm4671_vm11 = vcmp.ne.s32.totalorder %v1177_v40, 0  ;;  %vm1140_vm13 = vnez %v1104_v43 }
  0xb7   : > { %7569 = vst [vmem:[#allocation6_spill] sm:$0xff] %v4651_v62  ;;  %v4661_v52 = vsel %vm4627_vm9, 16843009, %v7145_v20  ;;  %v4667_v3 = vsel %vm4631_vm10, 16843009, %v7145_v20  ;;  %v7571_v7 = vmov 0  ;;  %v1106_v47 = vpack.c.b8 %v1105_v44, %v1105_v44 }
  0xb8   : > { %7570 = vst [vmem:[#allocation7_spill] sm:$0xff] %v4667_v3  ;;  %v7572_v7 = vsel %vm4671_vm11, 4294967295, %v7571_v7  ;;  %vm4677_vm12 = vcmp.ne.s32.totalorder %v1178_v41, 0  ;;  %v7574_v10 = vmov 0  ;;  %v1107_v29 = vpack.c.b16 %v1044_v46, %v1043_v24 }
  0xb9   : > { %7573 = vst [vmem:[#allocation8_spill] sm:$0xff] %v7572_v7  ;;  %v7575_v10 = vsel %vm4677_vm12, 4294967295, %v7574_v10  ;;  %vm1128_vm14 = vnez %v1080_v39  ;;  %v4692_v44 = vsel %vm1140_vm13, 16843009, %v7145_v20  ;;  %vm4699_vm15 = vcmp.ne.s32.totalorder %v1179_v55, 0 }
  0xba   : > { %7576 = vst [vmem:[#allocation9_spill] sm:$0xff] %v7575_v10  ;;  %7577 = vst [vmem:[#allocation10_spill] sm:$0xff] %v4692_v44  ;;  %v4695_v24 = vsel %vm1128_vm14, 16843009, %v7145_v20  ;;  %v7580_v27 = vsel %vm4699_vm15, 4294967295, %v7579_v27  ;;  %vm4705_vm0 = vcmp.ne.s32.totalorder %v1180_v56, 0  ;;  %vm4709_vm1 = vnez %v1106_v47 }
  0xbb   : > { %7578 = vst [vmem:[#allocation11_spill] sm:$0xff] %v4695_v24  ;;  %7581 = vst [vmem:[#allocation12_spill] sm:$0xff] %v7580_v27  ;;  %v7582_v6 = vmov 0  ;;  %v1108_v2 = vpack.c.b8 %v1107_v29, %v1107_v29  ;;  %v1045_v38 = vunpack.c.2.s8 %v4577_v53  ;;  %v1046_v37 = vunpack.c.2.s8 %v4580_v54 }
  0xbc   : > { %v7583_v6 = vsel %vm4705_vm0, 4294967295, %v7582_v6  ;;  %vm4721_vm2 = vcmp.ne.s32.totalorder %v1181_v57, 0  ;;  %v7587_v56 = vmov 0  ;;  %vm4727_vm3 = vcmp.ne.s32.totalorder %v1182_v59, 0 }
  0xbd   : > { %7584 = vst [vmem:[#allocation13_spill] sm:$0xff] %v7583_v6  ;;  %v7588_v56 = vsel %vm4721_vm2, 4294967295, %v7587_v56  ;;  %v7590_v47 = vmov 0  ;;  %v4738_v42 = vsel %vm4709_vm1, 16843009, %v7145_v20  ;;  %vm4740_vm6 = vnez %v1108_v2 }
  0xbe   : > { %7589 = vst [vmem:[#allocation14_spill] sm:$0xff] %v7588_v56  ;;  %v7591_v47 = vsel %vm4727_vm3, 4294967295, %v7590_v47  ;;  %7593 = vst [vmem:[#allocation16_spill] sm:$0xff] %v4738_v42  ;;  %v1047_v12 = vunpack.c.3.s8 %v4577_v53  ;;  %vm4778_vm13 = vcmp.ne.s32.totalorder %v1183_v11, 0  ;;  %v7633_v56 = vmov 0 }
  0xbf   : > { %7592 = vst [vmem:[#allocation15_spill] sm:$0xff] %v7591_v47  ;;  %v7628_v47 = vunpack.c.0.s8 %v4472_v33  ;;  %v7639_v7 = vunpack.c.0.s8 %v4500_v63  ;;  %v7640_v6 = vmov 0  ;;  %v7644_v10 = vmov 0 }
  0xc0   : > { %v7709_v62 = vmov 0 }
  0xe4   : > { %v523_v46 = vpop.permute.xlu1 %522  ;;  %v513_v40 = vpop.permute.xlu0 %512 }
  0xe5   : > { %v685_v55 = vadd.f32 %v4386_v34, %v523_v46  ;;  %v686_v39 = vadd.f32 %v4388_v35, %v523_v46  ;;  %v681_v43 = vadd.f32 %v4386_v34, %v513_v40  ;;  %v682_v36 = vadd.f32 %v4388_v35, %v513_v40 }
  0xe6   : > { %v1109_v46 = vpack.c.b16 %v1046_v37, %v1045_v38 }
  0xe7   : > { %vm745_vm4 = vcmp.gt.f32.partialorder %v681_v43, 0.0  ;;  %vm746_vm5 = vcmp.gt.f32.partialorder %v682_v36, 0.0  ;;  %v809_v57 = vmul.f32 0.2, %v681_v43  ;;  %v810_v49 = vmul.f32 0.2, %v682_v36 }
  0xe8   : > { %v528_v9 = vpop.permute.xlu1 %527  ;;  %v518_v17 = vpop.permute.xlu0 %517  ;;  %vm749_vm7 = vcmp.gt.f32.partialorder %v685_v55, 0.0  ;;  %vm750_vm8 = vcmp.gt.f32.partialorder %v686_v39, 0.0  ;;  %v813_v4 = vmul.f32 0.2, %v685_v55  ;;  %v814_v1 = vmul.f32 0.2, %v686_v39 }
  0xe9   : > { %v683_v40 = vadd.f32 %v4386_v34, %v518_v17  ;;  %v684_v29 = vadd.f32 %v4388_v35, %v518_v17  ;;  %v873_v8 = vsel %vm745_vm4, %v681_v43, %v809_v57  ;;  %v874_v5 = vsel %vm746_vm5, %v682_v36, %v810_v49 }
  0xea   : > { %v4749_v41 = vsel %vm4671_vm11, %v873_v8, -1e+30  ;;  %v4753_v2 = vsel %vm4677_vm12, %v874_v5, -1e+30  ;;  %v1048_v49 = vunpack.c.3.s8 %v4580_v54  ;;  %v687_v36 = vadd.f32 %v4386_v34, %v528_v9 }
  0xeb   : > { %7596 = vst [vmem:[#allocation17_spill] sm:$0xff] %v4749_v41  ;;  %7597 = vst [vmem:[#allocation18_spill] sm:$0xff] %v4753_v2  ;;  %vm747_vm9 = vcmp.gt.f32.partialorder %v683_v40, 0.0  ;;  %vm748_vm10 = vcmp.gt.f32.partialorder %v684_v29, 0.0  ;;  %v1401_v17 = vmax.f32 %v4749_v41, %v4753_v2  ;;  %v811_v38 = vmul.f32 0.2, %v683_v40 }
  0xec   : > { %v538_v53 = vpop.permute.xlu1 %537  ;;  %v533_v37 = vpop.permute.xlu0 %532  ;;  %v812_v43 = vmul.f32 0.2, %v684_v29  ;;  %v4763_v5 = vsel %vm4740_vm6, 16843009, %v7145_v20  ;;  %v1110_v57 = vpack.c.b8 %v1109_v46, %v1109_v46  ;;  %v877_v28 = vsel %vm749_vm7, %v685_v55, %v813_v4 }
  0xed   : > { %7598 = vst [vmem:[#allocation19_spill] sm:$0xff] %v4763_v5  ;;  %1402 = vmax.xlane.f32.xlu0 %v1401_v17  ;;  %v875_v22 = vsel %vm747_vm9, %v683_v40, %v811_v38  ;;  %v878_v26 = vsel %vm750_vm8, %v686_v39, %v814_v1  ;;  %v688_v25 = vadd.f32 %v4388_v35, %v528_v9  ;;  %v7601_v46 = vmov 0 }
  0xee   : > { %v876_v32 = vsel %vm748_vm10, %v684_v29, %v812_v43  ;;  %v4770_v54 = vsel %vm4699_vm15, %v875_v22, -1e+30  ;;  %v7602_v46 = vsel %vm4778_vm13, 4294967295, %v7601_v46  ;;  %v7604_v4 = vunpack.c.1.s8 %v4413_v58 }
  0xef   : > { %7599 = vst [vmem:[#allocation20_spill] sm:$0xff] %v4770_v54  ;;  %v4774_v8 = vsel %vm4705_vm0, %v876_v32, -1e+30  ;;  %7603 = vst [vmem:[#allocation22_spill] sm:$0xff] %v7602_v46  ;;  %v7605_v1 = vmov 0  ;;  %v1111_v29 = vpack.c.b16 %v1048_v49, %v1047_v12  ;;  %v689_v40 = vadd.f32 %v4386_v34, %v533_v37 }
  0xf0   : > { %7600 = vst [vmem:[#allocation21_spill] sm:$0xff] %v4774_v8  ;;  %vm4784_vm14 = vcmp.ne.s32.totalorder %v7604_v4, 0  ;;  %v548_v22 = vpop.permute.xlu1 %547  ;;  %v543_v39 = vpop.permute.xlu0 %542  ;;  %v1404_v32 = vmax.f32 %v4770_v54, %v4774_v8  ;;  %v4796_v58 = vsel %vm4721_vm2, %v877_v28, -1e+30  ;;  %v4800_v59 = vsel %vm4727_vm3, %v878_v26, -1e+30 }
  0xf1   : > { %v7606_v1 = vsel %vm4784_vm14, 4294967295, %v7605_v1  ;;  %7608 = vst [vmem:[#allocation24_spill] sm:$0xff] %v4796_v58  ;;  %7609 = vst [vmem:[#allocation25_spill] sm:$0xff] %v4800_v59  ;;  %vm4802_vm1 = vnez %v1110_v57  ;;  %v691_v38 = vadd.f32 %v4386_v34, %v538_v53  ;;  %v690_v43 = vadd.f32 %v4388_v35, %v533_v37 }
  0xf2   : > { %7607 = vst [vmem:[#allocation23_spill] sm:$0xff] %v7606_v1  ;;  %1405 = vmax.xlane.f32.xlu1 %v1404_v32  ;;  %v815_v12 = vmul.f32 0.2, %v687_v36  ;;  %v7612_v49 = vunpack.c.0.s8 %v4441_v14  ;;  %v7613_v4 = vmov 0  ;;  %v7616_v28 = vunpack.c.1.s8 %v4441_v14 }
  0xf3   : > { %v7617_v26 = vmov 0  ;;  %v692_v11 = vadd.f32 %v4388_v35, %v538_v53  ;;  %v693_v37 = vadd.f32 %v4386_v34, %v543_v39  ;;  %v816_v32 = vmul.f32 0.2, %v688_v25 }
  0xf4   : > { %vm4810_vm4 = vcmp.ne.s32.totalorder %v7612_v49, 0  ;;  %vm4816_vm5 = vcmp.ne.s32.totalorder %v7616_v28, 0  ;;  %v7620_v55 = vunpack.c.0.s8 %v4446_v15  ;;  %v7621_v49 = vmov 0  ;;  %v558_v28 = vpop.permute.xlu1 %557  ;;  %v553_v9 = vpop.permute.xlu0 %552 }
  0xf5   : > { %v7614_v4 = vsel %vm4810_vm4, 4294967295, %v7613_v4  ;;  %v7618_v26 = vsel %vm4816_vm5, 4294967295, %v7617_v26  ;;  %v694_v14 = vadd.f32 %v4388_v35, %v543_v39  ;;  %v1407_v20 = vmax.f32 %v4796_v58, %v4800_v59 }
  0xf6   : > { %7615 = vst [vmem:[#allocation26_spill] sm:$0xff] %v7614_v4  ;;  %7619 = vst [vmem:[#allocation27_spill] sm:$0xff] %v7618_v26  ;;  %vm4825_vm7 = vcmp.ne.s32.totalorder %v7620_v55, 0  ;;  %v7624_v53 = vunpack.c.1.s8 %v4446_v15  ;;  %v7625_v57 = vmov 0  ;;  %vm4840_vm10 = vcmp.ne.s32.totalorder %v7628_v47, 0 }
  0xf7   : > { %v7622_v49 = vsel %vm4825_vm7, 4294967295, %v7621_v49  ;;  %v7629_v55 = vmov 0  ;;  %v7632_v39 = vunpack.c.1.s8 %v4472_v33  ;;  %v7636_v59 = vmov 0   ;;  %1408 = vmax.xlane.f32.xlu1 %v1407_v20 }
  0xf8   : > { %7623 = vst [vmem:[#allocation28_spill] sm:$0xff] %v7622_v49  ;;  %vm4834_vm9 = vcmp.ne.s32.totalorder %v7624_v53, 0  ;;  %v7630_v55 = vsel %vm4840_vm10, 4294967295, %v7629_v55  ;;  %v4853_v15 = vsel %vm4802_vm1, 16843009, %v7636_v59  ;;  %v695_v53 = vadd.f32 %v4386_v34, %v548_v22  ;;  %v563_v8 = vpop.permute.xlu0 %562 }
  0xf9   : > { %v7626_v57 = vsel %vm4834_vm9, 4294967295, %v7625_v57  ;;  %7631 = vst [vmem:[#allocation30_spill] sm:$0xff] %v7630_v55  ;;  %vm4846_vm6 = vcmp.ne.s32.totalorder %v7632_v39, 0  ;;  %7637 = vst [vmem:[#allocation32_spill] sm:$0xff] %v4853_v15  ;;  %v696_v58 = vadd.f32 %v4388_v35, %v548_v22  ;;  %v1112_v47 = vpack.c.b8 %v1111_v29, %v1111_v29 }
  0xfa   : > { %7627 = vst [vmem:[#allocation29_spill] sm:$0xff] %v7626_v57  ;;  %v7634_v56 = vsel %vm4846_vm6, 4294967295, %v7633_v56  ;;  %vm7638_vm3 = vcmp.gt.f32.partialorder %v687_v36, 0.0  ;;  %v817_v33 = vmul.f32 0.2, %v689_v40  ;;  %vm4860_vm15 = vcmp.ne.s32.totalorder %v7639_v7, 0 }
  0xfb   : > { %7635 = vst [vmem:[#allocation31_spill] sm:$0xff] %v7634_v56  ;;  %v879_v27 = vsel %vm7638_vm3, %v687_v36, %v815_v12  ;;  %v818_v39 = vmul.f32 0.2, %v690_v43  ;;  %v7641_v6 = vsel %vm4860_vm15, 4294967295, %v7640_v6  ;;  %v7643_v17 = vunpack.c.1.s8 %v4500_v63  ;;  %v568_v12 = vpop.permute.xlu1 %567 }
  0xfc   : > { %7642 = vst [vmem:[#allocation33_spill] sm:$0xff] %v7641_v6  ;;  %vm7647_vm8 = vcmp.gt.f32.partialorder %v688_v25, 0.0  ;;  %v819_v20 = vmul.f32 0.2, %v691_v38  ;;  %v820_v29 = vmul.f32 0.2, %v692_v11  ;;  %vm4873_vm12 = vnez %v1112_v47  ;;  %v573_v63 = vpop.permute.xlu0 %572 }
  0xfd   : > { %vm4866_vm1 = vcmp.ne.s32.totalorder %v7643_v17, 0  ;;  %v880_v22 = vsel %vm7647_vm8, %v688_v25, %v816_v32  ;;  %v821_v36 = vmul.f32 0.2, %v693_v37  ;;  %vm755_vm3 = vcmp.gt.f32.partialorder %v691_v38, 0.0 }
  0xfe   : > { %v7645_v10 = vsel %vm4866_vm1, 4294967295, %v7644_v10  ;;  %vm756_vm2 = vcmp.gt.f32.partialorder %v692_v11, 0.0  ;;  %vm757_vm11 = vcmp.gt.f32.partialorder %v693_v37, 0.0  ;;  %v822_v7 = vmul.f32 0.2, %v694_v14 }
  0xff   : > { %7646 = vst [vmem:[#allocation34_spill] sm:$0xff] %v7645_v10  ;;  %vm758_vm0 = vcmp.gt.f32.partialorder %v694_v14, 0.0  ;;  %v4879_v25 = vsel %vm4778_vm13, %v879_v27, -1e+30  ;;  %v4883_v32 = vsel %vm4784_vm14, %v880_v22, -1e+30  ;;  %v883_v24 = vsel %vm755_vm3, %v691_v38, %v819_v20  ;;  %v578_v47 = vpop.permute.xlu1 %577 }
 0x100   : > { %7650 = vst [vmem:[#allocation35_spill] sm:$0xff] %v4879_v25  ;;  %7651 = vst [vmem:[#allocation36_spill] sm:$0xff] %v4883_v32  ;;  %vm7652_vm8 = vcmp.gt.f32.partialorder %v689_v40, 0.0  ;;  %vm7653_vm1 = vcmp.gt.f32.partialorder %v690_v43, 0.0  ;;  %v884_v54 = vsel %vm756_vm2, %v692_v11, %v820_v29  ;;  %v885_v5 = vsel %vm757_vm11, %v693_v37, %v821_v36 }
 0x101   : > { %v881_v2 = vsel %vm7652_vm8, %v689_v40, %v817_v33  ;;  %v882_v41 = vsel %vm7653_vm1, %v690_v43, %v818_v39  ;;  %vm759_vm15 = vcmp.gt.f32.partialorder %v695_v53, 0.0  ;;  %v886_v15 = vsel %vm758_vm0, %v694_v14, %v822_v7 }
 0x102   : > { %vm760_vm6 = vcmp.gt.f32.partialorder %v696_v58, 0.0  ;;  %v823_v3 = vmul.f32 0.2, %v695_v53  ;;  %v824_v46 = vmul.f32 0.2, %v696_v58  ;;  %v4903_v38 = vadd.f32 %v4386_v34, %v558_v28 }
 0x103   : > { %v4891_v22 = vsel %vm4810_vm4, %v881_v2, -1e+30  ;;  %v4895_v40 = vsel %vm4816_vm5, %v882_v41, -1e+30  ;;  %v4900_v11 = vsel %vm4873_vm12, 16843009, %v7636_v59  ;;  %v697_v2 = vadd.f32 %v4386_v34, %v553_v9 }
 0x104   : > { %7654 = vst [vmem:[#allocation37_spill] sm:$0xff] %v4891_v22  ;;  %7655 = vst [vmem:[#allocation38_spill] sm:$0xff] %v4895_v40  ;;  %v4907_v43 = vsel %vm4825_vm7, %v883_v24, -1e+30  ;;  %v887_v37 = vsel %vm759_vm15, %v695_v53, %v823_v3  ;;  %v888_v14 = vsel %vm760_vm6, %v696_v58, %v824_v46  ;;  %v4912_v41 = vsel %vm4834_vm9, %v884_v54, -1e+30  ;;  %v588_v46 = vpop.permute.xlu1 %587  ;;  %v583_v58 = vpop.permute.xlu0 %582 }
 0x105   : > { %7656 = vst [vmem:[#allocation39_spill] sm:$0xff] %v4900_v11  ;;  %7657 = vst [vmem:[#allocation40_spill] sm:$0xff] %v4907_v43  ;;  %v4916_v33 = vsel %vm4840_vm10, %v885_v5, -1e+30  ;;  %vm7660_vm11 = vnez %v7634_v56  ;;  %v4923_v39 = vadd.f32 %v4388_v35, %v558_v28  ;;  %v698_v3 = vadd.f32 %v4388_v35, %v553_v9 }
 0x106   : > { %7658 = vst [vmem:[#allocation41_spill] sm:$0xff] %v4912_v41  ;;  %7659 = vst [vmem:[#allocation42_spill] sm:$0xff] %v4916_v33  ;;  %v4920_v59 = vsel %vm7660_vm11, %v886_v15, -1e+30  ;;  %v4927_v24 = vadd.f32 %v4386_v34, %v568_v12  ;;  %v7662_v54 = vunpack.c.0.s8 %v4463_v30  ;;  %v7663_v53 = vmov 0 }
 0x107   : > { %7661 = vst [vmem:[#allocation43_spill] sm:$0xff] %v4920_v59  ;;  %v7666_v5 = vunpack.c.1.s8 %v4463_v30  ;;  %v7667_v15 = vmov 0  ;;  %v4944_v28 = vadd.f32 %v4388_v35, %v568_v12  ;;  %v4947_v20 = vadd.f32 %v4386_v34, %v563_v8 }
 0x108   : > { %vm4931_vm12 = vcmp.ne.s32.totalorder %v7662_v54, 0  ;;  %v7670_v29 = vunpack.c.0.s8 %v4466_v31  ;;  %v7671_v36 = vmov 0  ;;  %v7674_v30 = vunpack.c.1.s8 %v4466_v31  ;;  %v593_v9 = vpop.permute.xlu0 %592 }
 0x109   : > { %v7664_v53 = vsel %vm4931_vm12, 4294967295, %v7663_v53  ;;  %vm4937_vm15 = vcmp.ne.s32.totalorder %v7666_v5, 0  ;;  %v7675_v7 = vmov 0  ;;  %vm7678_vm6 = vnez %v7641_v6 }
 0x10a   : > { %7665 = vst [vmem:[#allocation44_spill] sm:$0xff] %v7664_v53  ;;  %v7668_v15 = vsel %vm4937_vm15, 4294967295, %v7667_v15  ;;  %vm4951_vm0 = vcmp.ne.s32.totalorder %v7670_v29, 0  ;;  %vm4957_vm2 = vcmp.ne.s32.totalorder %v7674_v30, 0  ;;  %v4963_v17 = vsel %vm7678_vm6, %v887_v37, -1e+30 }
 0x10b   : > { %7669 = vst [vmem:[#allocation45_spill] sm:$0xff] %v7668_v15  ;;  %v7672_v36 = vsel %vm4951_vm0, 4294967295, %v7671_v36  ;;  %v7676_v7 = vsel %vm4957_vm2, 4294967295, %v7675_v7  ;;  %7679 = vst [vmem:[#allocation48_spill] sm:$0xff] %v4963_v17  ;;  %vm7680_vm1 = vnez %v7645_v10  ;;  %v4970_v54 = vadd.f32 %v4388_v35, %v563_v8  ;;  %v598_v8 = vpop.permute.xlu1 %597 }
 0x10c   : > { %7673 = vst [vmem:[#allocation46_spill] sm:$0xff] %v7672_v36  ;;  %7677 = vst [vmem:[#allocation47_spill] sm:$0xff] %v7676_v7  ;;  %v4967_v12 = vsel %vm7680_vm1, %v888_v14, -1e+30  ;;  %v4973_v5 = vadd.f32 %v4386_v34, %v578_v47  ;;  %v4980_v30 = vadd.f32 %v4388_v35, %v578_v47  ;;  %v4983_v37 = vadd.f32 %v4386_v34, %v573_v63  ;;  %v603_v11 = vpop.permute.xlu0 %602 }
 0x10d   : > { %7681 = vst [vmem:[#allocation49_spill] sm:$0xff] %v4967_v12  ;;  %v4986_v14 = vadd.f32 %v4388_v35, %v573_v63  ;;  %v825_v31 = vmul.f32 0.2, %v697_v2  ;;  %v826_v6 = vmul.f32 0.2, %v698_v3  ;;  %v715_v29 = vadd.f32 %v4386_v34, %v598_v8 }
 0x10e   : > { %7682 = vst [vmem:[#allocation50_spill] sm:$0xff] %v4973_v5  ;;  %7683 = vst [vmem:[#allocation51_spill] sm:$0xff] %v4980_v30  ;;  %v716_v47 = vadd.f32 %v4388_v35, %v598_v8  ;;  %v713_v10 = vadd.f32 %v4386_v34, %v593_v9  ;;  %v714_v56 = vadd.f32 %v4388_v35, %v593_v9  ;;  %v7690_v26 = vunpack.c.0.s8 %v4495_v60 }
 0x10f   : > { %7684 = vst [vmem:[#allocation52_spill] sm:$0xff] %v4983_v37  ;;  %7685 = vst [vmem:[#allocation53_spill] sm:$0xff] %v4986_v14  ;;  %v4995_v63 = vadd.f32 %v4386_v34, %v588_v46  ;;  %v4998_v55 = vadd.f32 %v4388_v35, %v588_v46  ;;  %v5001_v49 = vadd.f32 %v4386_v34, %v583_v58  ;;  %v7691_v9 = vmov 0  ;;  %v608_v1 = vpop.permute.xlu1 %607 }
 0x110   : > { %v5004_v27 = vadd.f32 %v4388_v35, %v583_v58  ;;  %v841_v57 = vmul.f32 0.2, %v713_v10  ;;  %v842_v8 = vmul.f32 0.2, %v714_v56  ;;  %vm5008_vm6 = vcmp.ne.s32.totalorder %v7690_v26, 0 }
 0x111   : > { %7686 = vst [vmem:[#allocation54_spill] sm:$0xff] %v4995_v63  ;;  %7687 = vst [vmem:[#allocation55_spill] sm:$0xff] %v4998_v55  ;;  %v7692_v9 = vsel %vm5008_vm6, 4294967295, %v7691_v9  ;;  %v7694_v4 = vunpack.c.1.s8 %v4495_v60  ;;  %v7695_v46 = vmov 0  ;;  %vm779_vm11 = vcmp.gt.f32.partialorder %v715_v29, 0.0 }
 0x112   : > { %7688 = vst [vmem:[#allocation56_spill] sm:$0xff] %v5001_v49  ;;  %7689 = vst [vmem:[#allocation57_spill] sm:$0xff] %v5004_v27  ;;  %vm780_vm10 = vcmp.gt.f32.partialorder %v716_v47, 0.0  ;;  %v843_v58 = vmul.f32 0.2, %v715_v29  ;;  %v7698_v63 = vunpack.c.0.s8 %v4503_v0  ;;  %v7699_v27 = vmov 0 }
 0x113   : > { %7693 = vst [vmem:[#allocation58_spill] sm:$0xff] %v7692_v9  ;;  %vm5014_vm1 = vcmp.ne.s32.totalorder %v7694_v4, 0  ;;  %v844_v55 = vmul.f32 0.2, %v716_v47  ;;  %v7702_v26 = vunpack.c.1.s8 %v4503_v0  ;;  %v7703_v60 = vmov 0 }
 0x114   : > { %v7696_v46 = vsel %vm5014_vm1, 4294967295, %v7695_v46  ;;  %vm5020_vm3 = vcmp.ne.s32.totalorder %v7698_v63, 0  ;;  %v717_v4 = vadd.f32 %v4386_v34, %v603_v11  ;;  %v718_v49 = vadd.f32 %v4388_v35, %v603_v11 }
 0x115   : > { %7697 = vst [vmem:[#allocation59_spill] sm:$0xff] %v7696_v46  ;;  %v7700_v27 = vsel %vm5020_vm3, 4294967295, %v7699_v27  ;;  %vm5026_vm8 = vcmp.ne.s32.totalorder %v7702_v26, 0  ;;  %vm7706_vm7 = vcmp.gt.f32.partialorder %v697_v2, 0.0  ;;  %vm7707_vm9 = vcmp.gt.f32.partialorder %v698_v3, 0.0 }
 0x116   : > { %7701 = vst [vmem:[#allocation60_spill] sm:$0xff] %v7700_v27  ;;  %v7704_v60 = vsel %vm5026_vm8, 4294967295, %v7703_v60  ;;  %v5033_v30 = vsel %vm7706_vm7, %v697_v2, %v825_v31  ;;  %v5036_v5 = vsel %vm7707_vm9, %v698_v3, %v826_v6  ;;  %v7708_v63 = vunpack.c.0.s8 %v4560_v23 }
 0x117   : > { %7705 = vst [vmem:[#allocation61_spill] sm:$0xff] %v7704_v60  ;;  %v7712_v0 = vunpack.c.1.s8 %v4560_v23  ;;  %v7713_v26 = vmov 0  ;;  %vm7716_vm13 = vcmp.gt.f32.partialorder %v713_v10, 0.0  ;;  %vm7717_vm14 = vcmp.gt.f32.partialorder %v714_v56, 0.0 }
 0x118   : > { %vm5040_vm5 = vcmp.ne.s32.totalorder %v7708_v63, 0  ;;  %v905_v11 = vsel %vm7716_vm13, %v713_v10, %v841_v57  ;;  %v906_v2 = vsel %vm7717_vm14, %v714_v56, %v842_v8  ;;  %v907_v31 = vsel %vm779_vm11, %v715_v29, %v843_v58  ;;  %v618_v10 = vpop.permute.xlu1 %617  ;;  %v613_v56 = vpop.permute.xlu0 %612 }
 0x119   : > { %v7710_v62 = vsel %vm5040_vm5, 4294967295, %v7709_v62  ;;  %vm5046_vm4 = vcmp.ne.s32.totalorder %v7712_v0, 0  ;;  %v908_v42 = vsel %vm780_vm10, %v716_v47, %v844_v55  ;;  %v719_v6 = vadd.f32 %v4386_v34, %v608_v1 }
 0x11a   : > { %7711 = vst [vmem:[#allocation62_spill] sm:$0xff] %v7710_v62  ;;  %v7714_v26 = vsel %vm5046_vm4, 4294967295, %v7713_v26  ;;  %v720_v3 = vadd.f32 %v4388_v35, %v608_v1  ;;  %v5058_v23 = vsel %vm4931_vm12, %v905_v11, -1e+30  ;;  %v5062_v63 = vsel %vm4937_vm15, %v906_v2, -1e+30 }
 0x11b   : > { %7715 = vst [vmem:[#allocation63_spill] sm:$0xff] %v7714_v26  ;;  %7718 = vst [vmem:[#allocation64_spill] sm:$0xff] %v5058_v23  ;;  %v1449_v57 = vmax.f32 %v5058_v23, %v5062_v63  ;;  %v5068_v55 = vsel %vm4951_vm0, %v907_v31, -1e+30  ;;  %v5072_v1 = vsel %vm4957_vm2, %v908_v42, -1e+30  ;;  %v7720_v29 = vunpack.c.0.s8 %v4522_v13 }
 0x11c   : > { %7719 = vst [vmem:[#allocation65_spill] sm:$0xff] %v5062_v63  ;;  %v7721_v47 = vmov 0  ;;  %v827_v8 = vmul.f32 0.2, %v4903_v38  ;;  %v721_v58 = vadd.f32 %v4386_v34, %v613_v56  ;;  %v722_v0 = vadd.f32 %v4388_v35, %v613_v56  ;;  %v628_v15 = vpop.permute.xlu1 %627  ;;  %v623_v63 = vpop.permute.xlu0 %622 }
 0x11d   : > { %vm5076_vm13 = vcmp.ne.s32.totalorder %v7720_v29, 0  ;;  %v7724_v11 = vunpack.c.1.s8 %v4522_v13  ;;  %v7725_v2 = vmov 0  ;;  %v5090_v42 = vadd.f32 %v4386_v34, %v618_v10  ;;  %1450 = vmax.xlane.f32.xlu0 %v1449_v57 }
 0x11e   : > { %v7722_v47 = vsel %vm5076_vm13, 4294967295, %v7721_v47  ;;  %v845_v31 = vmul.f32 0.2, %v717_v4  ;;  %v846_v29 = vmul.f32 0.2, %v718_v49  ;;  %v7728_v53 = vunpack.c.0.s8 %v4603_v45 }
 0x11f   : > { %7723 = vst [vmem:[#allocation66_spill] sm:$0xff] %v7722_v47  ;;  %vm5085_vm11 = vcmp.ne.s32.totalorder %v7724_v11, 0  ;;  %v828_v36 = vmul.f32 0.2, %v4923_v39  ;;  %v7729_v56 = vmov 0  ;;  %v7732_v13 = vunpack.c.1.s8 %v4603_v45 }
 0x120   : > { %v7726_v2 = vsel %vm5085_vm11, 4294967295, %v7725_v2  ;;  %vm5095_vm9 = vcmp.ne.s32.totalorder %v7728_v53, 0  ;;  %v7733_v11 = vmov 0  ;;  %vm783_vm10 = vcmp.gt.f32.partialorder %v719_v6, 0.0  ;;  %v633_v27 = vpop.permute.xlu0 %632 }
 0x121   : > { %7727 = vst [vmem:[#allocation67_spill] sm:$0xff] %v7726_v2  ;;  %v7730_v56 = vsel %vm5095_vm9, 4294967295, %v7729_v56  ;;  %vm5101_vm7 = vcmp.ne.s32.totalorder %v7732_v13, 0  ;;  %vm784_vm14 = vcmp.gt.f32.partialorder %v720_v3, 0.0  ;;  %v847_v7 = vmul.f32 0.2, %v719_v6 }
 0x122   : > { %7731 = vst [vmem:[#allocation68_spill] sm:$0xff] %v7730_v56  ;;  %v7734_v11 = vsel %vm5101_vm7, 4294967295, %v7733_v11  ;;  %v848_v57 = vmul.f32 0.2, %v720_v3  ;;  %v1452_v23 = vmax.f32 %v5068_v55, %v5072_v1  ;;  %vm7736_vm0 = vcmp.gt.f32.partialorder %v717_v4, 0.0 }
 0x123   : > { %7735 = vst [vmem:[#allocation69_spill] sm:$0xff] %v7734_v11  ;;  %v909_v53 = vsel %vm7736_vm0, %v717_v4, %v845_v31  ;;  %vm7737_vm12 = vcmp.gt.f32.partialorder %v718_v49, 0.0  ;;  %v849_v37 = vmul.f32 0.2, %v721_v58  ;;  %v724_v45 = vadd.f32 %v4388_v35, %v618_v10 }
 0x124   : > { %v910_v14 = vsel %vm7737_vm12, %v718_v49, %v846_v29  ;;  %v725_v13 = vadd.f32 %v4386_v34, %v623_v63  ;;  %vm785_vm2 = vcmp.gt.f32.partialorder %v721_v58, 0.0  ;;  %1453 = vmax.xlane.f32.xlu0 %v1452_v23  ;;  %v5113_v44 = vsel %vm5008_vm6, %v909_v53, -1e+30  ;;  %v643_v60 = vpop.permute.xlu0 %642 }
 0x125   : > { %7738 = vst [vmem:[#allocation70_spill] sm:$0xff] %v5113_v44  ;;  %v5117_v61 = vsel %vm5014_vm1, %v910_v14, -1e+30  ;;  %v911_v4 = vsel %vm783_vm10, %v719_v6, %v847_v7  ;;  %v912_v49 = vsel %vm784_vm14, %v720_v3, %v848_v57  ;;  %v7740_v31 = vunpack.c.0.s8 %v4525_v16 }
 0x126   : > { %7739 = vst [vmem:[#allocation71_spill] sm:$0xff] %v5117_v61  ;;  %v7741_v10 = vmov 0  ;;  %v7744_v23 = vunpack.c.1.s8 %v4525_v16  ;;  %v7745_v29 = vmov 0  ;;  %v1455_v14 = vmax.f32 %v5113_v44, %v5117_v61  ;;  %v5995_v44 = vld [vmem:[#allocation2 + $0xf0] sm:$0xff] }
 0x127   : > { %vm5123_vm12 = vcmp.ne.s32.totalorder %v7740_v31, 0  ;;  %v5137_v7 = vsel %vm5020_vm3, %v911_v4, -1e+30  ;;  %v5141_v6 = vsel %vm5026_vm8, %v912_v49, -1e+30  ;;  %v7750_v57 = vunpack.c.0.s8 %v4528_v18  ;;  %7963 = vst [vmem:[#allocation131_spill] sm:$0xff] %v5995_v44 }
 0x128   : > { %v7742_v10 = vsel %vm5123_vm12, 4294967295, %v7741_v10  ;;  %vm5129_vm0 = vcmp.ne.s32.totalorder %v7744_v23, 0  ;;  %7748 = vst [vmem:[#allocation74_spill] sm:$0xff] %v5137_v7  ;;  %7749 = vst [vmem:[#allocation75_spill] sm:$0xff] %v5141_v6  ;;  %v850_v3 = vmul.f32 0.2, %v722_v0  ;;  %v7754_v53 = vunpack.c.1.s8 %v4528_v18  ;;  %v638_v23 = vpop.permute.xlu1 %637  ;;  %1456 = vmax.xlane.f32.xlu1 %v1455_v14 }
 0x129   : > { %7743 = vst [vmem:[#allocation72_spill] sm:$0xff] %v7742_v10  ;;  %v7746_v29 = vsel %vm5129_vm0, 4294967295, %v7745_v29  ;;  %vm5145_vm14 = vcmp.ne.s32.totalorder %v7750_v57, 0  ;;  %v7751_v16 = vmov 0  ;;  %v7755_v31 = vmov 0 }
 0x12a   : > { %7747 = vst [vmem:[#allocation73_spill] sm:$0xff] %v7746_v29  ;;  %v7752_v16 = vsel %vm5145_vm14, 4294967295, %v7751_v16  ;;  %vm5151_vm10 = vcmp.ne.s32.totalorder %v7754_v53, 0  ;;  %v726_v4 = vadd.f32 %v4388_v35, %v623_v63  ;;  %v913_v49 = vsel %vm785_vm2, %v721_v58, %v849_v37 }
 0x12b   : > { %7753 = vst [vmem:[#allocation76_spill] sm:$0xff] %v7752_v16  ;;  %v7756_v31 = vsel %vm5151_vm10, 4294967295, %v7755_v31  ;;  %v5160_v9 = vsel %vm5040_vm5, %v5033_v30, -1e+30  ;;  %v5165_v57 = vsel %vm5046_vm4, %v5036_v5, -1e+30  ;;  %v5168_v18 = vadd.f32 %v4386_v34, %v628_v15 }
 0x12c   : > { %7757 = vst [vmem:[#allocation77_spill] sm:$0xff] %v7756_v31  ;;  %7758 = vst [vmem:[#allocation78_spill] sm:$0xff] %v5160_v9  ;;  %vm7760_vm15 = vcmp.gt.f32.partialorder %v4903_v38, 0.0  ;;  %vm7761_vm2 = vcmp.gt.f32.partialorder %v4923_v39, 0.0  ;;  %v829_v30 = vmul.f32 0.2, %v4947_v20  ;;  %v7762_v58 = vmax.f32 %v4879_v25, %v4883_v32 }
 0x12d   : > { %7759 = vst [vmem:[#allocation79_spill] sm:$0xff] %v5165_v57  ;;  %v891_v63 = vsel %vm7760_vm15, %v4903_v38, %v827_v8  ;;  %v892_v37 = vsel %vm7761_vm2, %v4923_v39, %v828_v36  ;;  %v1458_v5 = vmax.f32 %v5137_v7, %v5141_v6  ;;  %vm7763_vm4 = vcmp.gt.f32.partialorder %v722_v0, 0.0  ;;  %v5976_v32 = vld [vmem:[#allocation2 + $0x70] sm:$0xff] }
 0x12e   : > { %1411 = vmax.xlane.f32.xlu0 %v7762_v58  ;;  %v914_v53 = vsel %vm7763_vm4, %v722_v0, %v850_v3  ;;  %v851_v14 = vmul.f32 0.2, %v5090_v42  ;;  %v852_v26 = vmul.f32 0.2, %v724_v45  ;;  %v5186_v38 = vsel %vm5076_vm13, %v913_v49, -1e+30  ;;  %v648_v58 = vpop.permute.xlu1 %647 }
 0x12f   : > { %7764 = vst [vmem:[#allocation80_spill] sm:$0xff] %v5186_v38  ;;  %vm787_vm15 = vcmp.gt.f32.partialorder %v5090_v42, 0.0  ;;  %vm788_vm2 = vcmp.gt.f32.partialorder %v724_v45, 0.0  ;;  %v853_v39 = vmul.f32 0.2, %v725_v13  ;;  %v7766_v0 = vunpack.c.0.s8 %v4564_v19 }
 0x130   : > { %v5191_v36 = vsel %vm5085_vm11, %v914_v53, -1e+30  ;;  %v854_v8 = vmul.f32 0.2, %v726_v4  ;;  %v7767_v3 = vmov 0  ;;  %v7770_v49 = vmax.f32 %v4891_v22, %v4895_v40 }
 0x131   : > { %7765 = vst [vmem:[#allocation81_spill] sm:$0xff] %v5191_v36  ;;  %vm5195_vm4 = vcmp.ne.s32.totalorder %v7766_v0, 0  ;;  %v5206_v53 = vsel %vm5095_vm9, %v891_v63, -1e+30  ;;  %v5210_v47 = vsel %vm5101_vm7, %v892_v37, -1e+30  ;;  %v728_v0 = vadd.f32 %v4388_v35, %v628_v15 }
 0x132   : > { %v7768_v3 = vsel %vm5195_vm4, 4294967295, %v7767_v3  ;;  %1414 = vmax.xlane.f32.xlu1 %v7770_v49  ;;  %7771 = vst [vmem:[#allocation83_spill] sm:$0xff] %v5206_v53  ;;  %7772 = vst [vmem:[#allocation84_spill] sm:$0xff] %v5210_v47  ;;  %v729_v2 = vadd.f32 %v4386_v34, %v633_v27  ;;  %1459 = vmax.xlane.f32.xlu0 %v1458_v5  ;;  %v915_v49 = vsel %vm787_vm15, %v5090_v42, %v851_v14  ;;  %v7774_v56 = vmov 0 }
 0x133   : > { %7769 = vst [vmem:[#allocation82_spill] sm:$0xff] %v7768_v3  ;;  %v916_v62 = vsel %vm788_vm2, %v724_v45, %v852_v26  ;;  %v7773_v63 = vunpack.c.1.s8 %v4564_v19  ;;  %v7777_v37 = vunpack.c.0.s8 %v4598_v21  ;;  %v7778_v15 = vmov 0  ;;  %v7836_v3 = vld [vmem:[#allocation5_spill] sm:$0xff] }
 0x134   : > { %v7781_v5 = vunpack.c.1.s8 %v4598_v21  ;;  %v7782_v11 = vmov 0  ;;  %v730_v19 = vadd.f32 %v4388_v35, %v633_v27  ;;  %v1461_v26 = vmax.f32 %v5186_v38, %v5191_v36  ;;  %v5955_v36 = vld [vmem:[#allocation2 + $0xe0] sm:$0xff]  ;;  %v5963_v38 = vld [vmem:[#allocation2 + $0x68] sm:$0xff] }
 0x135   : > { %vm5221_vm5 = vcmp.ne.s32.totalorder %v7773_v63, 0  ;;  %vm5227_vm3 = vcmp.ne.s32.totalorder %v7777_v37, 0  ;;  %vm7785_vm2 = vcmp.gt.f32.partialorder %v725_v13, 0.0  ;;  %vm7786_vm7 = vcmp.gt.f32.partialorder %v726_v4, 0.0 }
 0x136   : > { %v7775_v56 = vsel %vm5221_vm5, 4294967295, %v7774_v56  ;;  %v7779_v15 = vsel %vm5227_vm3, 4294967295, %v7778_v15  ;;  %vm5233_vm9 = vcmp.ne.s32.totalorder %v7781_v5, 0  ;;  %v917_v42 = vsel %vm7785_vm2, %v725_v13, %v853_v39  ;;  %1462 = vmax.xlane.f32.xlu1 %v1461_v26 }
 0x137   : > { %7776 = vst [vmem:[#allocation85_spill] sm:$0xff] %v7775_v56  ;;  %7780 = vst [vmem:[#allocation86_spill] sm:$0xff] %v7779_v15  ;;  %v7783_v11 = vsel %vm5233_vm9, 4294967295, %v7782_v11  ;;  %v918_v45 = vsel %vm7786_vm7, %v726_v4, %v854_v8  ;;  %v855_v14 = vmul.f32 0.2, %v5168_v18  ;;  %vm7787_vm13 = vcmp.gt.f32.partialorder %v4947_v20, 0.0 }
 0x138   : > { %7784 = vst [vmem:[#allocation87_spill] sm:$0xff] %v7783_v11  ;;  %v830_v63 = vmul.f32 0.2, %v4970_v54  ;;  %v5250_v37 = vsel %vm7787_vm13, %v4947_v20, %v829_v30  ;;  %v731_v27 = vadd.f32 %v4386_v34, %v638_v23  ;;  %v5255_v13 = vsel %vm5123_vm12, %v915_v49, -1e+30 }
 0x139   : > { %7788 = vst [vmem:[#allocation88_spill] sm:$0xff] %v5255_v13  ;;  %v5259_v4 = vsel %vm5129_vm0, %v916_v62, -1e+30  ;;  %v7790_v39 = vunpack.c.0.s8 %v4608_v50  ;;  %v7791_v8 = vmov 0  ;;  %v732_v20 = vadd.f32 %v4388_v35, %v638_v23  ;;  %v658_v23 = vpop.permute.xlu1 %657 }
 0x13a   : > { %7789 = vst [vmem:[#allocation89_spill] sm:$0xff] %v5259_v4  ;;  %v7794_v30 = vmax.f32 %v4907_v43, %v4912_v41  ;;  %v5274_v49 = vsel %vm5145_vm14, %v917_v42, -1e+30  ;;  %v5278_v62 = vsel %vm5151_vm10, %v918_v45, -1e+30  ;;  %v7797_v26 = vunpack.c.1.s8 %v4608_v50 }
 0x13b   : > { %vm5264_vm2 = vcmp.ne.s32.totalorder %v7790_v39, 0  ;;  %7795 = vst [vmem:[#allocation91_spill] sm:$0xff] %v5274_v49  ;;  %7796 = vst [vmem:[#allocation92_spill] sm:$0xff] %v5278_v62  ;;  %v856_v5 = vmul.f32 0.2, %v728_v0  ;;  %v7798_v39 = vmov 0  ;;  %v7801_v21 = vunpack.c.0.s8 %v4656_v48 }
 0x13c   : > { %v7792_v8 = vsel %vm5264_vm2, 4294967295, %v7791_v8  ;;  %1417 = vmax.xlane.f32.xlu0 %v7794_v30  ;;  %vm5282_vm13 = vcmp.ne.s32.totalorder %v7797_v26, 0  ;;  %vm792_vm15 = vcmp.gt.f32.partialorder %v728_v0, 0.0  ;;  %vm793_vm7 = vcmp.gt.f32.partialorder %v729_v2, 0.0  ;;  %v653_v26 = vpop.permute.xlu0 %652 }
 0x13d   : > { %7793 = vst [vmem:[#allocation90_spill] sm:$0xff] %v7792_v8  ;;  %v7799_v39 = vsel %vm5282_vm13, 4294967295, %v7798_v39  ;;  %v857_v30 = vmul.f32 0.2, %v729_v2  ;;  %vm5288_vm14 = vcmp.ne.s32.totalorder %v7801_v21, 0  ;;  %v7802_v42 = vmov 0 }
 0x13e   : > { %7800 = vst [vmem:[#allocation93_spill] sm:$0xff] %v7799_v39  ;;  %v7803_v42 = vsel %vm5288_vm14, 4294967295, %v7802_v42  ;;  %v7805_v45 = vunpack.c.1.s8 %v4656_v48  ;;  %v7806_v16 = vmov 0  ;;  %v5299_v50 = vadd.f32 %v4386_v34, %v648_v58 }
 0x13f   : > { %7804 = vst [vmem:[#allocation94_spill] sm:$0xff] %v7803_v42  ;;  %v1464_v31 = vmax.f32 %v5255_v13, %v5259_v4  ;;  %vm7809_vm12 = vcmp.gt.f32.partialorder %v5168_v18, 0.0  ;;  %v858_v10 = vmul.f32 0.2, %v730_v19  ;;  %v5307_v29 = vadd.f32 %v4388_v35, %v648_v58 }
 0x140   : > { %vm5294_vm10 = vcmp.ne.s32.totalorder %v7805_v45, 0  ;;  %v919_v21 = vsel %vm7809_vm12, %v5168_v18, %v855_v14  ;;  %v733_v48 = vadd.f32 %v4386_v34, %v643_v60  ;;  %v734_v45 = vadd.f32 %v4388_v35, %v643_v60 }
 0x141   : > { %v7807_v16 = vsel %vm5294_vm10, 4294967295, %v7806_v16  ;;  %v7810_v46 = vmax.f32 %v4916_v33, %v4920_v59  ;;  %v1467_v41 = vmax.f32 %v5274_v49, %v5278_v62  ;;  %v5317_v4 = vadd.f32 %v4386_v34, %v658_v23  ;;  %1465 = vmax.xlane.f32.xlu0 %v1464_v31  ;;  %v5939_v49 = vld [vmem:[#allocation2 + $0x60] sm:$0xff] }
 0x142   : > { %7808 = vst [vmem:[#allocation95_spill] sm:$0xff] %v7807_v16  ;;  %v920_v18 = vsel %vm792_vm15, %v728_v0, %v856_v5  ;;  %v921_v58 = vsel %vm793_vm7, %v729_v2, %v857_v30  ;;  %vm7811_vm12 = vcmp.gt.f32.partialorder %v730_v19, 0.0  ;;  %v5323_v13 = vadd.f32 %v4388_v35, %v658_v23 }
 0x143   : > { %1420 = vmax.xlane.f32.xlu1 %v7810_v46  ;;  %v922_v14 = vsel %vm7811_vm12, %v730_v19, %v858_v10  ;;  %v5326_v60 = vadd.f32 %v4386_v34, %v653_v26  ;;  %v5329_v46 = vadd.f32 %v4388_v35, %v653_v26  ;;  %v5333_v62 = vsel %vm5195_vm4, %v919_v21, -1e+30 }
 0x144   : > { %7812 = vst [vmem:[#allocation96_spill] sm:$0xff] %v5333_v62  ;;  %v7813_v31 = vunpack.c.0.s8 %v4661_v52  ;;  %v7814_v0 = vmov 0  ;;  %v7817_v2 = vunpack.c.1.s8 %v4661_v52  ;;  %v7818_v10 = vmov 0 }
 0x145   : > { %v859_v19 = vmul.f32 0.2, %v731_v27  ;;  %v860_v5 = vmul.f32 0.2, %v732_v20  ;;  %v7821_v23 = vunpack.c.0.s8 %v4613_v51  ;;  %v7822_v30 = vmov 0 }
 0x146   : > { %vm5337_vm15 = vcmp.ne.s32.totalorder %v7813_v31, 0  ;;  %vm5343_vm7 = vcmp.ne.s32.totalorder %v7817_v2, 0  ;;  %v7825_v26 = vunpack.c.1.s8 %v4613_v51  ;;  %v7826_v21 = vmov 0 }
 0x147   : > { %v7815_v0 = vsel %vm5337_vm15, 4294967295, %v7814_v0  ;;  %v7819_v10 = vsel %vm5343_vm7, 4294967295, %v7818_v10  ;;  %vm5349_vm4 = vcmp.ne.s32.totalorder %v7821_v23, 0  ;;  %1468 = vmax.xlane.f32.xlu1 %v1467_v41  ;;  %v5361_v52 = vsel %vm5221_vm5, %v920_v18, -1e+30  ;;  %v668_v23 = vpop.permute.xlu1 %667 }
 0x148   : > { %7816 = vst [vmem:[#allocation97_spill] sm:$0xff] %v7815_v0  ;;  %7820 = vst [vmem:[#allocation98_spill] sm:$0xff] %v7819_v10  ;;  %v7823_v30 = vsel %vm5349_vm4, 4294967295, %v7822_v30  ;;  %vm5355_vm11 = vcmp.ne.s32.totalorder %v7825_v26, 0  ;;  %v5365_v31 = vsel %vm5227_vm3, %v921_v58, -1e+30  ;;  %v7833_v41 = vmax.f32 %v4963_v17, %v4967_v12 }
 0x149   : > { %7824 = vst [vmem:[#allocation99_spill] sm:$0xff] %v7823_v30  ;;  %v7827_v21 = vsel %vm5355_vm11, 4294967295, %v7826_v21  ;;  %7829 = vst [vmem:[#allocation101_spill] sm:$0xff] %v5361_v52  ;;  %v5369_v2 = vsel %vm5233_vm9, %v922_v14, -1e+30  ;;  %vm7832_vm0 = vcmp.gt.f32.partialorder %v4970_v54, 0.0  ;;  %v7837_v56 = vunpack.c.0.s8 %v7836_v3 }
 0x14a   : > { %7828 = vst [vmem:[#allocation100_spill] sm:$0xff] %v7827_v21  ;;  %7830 = vst [vmem:[#allocation102_spill] sm:$0xff] %v5365_v31  ;;  %v894_v51 = vsel %vm7832_vm0, %v4970_v54, %v830_v63  ;;  %1423 = vmax.xlane.f32.xlu0 %v7833_v41  ;;  %v861_v18 = vmul.f32 0.2, %v733_v48  ;;  %v862_v26 = vmul.f32 0.2, %v734_v45  ;;  %v1470_v63 = vmax.f32 %v5333_v62, %v5361_v52 }
 0x14b   : > { %7831 = vst [vmem:[#allocation103_spill] sm:$0xff] %v5369_v2  ;;  %vm7834_vm6 = vcmp.gt.f32.partialorder %v731_v27, 0.0  ;;  %vm7835_vm3 = vcmp.gt.f32.partialorder %v732_v20, 0.0  ;;  %v831_v14 = vmul.f32 0.2, %v4927_v24  ;;  %vm5383_vm0 = vcmp.ne.s32.totalorder %v7837_v56, 0 }
 0x14c   : > { %v923_v58 = vsel %vm7834_vm6, %v731_v27, %v859_v19  ;;  %v924_v15 = vsel %vm7835_vm3, %v732_v20, %v860_v5  ;;  %v832_v11 = vmul.f32 0.2, %v4944_v28  ;;  %v7838_v54 = vmov 0  ;;  %v7846_v56 = vld [vmem:[#allocation10_spill] sm:$0xff]  ;;  %v7892_v21 = vld [vmem:[#allocation7_spill] sm:$0xff]  ;;  %v5947_v17 = vld [vmem:[#allocation2 + $0xd8] sm:$0xff] }
 0x14d   : > { %v7839_v54 = vsel %vm5383_vm0, 4294967295, %v7838_v54  ;;  %v5392_v41 = vsel %vm5264_vm2, %v5250_v37, -1e+30  ;;  %v7842_v27 = vunpack.c.1.s8 %v7836_v3  ;;  %v7843_v20 = vmov 0 }
 0x14e   : > { %7840 = vst [vmem:[#allocation5_spill] sm:$0xff] %v7839_v54  ;;  %7841 = vst [vmem:[#allocation104_spill] sm:$0xff] %v5392_v41  ;;  %v7847_v19 = vunpack.c.0.s8 %v7846_v56  ;;  %v7848_v5 = vmov 0  ;;  %v7851_v8 = vunpack.c.1.s8 %v7846_v56  ;;  %v7852_v37 = vmov 0  ;;  %1471 = vmax.xlane.f32.xlu0 %v1470_v63  ;;  %v7863_v63 = vld [vmem:[#allocation52_spill] sm:$0xff] }
 0x14f   : > { %vm5398_vm5 = vcmp.ne.s32.totalorder %v7842_v27, 0  ;;  %v5415_v52 = vadd.f32 %v4386_v34, %v668_v23  ;;  %v5418_v3 = vadd.f32 %v4388_v35, %v668_v23  ;;  %v7855_v27 = vmax.f32 %v5160_v9, %v5165_v57  ;;  %v5929_v9 = vld [vmem:[#allocation2 + $0x58] sm:$0xff] }
 0x150   : > { %v7844_v20 = vsel %vm5398_vm5, 4294967295, %v7843_v20  ;;  %vm5404_vm12 = vcmp.ne.s32.totalorder %v7847_v19, 0  ;;  %vm5410_vm9 = vcmp.ne.s32.totalorder %v7851_v8, 0  ;;  %v1473_v19 = vmax.f32 %v5365_v31, %v5369_v2  ;;  %v663_v8 = vpop.permute.xlu0 %662 }
 0x151   : > { %7845 = vst [vmem:[#allocation105_spill] sm:$0xff] %v7844_v20  ;;  %v7849_v5 = vsel %vm5404_vm12, 4294967295, %v7848_v5  ;;  %v7853_v37 = vsel %vm5410_vm9, 4294967295, %v7852_v37  ;;  %1426 = vmax.xlane.f32.xlu1 %v7855_v27  ;;  %v5427_v56 = vsel %vm5282_vm13, %v894_v51, -1e+30  ;;  %vm7859_vm3 = vcmp.gt.f32.partialorder %v733_v48, 0.0 }
 0x152   : > { %7850 = vst [vmem:[#allocation10_spill] sm:$0xff] %v7849_v5  ;;  %7854 = vst [vmem:[#allocation106_spill] sm:$0xff] %v7853_v37  ;;  %v5431_v62 = vsel %vm5288_vm14, %v923_v58, -1e+30  ;;  %v5435_v23 = vsel %vm5294_vm10, %v924_v15, -1e+30  ;;  %v925_v57 = vsel %vm7859_vm3, %v733_v48, %v861_v18 }
 0x153   : > { %7856 = vst [vmem:[#allocation107_spill] sm:$0xff] %v5427_v56  ;;  %7857 = vst [vmem:[#allocation108_spill] sm:$0xff] %v5431_v62  ;;  %vm7860_vm6 = vcmp.gt.f32.partialorder %v734_v45, 0.0  ;;  %vm7861_vm2 = vcmp.gt.f32.partialorder %v4927_v24, 0.0  ;;  %vm7862_vm13 = vcmp.gt.f32.partialorder %v4944_v28, 0.0  ;;  %v7864_v58 = vld [vmem:[#allocation53_spill] sm:$0xff] }
 0x154   : > { %7858 = vst [vmem:[#allocation109_spill] sm:$0xff] %v5435_v23  ;;  %v926_v27 = vsel %vm7860_vm6, %v734_v45, %v862_v26  ;;  %v895_v39 = vsel %vm7861_vm2, %v4927_v24, %v831_v14  ;;  %v896_v51 = vsel %vm7862_vm13, %v4944_v28, %v832_v11  ;;  %v833_v42 = vmul.f32 0.2, %v7863_v63  ;;  %v7865_v45 = vld [vmem:[#allocation16_spill] sm:$0xff] }
 0x155   : > { %v834_v2 = vmul.f32 0.2, %v7864_v58  ;;  %v863_v15 = vmul.f32 0.2, %v5299_v50  ;;  %v864_v48 = vmul.f32 0.2, %v5307_v29  ;;  %v7866_v18 = vunpack.c.0.s8 %v7865_v45  ;;  %1474 = vmax.xlane.f32.xlu1 %v1473_v19 }
 0x156   : > { %v7867_v24 = vmov 0  ;;  %v7870_v28 = vunpack.c.1.s8 %v7865_v45  ;;  %v7871_v11 = vmov 0  ;;  %v5464_v26 = vadd.f32 %v4386_v34, %v663_v8 }
 0x157   : > { %vm5453_vm6 = vcmp.ne.s32.totalorder %v7866_v18, 0  ;;  %v5467_v14 = vadd.f32 %v4388_v35, %v663_v8  ;;  %vm799_vm13 = vcmp.gt.f32.partialorder %v5299_v50, 0.0  ;;  %vm800_vm3 = vcmp.gt.f32.partialorder %v5307_v29, 0.0  ;;  %v7874_v18 = vld [vmem:[#allocation6_spill] sm:$0xff] }
 0x158   : > { %v7868_v24 = vsel %vm5453_vm6, 4294967295, %v7867_v24  ;;  %vm5459_vm2 = vcmp.ne.s32.totalorder %v7870_v28, 0  ;;  %v7875_v16 = vunpack.c.0.s8 %v7874_v18  ;;  %v7876_v31 = vmov 0 }
 0x159   : > { %7869 = vst [vmem:[#allocation52_spill] sm:$0xff] %v7868_v24  ;;  %v7872_v11 = vsel %vm5459_vm2, 4294967295, %v7871_v11  ;;  %v7879_v45 = vunpack.c.1.s8 %v7874_v18  ;;  %v7880_v28 = vmov 0  ;;  %v7883_v34 = vmax.f32 %v5206_v53, %v5210_v47  ;;  %v5921_v53 = vld [vmem:[#allocation2 + $0xd0] sm:$0xff] }
 0x15a   : > { %7873 = vst [vmem:[#allocation53_spill] sm:$0xff] %v7872_v11  ;;  %vm5473_vm10 = vcmp.ne.s32.totalorder %v7875_v16, 0  ;;  %v1431_v35 = vmax.f32 %v5392_v41, %v5427_v56  ;;  %v1476_v19 = vmax.f32 %v5431_v62, %v5435_v23  ;;  %v5492_v16 = vsel %vm5337_vm15, %v925_v57, -1e+30  ;;  %v7942_v11 = vld [vmem:[#allocation54_spill] sm:$0xff]  ;;  %v5905_v62 = vld [vmem:[#allocation2 + $0x50] sm:$0xff] }
 0x15b   : > { %v7877_v31 = vsel %vm5473_vm10, 4294967295, %v7876_v31  ;;  %vm5479_vm14 = vcmp.ne.s32.totalorder %v7879_v45, 0  ;;  %1429 = vmax.xlane.f32.xlu0 %v7883_v34  ;;  %7884 = vst [vmem:[#allocation110_spill] sm:$0xff] %v5492_v16  ;;  %v5496_v8 = vsel %vm5343_vm7, %v926_v27, -1e+30  ;;  %vm7888_vm8 = vcmp.gt.f32.partialorder %v7863_v63, 0.0 }
 0x15c   : > { %7878 = vst [vmem:[#allocation16_spill] sm:$0xff] %v7877_v31  ;;  %v7881_v28 = vsel %vm5479_vm14, 4294967295, %v7880_v28  ;;  %7885 = vst [vmem:[#allocation111_spill] sm:$0xff] %v5496_v8  ;;  %v5500_v18 = vsel %vm5349_vm4, %v895_v39, -1e+30  ;;  %v897_v34 = vsel %vm7888_vm8, %v7863_v63, %v833_v42  ;;  %vm7889_vm15 = vcmp.gt.f32.partialorder %v7864_v58, 0.0  ;;  %1432 = vmax.xlane.f32.xlu1 %v1431_v35 }
 0x15d   : > { %7882 = vst [vmem:[#allocation6_spill] sm:$0xff] %v7881_v28  ;;  %7886 = vst [vmem:[#allocation112_spill] sm:$0xff] %v5500_v18  ;;  %v5504_v45 = vsel %vm5355_vm11, %v896_v51, -1e+30  ;;  %v898_v57 = vsel %vm7889_vm15, %v7864_v58, %v834_v2  ;;  %v927_v0 = vsel %vm799_vm13, %v5299_v50, %v863_v15  ;;  %v928_v27 = vsel %vm800_vm3, %v5307_v29, %v864_v48  ;;  %v7890_v51 = vld [vmem:[#allocation50_spill] sm:$0xff]  ;;  %v7891_v42 = vld [vmem:[#allocation51_spill] sm:$0xff] }
 0x15e   : > { %7887 = vst [vmem:[#allocation113_spill] sm:$0xff] %v5504_v45  ;;  %v865_v10 = vmul.f32 0.2, %v5326_v60  ;;  %v866_v39 = vmul.f32 0.2, %v5329_v46  ;;  %v7893_v23 = vunpack.c.0.s8 %v7892_v21  ;;  %v7894_v2 = vmov 0 }
 0x15f   : > { %v835_v30 = vmul.f32 0.2, %v7890_v51  ;;  %v836_v63 = vmul.f32 0.2, %v7891_v42  ;;  %v7897_v29 = vunpack.c.1.s8 %v7892_v21  ;;  %v7898_v50 = vmov 0  ;;  %1477 = vmax.xlane.f32.xlu0 %v1476_v19 }
 0x160   : > { %vm5522_vm8 = vcmp.ne.s32.totalorder %v7893_v23, 0  ;;  %v1479_v58 = vmax.f32 %v5492_v16, %v5496_v8  ;;  %v5536_v15 = vsel %vm5383_vm0, %v897_v34, -1e+30  ;;  %vm771_vm13 = vcmp.gt.f32.partialorder %v7890_v51, 0.0  ;;  %v7902_v23 = vld [vmem:[#allocation19_spill] sm:$0xff]  ;;  %v5913_v16 = vld [vmem:[#allocation2 + $0xc8] sm:$0xff] }
 0x161   : > { %v7895_v2 = vsel %vm5522_vm8, 4294967295, %v7894_v2  ;;  %vm5528_vm15 = vcmp.ne.s32.totalorder %v7897_v29, 0  ;;  %7901 = vst [vmem:[#allocation7_spill] sm:$0xff] %v5536_v15  ;;  %vm772_vm3 = vcmp.gt.f32.partialorder %v7891_v42, 0.0  ;;  %v7903_v48 = vunpack.c.0.s8 %v7902_v23 }
 0x162   : > { %7896 = vst [vmem:[#allocation50_spill] sm:$0xff] %v7895_v2  ;;  %v7899_v50 = vsel %vm5528_vm15, 4294967295, %v7898_v50  ;;  %v7904_v21 = vmov 0  ;;  %v7907_v35 = vunpack.c.1.s8 %v7902_v23  ;;  %v7908_v19 = vmov 0  ;;  %1480 = vmax.xlane.f32.xlu1 %v1479_v58  ;;  %v5817_v2 = vld [vmem:[#allocation2 + $0xa0] sm:$0xff] }
 0x163   : > { %7900 = vst [vmem:[#allocation51_spill] sm:$0xff] %v7899_v50  ;;  %vm5542_vm4 = vcmp.ne.s32.totalorder %v7903_v48, 0  ;;  %v1434_v34 = vmax.f32 %v5500_v18, %v5504_v45  ;;  %v5556_v29 = vsel %vm5398_vm5, %v898_v57, -1e+30  ;;  %v5560_v54 = vsel %vm5404_vm12, %v927_v0, -1e+30 }
 0x164   : > { %v7905_v21 = vsel %vm5542_vm4, 4294967295, %v7904_v21  ;;  %vm5548_vm7 = vcmp.ne.s32.totalorder %v7907_v35, 0  ;;  %7911 = vst [vmem:[#allocation115_spill] sm:$0xff] %v5556_v29  ;;  %7912 = vst [vmem:[#allocation116_spill] sm:$0xff] %v5560_v54  ;;  %v5564_v48 = vsel %vm5410_vm9, %v928_v27, -1e+30  ;;  %v899_v0 = vsel %vm771_vm13, %v7890_v51, %v835_v30 }
 0x165   : > { %7906 = vst [vmem:[#allocation19_spill] sm:$0xff] %v7905_v21  ;;  %v7909_v19 = vsel %vm5548_vm7, 4294967295, %v7908_v19  ;;  %7913 = vst [vmem:[#allocation117_spill] sm:$0xff] %v5564_v48  ;;  %vm7914_vm0 = vcmp.gt.f32.partialorder %v5326_v60, 0.0  ;;  %vm7915_vm11 = vcmp.gt.f32.partialorder %v5329_v46, 0.0  ;;  %v7916_v45 = vld [vmem:[#allocation56_spill] sm:$0xff]  ;;  %v900_v5 = vsel %vm772_vm3, %v7891_v42, %v836_v63  ;;  %1435 = vmax.xlane.f32.xlu0 %v1434_v34 }
 0x166   : > { %7910 = vst [vmem:[#allocation114_spill] sm:$0xff] %v7909_v19  ;;  %v929_v23 = vsel %vm7914_vm0, %v5326_v60, %v865_v10  ;;  %v930_v35 = vsel %vm7915_vm11, %v5329_v46, %v866_v39  ;;  %v837_v20 = vmul.f32 0.2, %v7916_v45  ;;  %v7917_v57 = vld [vmem:[#allocation57_spill] sm:$0xff]  ;;  %v7918_v27 = vld [vmem:[#allocation32_spill] sm:$0xff]  ;;  %v7920_v60 = vmov 0 }
 0x167   : > { %v838_v18 = vmul.f32 0.2, %v7917_v57  ;;  %v7919_v37 = vunpack.c.0.s8 %v7918_v27  ;;  %v7923_v46 = vunpack.c.1.s8 %v7918_v27  ;;  %v7924_v10 = vmov 0  ;;  %v7927_v42 = vld [vmem:[#allocation11_spill] sm:$0xff] }
 0x168   : > { %v1437_v30 = vmax.f32 %v5536_v15, %v5556_v29  ;;  %v1482_v39 = vmax.f32 %v5560_v54, %v5564_v48  ;;  %v867_v51 = vmul.f32 0.2, %v5317_v4  ;;  %v7928_v63 = vunpack.c.0.s8 %v7927_v42  ;;  %v5887_v29 = vld [vmem:[#allocation2 + $0xc0] sm:$0xff]  ;;  %v5895_v15 = vld [vmem:[#allocation2 + $0x48] sm:$0xff] }
 0x169   : > { %vm5580_vm0 = vcmp.ne.s32.totalorder %v7919_v37, 0  ;;  %vm5586_vm11 = vcmp.ne.s32.totalorder %v7923_v46, 0  ;;  %v868_v37 = vmul.f32 0.2, %v5323_v13  ;;  %v7929_v58 = vmov 0 }
 0x16a   : > { %v7921_v60 = vsel %vm5580_vm0, 4294967295, %v7920_v60  ;;  %v7925_v10 = vsel %vm5586_vm11, 4294967295, %v7924_v10  ;;  %vm5598_vm13 = vcmp.ne.s32.totalorder %v7928_v63, 0  ;;  %v7932_v27 = vunpack.c.1.s8 %v7927_v42  ;;  %1438 = vmax.xlane.f32.xlu1 %v1437_v30  ;;  %1483 = vmax.xlane.f32.xlu0 %v1482_v39 }
 0x16b   : > { %7922 = vst [vmem:[#allocation56_spill] sm:$0xff] %v7921_v60  ;;  %7926 = vst [vmem:[#allocation57_spill] sm:$0xff] %v7925_v10  ;;  %v7930_v58 = vsel %vm5598_vm13, 4294967295, %v7929_v58  ;;  %v7933_v34 = vmov 0  ;;  %v5610_v46 = vsel %vm5453_vm6, %v929_v23, -1e+30 }
 0x16c   : > { %7931 = vst [vmem:[#allocation32_spill] sm:$0xff] %v7930_v58  ;;  %vm5604_vm3 = vcmp.ne.s32.totalorder %v7932_v27, 0  ;;  %7936 = vst [vmem:[#allocation118_spill] sm:$0xff] %v5610_v46  ;;  %v5614_v48 = vsel %vm5459_vm2, %v930_v35, -1e+30  ;;  %vm803_vm9 = vcmp.gt.f32.partialorder %v5317_v4, 0.0 }
 0x16d   : > { %v7934_v34 = vsel %vm5604_vm3, 4294967295, %v7933_v34  ;;  %7937 = vst [vmem:[#allocation119_spill] sm:$0xff] %v5614_v48  ;;  %vm804_vm12 = vcmp.gt.f32.partialorder %v5323_v13, 0.0  ;;  %v5620_v63 = vsel %vm5473_vm10, %v899_v0, -1e+30  ;;  %vm7940_vm6 = vcmp.gt.f32.partialorder %v7916_v45, 0.0 }
 0x16e   : > { %7935 = vst [vmem:[#allocation11_spill] sm:$0xff] %v7934_v34  ;;  %7938 = vst [vmem:[#allocation120_spill] sm:$0xff] %v5620_v63  ;;  %v5624_v42 = vsel %vm5479_vm14, %v900_v5, -1e+30  ;;  %v901_v23 = vsel %vm7940_vm6, %v7916_v45, %v837_v20  ;;  %vm7941_vm2 = vcmp.gt.f32.partialorder %v7917_v57, 0.0  ;;  %vm805_vm5 = vcmp.gt.f32.partialorder %v5464_v26, 0.0 }
 0x16f   : > { %7939 = vst [vmem:[#allocation121_spill] sm:$0xff] %v5624_v42  ;;  %v902_v35 = vsel %vm7941_vm2, %v7917_v57, %v838_v18  ;;  %vm806_vm1 = vcmp.gt.f32.partialorder %v5467_v14, 0.0  ;;  %v869_v0 = vmul.f32 0.2, %v5464_v26  ;;  %v870_v27 = vmul.f32 0.2, %v5467_v14 }
 0x170   : > { %v931_v5 = vsel %vm803_vm9, %v5317_v4, %v867_v51  ;;  %v932_v24 = vsel %vm804_vm12, %v5323_v13, %v868_v37  ;;  %v839_v20 = vmul.f32 0.2, %v7942_v11  ;;  %v7943_v45 = vld [vmem:[#allocation55_spill] sm:$0xff]  ;;  %v1485_v18 = vmax.f32 %v5610_v46, %v5614_v48  ;;  %v5799_v34 = vld [vmem:[#allocation2 + $0x20] sm:$0xff]  ;;  %v5809_v10 = vld [vmem:[#allocation2 + $0x98] sm:$0xff] }
 0x171   : > { %v840_v31 = vmul.f32 0.2, %v7943_v45  ;;  %vm775_vm6 = vcmp.gt.f32.partialorder %v7942_v11, 0.0  ;;  %vm776_vm2 = vcmp.gt.f32.partialorder %v7943_v45, 0.0  ;;  %v7944_v57 = vld [vmem:[#allocation39_spill] sm:$0xff]  ;;  %v1440_v39 = vmax.f32 %v5620_v63, %v5624_v42  ;;  %v5871_v63 = vld [vmem:[#allocation2 + $0x40] sm:$0xff] }
 0x172   : > { %v1239_v30 = vunpack.c.0.s8 %v7944_v57  ;;  %v5649_v4 = vsel %vm5522_vm8, %v901_v23, -1e+30  ;;  %v5653_v13 = vsel %vm5528_vm15, %v902_v35, -1e+30  ;;  %v1240_v51 = vunpack.c.1.s8 %v7944_v57  ;;  %1486 = vmax.xlane.f32.xlu1 %v1485_v18  ;;  %v3709_v60 = vld [vmem:[%s5726_s7 + $0x30] sm:$0xff]   ;;  %v5879_v42 = vld [vmem:[#allocation2 + $0xb8] sm:$0xff] }
 0x173   : > { %7945 = vst [vmem:[#allocation54_spill] sm:$0xff] %v5649_v4  ;;  %7946 = vst [vmem:[#allocation55_spill] sm:$0xff] %v5653_v13  ;;  %v5658_v37 = vsel %vm5542_vm4, %v931_v5, -1e+30  ;;  %v5662_v28 = vsel %vm5548_vm7, %v932_v24, -1e+30  ;;  %v933_v23 = vsel %vm805_vm5, %v5464_v26, %v869_v0  ;;  %v934_v35 = vsel %vm806_vm1, %v5467_v14, %v870_v27  ;;  %1441 = vmax.xlane.f32.xlu0 %v1440_v39 }
 0x174   : > { %7947 = vst [vmem:[#allocation39_spill] sm:$0xff] %v5658_v37  ;;  %7948 = vst [vmem:[#allocation122_spill] sm:$0xff] %v5662_v28  ;;  %v903_v57 = vsel %vm775_vm6, %v7942_v11, %v839_v20  ;;  %v904_v18 = vsel %vm776_vm2, %v7943_v45, %v840_v31  ;;  %v871_v5 = vmul.f32 0.2, %v5415_v52  ;;  %v872_v21 = vmul.f32 0.2, %v5418_v3 }
 0x175   : > { %v1443_v24 = vmax.f32 %v5649_v4, %v5653_v13  ;;  %vm807_vm9 = vcmp.gt.f32.partialorder %v5415_v52, 0.0  ;;  %vm808_vm5 = vcmp.gt.f32.partialorder %v5418_v3, 0.0  ;;  %v1488_v26 = vmax.f32 %v5658_v37, %v5662_v28  ;;  %v5853_v37 = vld [vmem:[#allocation2 + $0xb0] sm:$0xff]  ;;  %v5861_v13 = vld [vmem:[#allocation2 + $0x38] sm:$0xff] }
 0x176   : > { %v5682_v14 = vsel %vm5580_vm0, %v933_v23, -1e+30  ;;  %v5686_v31 = vsel %vm5586_vm11, %v934_v35, -1e+30  ;;  %v5690_v11 = vsel %vm5598_vm13, %v903_v57, -1e+30  ;;  %v935_v27 = vsel %vm807_vm9, %v5415_v52, %v871_v5 }
 0x177   : > { %7949 = vst [vmem:[#allocation123_spill] sm:$0xff] %v5682_v14  ;;  %7950 = vst [vmem:[#allocation124_spill] sm:$0xff] %v5686_v31  ;;  %1444 = vmax.xlane.f32.xlu1 %v1443_v24  ;;  %v5694_v0 = vsel %vm5604_vm3, %v904_v18, -1e+30  ;;  %1489 = vmax.xlane.f32.xlu0 %v1488_v26  ;;  %v936_v20 = vsel %vm808_vm5, %v5418_v3, %v872_v21  ;;  %vm5698_vm1 = vcmp.ne.s32.totalorder %v1239_v30, 0  ;;  %v7953_v45 = vmov 0 }
 0x178   : > { %7951 = vst [vmem:[#allocation125_spill] sm:$0xff] %v5690_v11  ;;  %7952 = vst [vmem:[#allocation126_spill] sm:$0xff] %v5694_v0  ;;  %v7954_v45 = vsel %vm5698_vm1, 4294967295, %v7953_v45  ;;  %vm5702_vm12 = vcmp.ne.s32.totalorder %v1240_v51, 0  ;;  %v7956_v39 = vmov 0  ;;  %v1491_v23 = vmax.f32 %v5682_v14, %v5686_v31  ;;  %v5721_v30 = vld [vmem:[#allocation2] sm:$0xff] }
 0x179   : > { %7955 = vst [vmem:[#allocation127_spill] sm:$0xff] %v7954_v45  ;;  %v7957_v39 = vsel %vm5702_vm12, 4294967295, %v7956_v39  ;;  %v1446_v35 = vmax.f32 %v5690_v11, %v5694_v0  ;;  %v5712_v52 = vsel %vm5698_vm1, %v935_v27, -1e+30  ;;  %v5716_v3 = vsel %vm5702_vm12, %v936_v20, -1e+30 }
 0x17a   : > { %7958 = vst [vmem:[#allocation128_spill] sm:$0xff] %v7957_v39  ;;  %7959 = vst [vmem:[#allocation129_spill] sm:$0xff] %v5712_v52  ;;  %v1494_v21 = vmax.f32 %v5712_v52, %v5716_v3  ;;  %v3696_v51 = vld [vmem:[%s5726_s7 + $0x40] sm:$0xff]   ;;  %vm7463_vm6 = vcmask 7168   ;;  %v1403_v18 = vpop.xlane.xlu0 %1402  ;;  %v5730_v5 = vld [vmem:[#allocation2 + $0x8] sm:$0xff] }
 0x17b   : > { %1492 = vmax.xlane.f32.xlu1 %v1491_v23  ;;  %7960 = vst [vmem:[#allocation130_spill] sm:$0xff] %v5716_v3  ;;  %1447 = vmax.xlane.f32.xlu0 %v1446_v35  ;;  %v3697_v57 = vld [vmem:[%s5726_s7] sm:$0xff]   ;;  %v3698_v24 = vld [vmem:[%s5726_s7 + $0x48] sm:$0xff]   ;;  %v5734_v26 = vmax.f32 %v5721_v30, %v1403_v18  ;;  %v3700_v20 = vld [vmem:[%s5726_s7 + $0x50] sm:$0xff]  }
 0x17c   : > { %3506 = vmatprep.subr.bf16.mxu0 %v3696_v51  ;;  %3618 = vmatprep.subr.bf16.mxu1 %v3696_v51  ;;  %v3699_v27 = vld [vmem:[%s5726_s7 + $0x8] sm:$0xff]   ;;  %v5746_v51 = vld [vmem:[#allocation2 + $0x10] sm:$0xff]  ;;  %v3710_v39 = vld [vmem:[%s5726_s7 + $0x78] sm:$0xff]  }
 0x17d   : > { %3507 = vmatpush3.bf16.msra.mxu0 %v3697_v57  ;;  %3626 = vmatpush3.bf16.msra.mxu1 %v3697_v57  ;;  %2843 = vst.msk [vmem:[#allocation2] sm:$0xff] %vm7463_vm6, %v5734_v26  ;;  %v3704_v57 = vld [vmem:[%s5726_s7 + $0x60] sm:$0xff]   ;;  %v3708_v45 = vld [vmem:[%s5726_s7 + $0x70] sm:$0xff]   ;;  %v5825_v3 = vld [vmem:[#allocation2 + $0x28] sm:$0xff] }
 0x17e   : > { %3508 = vmatprep.subr.bf16.mxu0 %v3698_v24  ;;  %3619 = vmatprep.subr.bf16.mxu1 %v3698_v24  ;;  %v3701_v24 = vld [vmem:[%s5726_s7 + $0x10] sm:$0xff]   ;;  %v5845_v0 = vld [vmem:[#allocation2 + $0xa8] sm:$0xff] }
 0x17f   : > { %1495 = vmax.xlane.f32.xlu0 %v1494_v21  ;;  %v1406_v35 = vpop.xlane.xlu1 %1405  ;;  %v5835_v14 = vld [vmem:[#allocation2 + $0x30] sm:$0xff] }
 0x180   : > { %v5744_v21 = vmax.f32 %v5730_v5, %v1406_v35  ;;  %v3702_v35 = vld [vmem:[%s5726_s7 + $0x58] sm:$0xff]  }
 0x181   : > { %3509 = vmatpush3.bf16.msra.mxu0 %v3699_v27  ;;  %3627 = vmatpush3.bf16.msra.mxu1 %v3699_v27  ;;  %v3707_v27 = vld [vmem:[%s5726_s7 + $0x28] sm:$0xff]  }
 0x182   : > { %3510 = vmatprep.subr.bf16.mxu0 %v3700_v20  ;;  %3620 = vmatprep.subr.bf16.mxu1 %v3700_v20  ;;  %2844 = vst.msk [vmem:[#allocation2 + $0x8] sm:$0xff] %vm7463_vm6, %v5744_v21  ;;  %v3703_v20 = vld [vmem:[%s5726_s7 + $0x18] sm:$0xff]   ;;  %v7961_v6 = vsub.f32 %v5730_v5, %v5744_v21 }
 0x184   : > { %v1409_v18 = vpop.xlane.xlu1 %1408  ;;  %v1563_v7 = vmul.f32 1.442695, %v7961_v6  ;;  %v5984_v6 = vld [vmem:[#allocation2 + $0xe8] sm:$0xff] }
 0x185   : > { %v5756_v23 = vmax.f32 %v5746_v51, %v1409_v18  ;;  %3511 = vmatpush3.bf16.msra.mxu0 %v3701_v24  ;;  %3628 = vmatpush3.bf16.msra.mxu1 %v3701_v24  ;;  %v3705_v18 = vld [vmem:[%s5726_s7 + $0x20] sm:$0xff]   ;;  %v3706_v24 = vld [vmem:[%s5726_s7 + $0x68] sm:$0xff]  }
 0x186   : > { %3512 = vmatprep.subr.bf16.mxu0 %v3702_v35  ;;  %3621 = vmatprep.subr.bf16.mxu1 %v3702_v35  ;;  %v3711_v35 = vld [vmem:[%s5726_s7 + $0x38] sm:$0xff]   ;;  %3712 = vpow2.f32 %v1563_v7 }
 0x187   : > { %2845 = vst.msk [vmem:[#allocation2 + $0x10] sm:$0xff] %vm7463_vm6, %v5756_v23 }
 0x189   : > { %3513 = vmatpush3.bf16.msra.mxu0 %v3703_v20  ;;  %3629 = vmatpush3.bf16.msra.mxu1 %v3703_v20 }
 0x18a   : > { %3514 = vmatprep.subr.bf16.mxu0 %v3704_v57  ;;  %3622 = vmatprep.subr.bf16.mxu1 %v3704_v57  ;;  %v5772_v57 = vld [vmem:[#allocation2 + $0x80] sm:$0xff] }
 0x18c   : > { %1627 = vperm.xlu1 %3695, %v5734_v26  }
 0x18d   : > { %3515 = vmatpush3.bf16.msra.mxu0 %v3705_v18  ;;  %3630 = vmatpush3.bf16.msra.mxu1 %v3705_v18 }
 0x18e   : > { %3516 = vmatprep.subr.bf16.mxu0 %v3706_v24  ;;  %3623 = vmatprep.subr.bf16.mxu1 %v3706_v24  ;;  %v5777_v24 = vld [vmem:[#allocation2 + $0x88] sm:$0xff] }
 0x191   : > { %3517 = vmatpush3.bf16.msra.mxu0 %v3707_v27  ;;  %3631 = vmatpush3.bf16.msra.mxu1 %v3707_v27 }
 0x192   : > { %3518 = vmatprep.subr.bf16.mxu0 %v3708_v45  ;;  %3624 = vmatprep.subr.bf16.mxu1 %v3708_v45  ;;  %v5784_v45 = vld [vmem:[#allocation2 + $0x90] sm:$0xff] }
 0x195   : > { %1632 = vperm.xlu0 %3694, %v5744_v21   ;;  %3519 = vmatpush3.bf16.msra.mxu0 %v3709_v60 }
 0x196   : > { %3632 = vmatpush3.bf16.msra.mxu1 %v3709_v60  ;;  %3520 = vmatprep.subr.bf16.mxu0 %v3710_v39 }
 0x197   : > { %3625 = vmatprep.subr.bf16.mxu1 %v3710_v39 }
 0x199   : > { %1637 = vperm.xlu0 %3694, %v5756_v23   ;;  %3521 = vmatpush3.bf16.msra.mxu0 %v3711_v35 }
 0x19a   : > { %3633 = vmatpush3.bf16.msra.mxu1 %v3711_v35  ;;  %v5789_v35 = vld [vmem:[#allocation2 + $0x18] sm:$0xff] }
 0x1aa   : > { %v1451_v20 = vpop.xlane.xlu0 %1450 }
 0x1ab   : > { %v5775_v18 = vmax.f32 %v5772_v57, %v1451_v20 }
 0x1ad   : > { %2859 = vst.msk [vmem:[#allocation2 + $0x80] sm:$0xff] %vm7463_vm6, %v5775_v18  ;;  %1707 = vperm.xlu1 %3695, %v5775_v18  }
 0x1b1   : > { %v1454_v60 = vpop.xlane.xlu0 %1453 }
 0x1b2   : > { %v5787_v39 = vmax.f32 %v5777_v24, %v1454_v60 }
 0x1b4   : > { %2860 = vst.msk [vmem:[#allocation2 + $0x88] sm:$0xff] %vm7463_vm6, %v5787_v39  ;;  %1712 = vperm.xlu1 %3695, %v5787_v39  }
 0x1b5   : > { %v1457_v20 = vpop.xlane.xlu1 %1456 }
 0x1b6   : > { %v5797_v27 = vmax.f32 %v5784_v45, %v1457_v20 }
 0x1b8   : > { %2861 = vst.msk [vmem:[#allocation2 + $0x90] sm:$0xff] %vm7463_vm6, %v5797_v27  ;;  %1717 = vperm.xlu0 %3694, %v5797_v27  }
 0x1bb   : > { %v1412_v58 = vpop.xlane.xlu0 %1411 }
 0x1bc   : > { %v5802_v60 = vmax.f32 %v5789_v35, %v1412_v58 }
 0x1be   : > { %2846 = vst.msk [vmem:[#allocation2 + $0x18] sm:$0xff] %vm7463_vm6, %v5802_v60  ;;  %1642 = vperm.xlu1 %3695, %v5802_v60  }
 0x1bf   : > { %v1415_v50 = vpop.xlane.xlu1 %1414  ;;  %v1460_v58 = vpop.xlane.xlu0 %1459 }
 0x1c0   : > { %v5815_v20 = vmax.f32 %v5799_v34, %v1415_v50  ;;  %v5820_v19 = vmax.f32 %v5809_v10, %v1460_v58 }
 0x1c2   : > { %2847 = vst.msk [vmem:[#allocation2 + $0x20] sm:$0xff] %vm7463_vm6, %v5815_v20  ;;  %1647 = vperm.xlu0 %3694, %v5815_v20   ;;  %2862 = vst.msk [vmem:[#allocation2 + $0x98] sm:$0xff] %vm7463_vm6, %v5820_v19  ;;  %1722 = vperm.xlu1 %3695, %v5820_v19  }
 0x1c3   : > { %v1463_v52 = vpop.xlane.xlu1 %1462 }
 0x1c4   : > { %v5833_v50 = vmax.f32 %v5817_v2, %v1463_v52 }
 0x1c6   : > { %2863 = vst.msk [vmem:[#allocation2 + $0xa0] sm:$0xff] %vm7463_vm6, %v5833_v50  ;;  %1727 = vperm.xlu0 %3694, %v5833_v50  }
 0x1c9   : > { %v1418_v58 = vpop.xlane.xlu0 %1417 }
 0x1ca   : > { %v5838_v11 = vmax.f32 %v5825_v3, %v1418_v58 }
 0x1cc   : > { %2848 = vst.msk [vmem:[#allocation2 + $0x28] sm:$0xff] %vm7463_vm6, %v5838_v11  ;;  %1652 = vperm.xlu1 %3695, %v5838_v11  }
 0x1ce   : > { %v1466_v58 = vpop.xlane.xlu0 %1465 }
 0x1cf   : > { %v5856_v31 = vmax.f32 %v5845_v0, %v1466_v58 }
 0x1d0   : > { %v1421_v28 = vpop.xlane.xlu1 %1420 }
 0x1d1   : > { %v5851_v52 = vmax.f32 %v5835_v14, %v1421_v28  ;;  %2864 = vst.msk [vmem:[#allocation2 + $0xa8] sm:$0xff] %vm7463_vm6, %v5856_v31  ;;  %1732 = vperm.xlu1 %3695, %v5856_v31  }
 0x1d3   : > { %2849 = vst.msk [vmem:[#allocation2 + $0x30] sm:$0xff] %vm7463_vm6, %v5851_v52  ;;  %1657 = vperm.xlu0 %3694, %v5851_v52   ;;  %v1535_v5 = vsub.f32 %v5835_v14, %v5851_v52  ;;  %v6001_v14 = vld [vmem:[#allocation2 + $0x78] sm:$0xff] }
 0x1d4   : > { %v1469_v4 = vpop.xlane.xlu1 %1468 }
 0x1d5   : > { %v5869_v28 = vmax.f32 %v5853_v37, %v1469_v4  ;;  %v1573_v52 = vmul.f32 1.442695, %v1535_v5 }
 0x1d7   : > { %v1424_v58 = vpop.xlane.xlu0 %1423  ;;  %2865 = vst.msk [vmem:[#allocation2 + $0xb0] sm:$0xff] %vm7463_vm6, %v5869_v28  ;;  %1737 = vperm.xlu0 %3694, %v5869_v28  }
 0x1d8   : > { %v5874_v48 = vmax.f32 %v5861_v13, %v1424_v58 }
 0x1da   : > { %2850 = vst.msk [vmem:[#allocation2 + $0x38] sm:$0xff] %vm7463_vm6, %v5874_v48  ;;  %1662 = vperm.xlu1 %3695, %v5874_v48  }
 0x1db   : > { %v1472_v54 = vpop.xlane.xlu0 %1471 }
 0x1dc   : > { %v5890_v58 = vmax.f32 %v5879_v42, %v1472_v54 }
 0x1de   : > { %v1427_v46 = vpop.xlane.xlu1 %1426  ;;  %2866 = vst.msk [vmem:[#allocation2 + $0xb8] sm:$0xff] %vm7463_vm6, %v5890_v58  ;;  %1742 = vperm.xlu1 %3695, %v5890_v58  }
 0x1df   : > { %v5885_v4 = vmax.f32 %v5871_v63, %v1427_v46 }
 0x1e1   : > { %2851 = vst.msk [vmem:[#allocation2 + $0x40] sm:$0xff] %vm7463_vm6, %v5885_v4  ;;  %1667 = vperm.xlu0 %3694, %v5885_v4  }
 0x1e2   : > { %v1475_v8 = vpop.xlane.xlu1 %1474 }
 0x1e3   : > { %v5903_v46 = vmax.f32 %v5887_v29, %v1475_v8 }
 0x1e5   : > { %2867 = vst.msk [vmem:[#allocation2 + $0xc0] sm:$0xff] %vm7463_vm6, %v5903_v46  ;;  %1747 = vperm.xlu0 %3694, %v5903_v46  }
 0x1e8   : > { %v1430_v54 = vpop.xlane.xlu0 %1429 }
 0x1e9   : > { %v5908_v56 = vmax.f32 %v5895_v15, %v1430_v54  ;;  %v1433_v41 = vpop.xlane.xlu1 %1432 }
 0x1ea   : > { %v5919_v8 = vmax.f32 %v5905_v62, %v1433_v41 }
 0x1eb   : > { %2852 = vst.msk [vmem:[#allocation2 + $0x48] sm:$0xff] %vm7463_vm6, %v5908_v56  ;;  %1672 = vperm.xlu1 %3695, %v5908_v56  }
 0x1ec   : > { %v1478_v47 = vpop.xlane.xlu0 %1477  ;;  %2853 = vst.msk [vmem:[#allocation2 + $0x50] sm:$0xff] %vm7463_vm6, %v5919_v8  ;;  %1677 = vperm.xlu0 %3694, %v5919_v8  }
 0x1ed   : > { %v5924_v54 = vmax.f32 %v5913_v16, %v1478_v47 }
 0x1ef   : > { %v1481_v12 = vpop.xlane.xlu1 %1480  ;;  %2868 = vst.msk [vmem:[#allocation2 + $0xc8] sm:$0xff] %vm7463_vm6, %v5924_v54  ;;  %1752 = vperm.xlu1 %3695, %v5924_v54  }
 0x1f0   : > { %v5937_v41 = vmax.f32 %v5921_v53, %v1481_v12 }
 0x1f2   : > { %v1436_v47 = vpop.xlane.xlu0 %1435  ;;  %2869 = vst.msk [vmem:[#allocation2 + $0xd0] sm:$0xff] %vm7463_vm6, %v5937_v41  ;;  %1757 = vperm.xlu0 %3694, %v5937_v41  }
 0x1f3   : > { %v5942_v59 = vmax.f32 %v5929_v9, %v1436_v47 }
 0x1f5   : > { %2854 = vst.msk [vmem:[#allocation2 + $0x58] sm:$0xff] %vm7463_vm6, %v5942_v59  ;;  %1682 = vperm.xlu1 %3695, %v5942_v59  }
 0x1f7   : > { %v1439_v33 = vpop.xlane.xlu1 %1438  ;;  %v1484_v43 = vpop.xlane.xlu0 %1483 }
 0x1f8   : > { %v5953_v12 = vmax.f32 %v5939_v49, %v1439_v33  ;;  %v5958_v47 = vmax.f32 %v5947_v17, %v1484_v43  ;;  %v1533_v33 = vsub.f32 %v5799_v34, %v5815_v20 }
 0x1fa   : > { %2855 = vst.msk [vmem:[#allocation2 + $0x60] sm:$0xff] %vm7463_vm6, %v5953_v12  ;;  %1687 = vperm.xlu0 %3694, %v5953_v12   ;;  %2870 = vst.msk [vmem:[#allocation2 + $0xd8] sm:$0xff] %vm7463_vm6, %v5958_v47  ;;  %1762 = vperm.xlu1 %3695, %v5958_v47   ;;  %v1569_v34 = vmul.f32 1.442695, %v1533_v33  ;;  %v1537_v33 = vsub.f32 %v5871_v63, %v5885_v4 }
 0x1fc   : > { %3714 = vpow2.f32 %v1569_v34 }
 0x1ff   : > { %v1487_v40 = vpop.xlane.xlu1 %1486 }
 0x200   : > { %v5974_v43 = vmax.f32 %v5955_v36, %v1487_v40  ;;  %v1442_v22 = vpop.xlane.xlu0 %1441 }
 0x201   : > { %v5979_v25 = vmax.f32 %v5963_v38, %v1442_v22  ;;  %v7962_v22 = vsub.f32 %v5721_v30, %v5734_v26 }
 0x202   : > { %2871 = vst.msk [vmem:[#allocation2 + $0xe0] sm:$0xff] %vm7463_vm6, %v5974_v43  ;;  %1767 = vperm.xlu0 %3694, %v5974_v43  }
 0x203   : > { %2856 = vst.msk [vmem:[#allocation2 + $0x68] sm:$0xff] %vm7463_vm6, %v5979_v25  ;;  %1692 = vperm.xlu1 %3695, %v5979_v25   ;;  %v1561_v21 = vmul.f32 1.442695, %v7962_v22  ;;  %v1534_v22 = vsub.f32 %v5825_v3, %v5838_v11  ;;  %v1536_v3 = vsub.f32 %v5861_v13, %v5874_v48 }
 0x204   : > { %v1445_v40 = vpop.xlane.xlu1 %1444  ;;  %v1490_v61 = vpop.xlane.xlu0 %1489 }
 0x205   : > { %v1511_v20 = vmax.f32 %v5976_v32, %v1445_v40  ;;  %v5998_v7 = vmax.f32 %v5984_v6, %v1490_v61  ;;  %3716 = vpow2.f32 %v1561_v21  ;;  %v7964_v61 = vsub.f32 %v5746_v51, %v5756_v23  ;;  %v6024_v23 = vld [vmem:[#allocation2 + $0xf8] sm:$0xff] }
 0x206   : > { %v1532_v40 = vsub.f32 %v5789_v35, %v5802_v60  ;;  %7966 = vst [vmem:[#allocation133_spill] sm:$0xff] %v6024_v23  ;;  %3718 = vpow2.f32 %v1573_v52  ;;  %v1577_v51 = vmul.f32 1.442695, %v1537_v33  ;;  %v1539_v35 = vsub.f32 %v5905_v62, %v5919_v8 }
 0x207   : > { %2857 = vst.msk [vmem:[#allocation2 + $0x70] sm:$0xff] %vm7463_vm6, %v1511_v20  ;;  %1697 = vperm.xlu0 %3694, %v1511_v20   ;;  %2872 = vst.msk [vmem:[#allocation2 + $0xe8] sm:$0xff] %vm7463_vm6, %v5998_v7  ;;  %1772 = vperm.xlu1 %3695, %v5998_v7   ;;  %v1565_v26 = vmul.f32 1.442695, %v7964_v61  ;;  %v1541_v8 = vsub.f32 %v5939_v49, %v5953_v12  ;;  %v1571_v11 = vmul.f32 1.442695, %v1534_v22 }
 0x208   : > { %v1493_v30 = vpop.xlane.xlu1 %1492  ;;  %v1448_v5 = vpop.xlane.xlu0 %1447  ;;  %v1567_v60 = vmul.f32 1.442695, %v1532_v40  ;;  %v1581_v62 = vmul.f32 1.442695, %v1539_v35  ;;  %v1543_v12 = vsub.f32 %v5976_v32, %v1511_v20  ;;  %v1575_v40 = vmul.f32 1.442695, %v1536_v3 }
 0x209   : > { %v6014_v34 = vmax.f32 %v5995_v44, %v1493_v30  ;;  %v6017_v63 = vmax.f32 %v6001_v14, %v1448_v5  ;;  %3720 = vpow2.f32 %v1565_v26  ;;  %v6033_v30 = vpop.eup %3712  ;;  %v1585_v49 = vmul.f32 1.442695, %v1541_v8  ;;  %v8149_v44 = vld [vmem:[#allocation122_spill] sm:$0xff] }
 0x20a   : > { %7967 = vst [vmem:[#allocation134_spill] sm:$0xff] %v6033_v30  ;;  %3722 = vpow2.f32 %v1577_v51  ;;  %v6048_v33 = vpop.eup %3714  ;;  %v1538_v5 = vsub.f32 %v5895_v15, %v5908_v56  ;;  %v1589_v13 = vmul.f32 1.442695, %v1543_v12  ;;  %v1540_v32 = vsub.f32 %v5929_v9, %v5942_v59 }
 0x20b   : > { %7965 = vst [vmem:[#allocation132_spill] sm:$0xff] %v6014_v34  ;;  %2873 = vst.msk [vmem:[#allocation2 + $0xf0] sm:$0xff] %vm7463_vm6, %v6014_v34  ;;  %1777 = vperm.xlu0 %3694, %v6014_v34   ;;  %1702 = vperm.xlu1 %3695, %v6017_v63   ;;  %3724 = vpow2.f32 %v1567_v60  ;;  %v7975_v56 = vsub.f32 %v5772_v57, %v5775_v18  ;;  %v7978_v9 = vsub.f32 %v5784_v45, %v5797_v27 }
 0x20c   : > { %2858 = vst.msk [vmem:[#allocation2 + $0x78] sm:$0xff] %vm7463_vm6, %v6017_v63  ;;  %v1496_v21 = vpop.xlane.xlu0 %1495  ;;  %7969 = vst [vmem:[#allocation136_spill] sm:$0xff] %v6048_v33  ;;  %3726 = vpow2.f32 %v1581_v62  ;;  %v1579_v35 = vmul.f32 1.442695, %v1538_v5  ;;  %v1583_v22 = vmul.f32 1.442695, %v1540_v32  ;;  %v1544_v8 = vsub.f32 %v6001_v14, %v6017_v63 }
 0x20d   : > { %v6036_v61 = vmax.f32 %v6024_v23, %v1496_v21  ;;  %3728 = vpow2.f32 %v1571_v11  ;;  %v1593_v15 = vmul.f32 1.442695, %v7975_v56  ;;  %v1542_v21 = vsub.f32 %v5963_v38, %v5979_v25  ;;  %v8150_v23 = vld [vmem:[#allocation124_spill] sm:$0xff] }
 0x20e   : > { %3730 = vpow2.f32 %v1585_v49  ;;  %v1597_v57 = vmul.f32 1.442695, %v7978_v9  ;;  %v7981_v38 = vsub.f32 %v5817_v2, %v5833_v50  ;;  %v1551_v27 = vsub.f32 %v5853_v37, %v5869_v28 }
 0x20f   : > { %7968 = vst [vmem:[#allocation135_spill] sm:$0xff] %v6036_v61  ;;  %2305 = vperm.xlu0 %3694, %v6033_v30   ;;  %2874 = vst.msk [vmem:[#allocation2 + $0xf8] sm:$0xff] %vm7463_vm6, %v6036_v61  ;;  %1782 = vperm.xlu1 %3695, %v6036_v61   ;;  %v6050_v26 = vpop.eup %3716  ;;  %3732 = vpow2.f32 %v1575_v40  ;;  %v1587_v18 = vmul.f32 1.442695, %v1542_v21  ;;  %v1591_v45 = vmul.f32 1.442695, %v1544_v8  ;;  %v1553_v12 = vsub.f32 %v5887_v29, %v5903_v46 }
 0x210   : > { %7970 = vst [vmem:[#allocation137_spill] sm:$0xff] %v6050_v26  ;;  %v6057_v51 = vpop.eup %3718  ;;  %3734 = vpow2.f32 %v1589_v13  ;;  %v1601_v3 = vmul.f32 1.442695, %v7981_v38  ;;  %v1605_v63 = vmul.f32 1.442695, %v1551_v27  ;;  %v7984_v2 = vsub.f32 %v5777_v24, %v5787_v39  ;;  %v7995_v21 = vld [vmem:[#allocation18_spill] sm:$0xff] }
 0x211   : > { %7971 = vst [vmem:[#allocation138_spill] sm:$0xff] %v6057_v51  ;;  %3736 = vpow2.f32 %v1579_v35  ;;  %v1609_v40 = vmul.f32 1.442695, %v1553_v12  ;;  %v1555_v5 = vsub.f32 %v5921_v53, %v5937_v41  ;;  %v7987_v29 = vsub.f32 %v5809_v10, %v5820_v19  ;;  %v7999_v38 = vld [vmem:[#allocation20_spill] sm:$0xff]  ;;  %v8000_v27 = vld [vmem:[#allocation21_spill] sm:$0xff] }
 0x212   : > { %3738 = vpow2.f32 %v1593_v15  ;;  %v1595_v37 = vmul.f32 1.442695, %v7984_v2  ;;  %v1557_v35 = vsub.f32 %v5955_v36, %v5974_v43  ;;  %v7990_v53 = vsub.f32 %v5845_v0, %v5856_v31  ;;  %v1628_v15 = vpop.permute.xlu1 %1627  ;;  %v7994_v43 = vld [vmem:[#allocation17_spill] sm:$0xff] }
 0x213   : > { %2320 = vperm.xlu0 %3694, %v6048_v33   ;;  %2300 = vperm.xlu1 %3695, %v6050_v26   ;;  %v6059_v48 = vpop.eup %3720  ;;  %3740 = vpow2.f32 %v1583_v22  ;;  %v1599_v24 = vmul.f32 1.442695, %v7987_v29  ;;  %v1613_v13 = vmul.f32 1.442695, %v1555_v5  ;;  %v7993_v32 = vsub.f32 %v5879_v42, %v5890_v58  ;;  %v8132_v30 = vld [vmem:[#allocation121_spill] sm:$0xff] }
 0x214   : > { %7972 = vst [vmem:[#allocation139_spill] sm:$0xff] %v6059_v48  ;;  %v6065_v20 = vpop.eup %3722  ;;  %3742 = vpow2.f32 %v1597_v57  ;;  %v1603_v41 = vmul.f32 1.442695, %v7990_v53  ;;  %v1617_v36 = vmul.f32 1.442695, %v1557_v35  ;;  %v1785_v22 = vsub.f32 %v7994_v43, %v1628_v15  ;;  %v1633_v8 = vpop.permute.xlu0 %1632  ;;  %v8012_v43 = vld [vmem:[#allocation8_spill] sm:$0xff] }
 0x215   : > { %7973 = vst [vmem:[#allocation140_spill] sm:$0xff] %v6065_v20  ;;  %v6067_v60 = vpop.eup %3724  ;;  %3744 = vpow2.f32 %v1587_v18  ;;  %v1607_v56 = vmul.f32 1.442695, %v7993_v32  ;;  %v1786_v9 = vsub.f32 %v7995_v21, %v1628_v15  ;;  %v7996_v31 = vsub.f32 %v5913_v16, %v5924_v54  ;;  %v8010_v32 = vld [vmem:[#allocation13_spill] sm:$0xff] }
 0x216   : > { %7974 = vst [vmem:[#allocation141_spill] sm:$0xff] %v6067_v60  ;;  %v6076_v62 = vpop.eup %3726  ;;  %3746 = vpow2.f32 %v1601_v3  ;;  %v1849_v42 = vmul.f32 1.442695, %v1785_v22  ;;  %v1787_v3 = vsub.f32 %v7999_v38, %v1633_v8  ;;  %v1556_v16 = vsub.f32 %v5947_v17, %v5958_v47  ;;  %v8014_v22 = vld [vmem:[#allocation12_spill] sm:$0xff] }
 0x217   : > { %2330 = vperm.xlu0 %3694, %v6057_v51   ;;  %2310 = vperm.xlu1 %3695, %v6059_v48   ;;  %7976 = vst [vmem:[#allocation142_spill] sm:$0xff] %v6076_v62  ;;  %v6078_v59 = vpop.eup %3728  ;;  %3748 = vpow2.f32 %v1591_v45  ;;  %v1611_v0 = vmul.f32 1.442695, %v7996_v31  ;;  %v1851_v18 = vmul.f32 1.442695, %v1786_v9  ;;  %v1788_v45 = vsub.f32 %v8000_v27, %v1633_v8  ;;  %v8017_v9 = vld [vmem:[#allocation24_spill] sm:$0xff] }
 0x218   : > { %7977 = vst [vmem:[#allocation143_spill] sm:$0xff] %v6078_v59  ;;  %v6087_v11 = vpop.eup %3730  ;;  %3750 = vpow2.f32 %v1605_v63  ;;  %v1853_v63 = vmul.f32 1.442695, %v1787_v3  ;;  %vm8011_vm9 = vnez %v8010_v32  ;;  %v1638_v15 = vpop.permute.xlu0 %1637  ;;  %vm8013_vm6 = vnez %v8012_v43  ;;  %v8020_v27 = vld [vmem:[#allocation64_spill] sm:$0xff] }
 0x219   : > { %7979 = vst [vmem:[#allocation144_spill] sm:$0xff] %v6087_v11  ;;  %v6089_v25 = vpop.eup %3732  ;;  %3752 = vpow2.f32 %v1595_v37  ;;  %v1855_v12 = vmul.f32 1.442695, %v1788_v45  ;;  %v1615_v37 = vmul.f32 1.442695, %v1556_v16  ;;  %vm8015_vm1 = vnez %v8014_v22  ;;  %v8021_v16 = vld [vmem:[#allocation65_spill] sm:$0xff] }
 0x21a   : > { %7980 = vst [vmem:[#allocation145_spill] sm:$0xff] %v6089_v25  ;;  %v6098_v49 = vpop.eup %3734  ;;  %3754 = vpow2.f32 %v1609_v40  ;;  %v1558_v40 = vsub.f32 %v5984_v6, %v5998_v7  ;;  %vm3408_vm0 = vmpackc.low %vm8015_vm1, %vm8013_vm6  ;;  %v1789_v31 = vsub.f32 %v8017_v9, %v1638_v15 }
 0x21b   : > { %2340 = vperm.xlu0 %3694, %v6065_v20   ;;  %2315 = vperm.xlu1 %3695, %v6067_v60   ;;  %7982 = vst [vmem:[#allocation146_spill] sm:$0xff] %v6098_v49  ;;  %v6100_v14 = vpop.eup %3736  ;;  %3756 = vpow2.f32 %v1599_v24  ;;  %v8108_v20 = vld [vmem:[#allocation34_spill] sm:$0xff]  ;;  %v8137_v60 = vld [vmem:[#allocation55_spill] sm:$0xff] }
 0x21c   : > { %7983 = vst [vmem:[#allocation147_spill] sm:$0xff] %v6100_v14  ;;  %v6109_v50 = vpop.eup %3738  ;;  %3758 = vpow2.f32 %v1613_v13  ;;  %v1619_v29 = vmul.f32 1.442695, %v1558_v40  ;;  %v1857_v8 = vmul.f32 1.442695, %v1789_v31  ;;  %v8022_v31 = vld [vmem:[#allocation70_spill] sm:$0xff] }
 0x21d   : > { %7985 = vst [vmem:[#allocation148_spill] sm:$0xff] %v6109_v50  ;;  %v6111_v28 = vpop.eup %3740  ;;  %3760 = vpow2.f32 %v1603_v41  ;;  %v8008_v41 = vld [vmem:[#allocation9_spill] sm:$0xff] }
 0x21e   : > { %7986 = vst [vmem:[#allocation149_spill] sm:$0xff] %v6111_v28  ;;  %v6120_v39 = vpop.eup %3742  ;;  %3762 = vpow2.f32 %v1607_v56  ;;  %vm8009_vm2 = vnez %v8008_v41  ;;  %v8028_v41 = vld [vmem:[#allocation74_spill] sm:$0xff] }
 0x21f   : > { %2350 = vperm.xlu0 %3694, %v6076_v62   ;;  %2325 = vperm.xlu1 %3695, %v6078_v59   ;;  %7988 = vst [vmem:[#allocation150_spill] sm:$0xff] %v6120_v39  ;;  %v6122_v46 = vpop.eup %3744  ;;  %3764 = vpow2.f32 %v1617_v36  ;;  %vm3405_vm5 = vmpackc.low %vm8011_vm9, %vm8009_vm2  ;;  %v8107_v62 = vld [vmem:[#allocation115_spill] sm:$0xff] }
 0x220   : > { %7989 = vst [vmem:[#allocation151_spill] sm:$0xff] %v6122_v46  ;;  %v6131_v19 = vpop.eup %3746  ;;  %3766 = vpow2.f32 %v1611_v0  ;;  %v8018_v0 = vld [vmem:[#allocation25_spill] sm:$0xff] }
 0x221   : > { %7991 = vst [vmem:[#allocation152_spill] sm:$0xff] %v6131_v19  ;;  %v6133_v10 = vpop.eup %3748  ;;  %3768 = vpow2.f32 %v1849_v42  ;;  %v1790_v42 = vsub.f32 %v8018_v0, %v1638_v15 }
 0x222   : > { %7992 = vst [vmem:[#allocation153_spill] sm:$0xff] %v6133_v10  ;;  %v6145_v57 = vpop.eup %3750  ;;  %3770 = vpow2.f32 %v1851_v18 }
 0x223   : > { %2360 = vperm.xlu0 %3694, %v6087_v11   ;;  %2335 = vperm.xlu1 %3695, %v6089_v25   ;;  %7997 = vst [vmem:[#allocation17_spill] sm:$0xff] %v6145_v57  ;;  %v6147_v58 = vpop.eup %3752  ;;  %3772 = vpow2.f32 %v1853_v63  ;;  %v1859_v38 = vmul.f32 1.442695, %v1790_v42  ;;  %v8023_v42 = vld [vmem:[#allocation71_spill] sm:$0xff]  ;;  %v8111_v25 = vld [vmem:[#allocation33_spill] sm:$0xff] }
 0x224   : > { %7998 = vst [vmem:[#allocation18_spill] sm:$0xff] %v6147_v58  ;;  %v6155_v54 = vpop.eup %3754  ;;  %3774 = vpow2.f32 %v1855_v12 }
 0x225   : > { %8001 = vst [vmem:[#allocation20_spill] sm:$0xff] %v6155_v54  ;;  %v6157_v2 = vpop.eup %3756  ;;  %3776 = vpow2.f32 %v1615_v37 }
 0x226   : > { %8002 = vst [vmem:[#allocation21_spill] sm:$0xff] %v6157_v2  ;;  %v6163_v5 = vpop.eup %3758  ;;  %3778 = vpow2.f32 %v1619_v29 }
 0x227   : > { %2370 = vperm.xlu0 %3694, %v6098_v49   ;;  %2345 = vperm.xlu1 %3695, %v6100_v14   ;;  %8003 = vst [vmem:[#allocation154_spill] sm:$0xff] %v6163_v5  ;;  %v6165_v17 = vpop.eup %3760  ;;  %3780 = vpow2.f32 %v1857_v8 }
 0x228   : > { %8004 = vst [vmem:[#allocation155_spill] sm:$0xff] %v6165_v17  ;;  %v6169_v47 = vpop.eup %3762  ;;  %3782 = vpow2.f32 %v1859_v38 }
 0x229   : > { %8005 = vst [vmem:[#allocation156_spill] sm:$0xff] %v6169_v47  ;;  %v6171_v24 = vpop.eup %3764 }
 0x22a   : > { %8006 = vst [vmem:[#allocation157_spill] sm:$0xff] %v6171_v24  ;;  %v6173_v13 = vpop.eup %3766 }
 0x22b   : > { %2380 = vperm.xlu0 %3694, %v6109_v50   ;;  %2355 = vperm.xlu1 %3695, %v6111_v28   ;;  %8007 = vst [vmem:[#allocation158_spill] sm:$0xff] %v6173_v13  ;;  %v3769_v6 = vpop.eup %3768  ;;  %v8085_v50 = vld [vmem:[#allocation104_spill] sm:$0xff] }
 0x22c   : > { %v3771_v7 = vpop.eup %3770  ;;  %v1708_v3 = vpop.permute.xlu1 %1707 }
 0x22d   : > { %v6177_v35 = vpop.eup %3772  ;;  %v1817_v45 = vsub.f32 %v8020_v27, %v1708_v3  ;;  %v1818_v63 = vsub.f32 %v8021_v16, %v1708_v3  ;;  %v1977_v3 = vsel %vm8013_vm6, %v3769_v6, 0.0  ;;  %v8024_v27 = vld [vmem:[#allocation35_spill] sm:$0xff]  ;;  %v8025_v16 = vld [vmem:[#allocation36_spill] sm:$0xff] }
 0x22e   : > { %v6179_v53 = vpop.eup %3774  ;;  %v3409_v56 = vpack.c.bf16 %v6177_v35, %v3769_v6  ;;  %v8026_v6 = vld [vmem:[#allocation37_spill] sm:$0xff] }
 0x22f   : > { %2390 = vperm.xlu0 %3694, %v6120_v39   ;;  %2365 = vperm.xlu1 %3695, %v6122_v46   ;;  %v3406_v36 = vpack.c.bf16 %v6179_v53, %v3771_v7  ;;  %v6192_v21 = vpop.eup %3776  ;;  %v1913_v12 = vmul.f32 1.442695, %v1817_v45  ;;  %v1915_v37 = vmul.f32 1.442695, %v1818_v63  ;;  %v8086_v46 = vld [vmem:[#allocation107_spill] sm:$0xff] }
 0x230   : > { %8016 = vst [vmem:[#allocation9_spill] sm:$0xff] %v6192_v21  ;;  %v6197_v18 = vpop.eup %3778 }
 0x231   : > { %3407 = vmatprep.mubr.msk.bf16.mxu0 %vm3405_vm5, %v3406_v36  ;;  %8019 = vst [vmem:[#allocation13_spill] sm:$0xff] %v6197_v18  ;;  %3784 = vpow2.f32 %v1913_v12  ;;  %v6212_v63 = vpop.eup %3780 }
 0x232   : > { %3410 = vmatmul.mubr.msk.bf16.vlgmr.msra.gmra.mrb[0].mxu0 %vm3408_vm0, %v3409_v56  ;;  %3786 = vpow2.f32 %v1915_v37 }
 0x233   : > { %2400 = vperm.xlu0 %3694, %v6131_v19   ;;  %2375 = vperm.xlu1 %3695, %v6133_v10   ;;  %v1713_v40 = vpop.permute.xlu1 %1712 }
 0x234   : > { %v1819_v29 = vsub.f32 %v5068_v55, %v1713_v40  ;;  %v1820_v56 = vsub.f32 %v5072_v1, %v1713_v40  ;;  %v1978_v1 = vsel %vm8009_vm2, %v3771_v7, 0.0  ;;  %v6214_v40 = vpop.eup %3782 }
 0x236   : > { %v1917_v15 = vmul.f32 1.442695, %v1819_v29  ;;  %v1919_v36 = vmul.f32 1.442695, %v1820_v56 }
 0x237   : > { %2410 = vperm.xlu0 %3694, %v6145_v57   ;;  %2385 = vperm.xlu1 %3695, %v6147_v58   ;;  %v1718_v9 = vpop.permute.xlu0 %1717  ;;  %v8059_v57 = vld [vmem:[#allocation79_spill] sm:$0xff] }
 0x238   : > { %v1821_v0 = vsub.f32 %v8022_v31, %v1718_v9  ;;  %v1822_v8 = vsub.f32 %v8023_v42, %v1718_v9  ;;  %3788 = vpow2.f32 %v1917_v15  ;;  %v8027_v15 = vld [vmem:[#allocation38_spill] sm:$0xff]  ;;  %v2105_v42 = vadd.f32 %v1978_v1, %v1977_v3 }
 0x239   : > { %3790 = vpow2.f32 %v1919_v36  ;;  %v8030_v36 = vld [vmem:[#allocation14_spill] sm:$0xff] }
 0x23a   : > { %v1921_v12 = vmul.f32 1.442695, %v1821_v0  ;;  %v1923_v37 = vmul.f32 1.442695, %v1822_v8  ;;  %vm8031_vm0 = vnez %v8030_v36 }
 0x23b   : > { %2420 = vperm.xlu0 %3694, %v6155_v54   ;;  %2395 = vperm.xlu1 %3695, %v6157_v2   ;;  %v1981_v0 = vsel %vm8031_vm0, %v6212_v63, 0.0  ;;  %v8058_v54 = vld [vmem:[#allocation78_spill] sm:$0xff] }
 0x23c   : > { %3792 = vpow2.f32 %v1921_v12 }
 0x23d   : > { %v1643_v38 = vpop.permute.xlu1 %1642  ;;  %3794 = vpow2.f32 %v1923_v37 }
 0x23e   : > { %v1791_v45 = vsub.f32 %v8024_v27, %v1643_v38  ;;  %v1792_v55 = vsub.f32 %v8025_v16, %v1643_v38  ;;  %v8029_v27 = vld [vmem:[#allocation75_spill] sm:$0xff] }
 0x23f   : > { %2430 = vperm.xlu0 %3694, %v6163_v5   ;;  %2405 = vperm.xlu1 %3695, %v6165_v17  }
 0x240   : > { %v1861_v29 = vmul.f32 1.442695, %v1791_v45  ;;  %v1863_v56 = vmul.f32 1.442695, %v1792_v55  ;;  %v8032_v55 = vld [vmem:[#allocation15_spill] sm:$0xff] }
 0x241   : > { %v1648_v9 = vpop.permute.xlu0 %1647  ;;  %v1723_v38 = vpop.permute.xlu1 %1722  ;;  %vm8033_vm6 = vnez %v8032_v55  ;;  %v8064_v55 = vld [vmem:[#allocation61_spill] sm:$0xff] }
 0x242   : > { %v1793_v43 = vsub.f32 %v8026_v6, %v1648_v9  ;;  %v1794_v31 = vsub.f32 %v8027_v15, %v1648_v9  ;;  %v1823_v7 = vsub.f32 %v8028_v41, %v1723_v38  ;;  %v1824_v16 = vsub.f32 %v8029_v27, %v1723_v38  ;;  %v8034_v9 = vld [vmem:[#allocation80_spill] sm:$0xff]  ;;  %v8035_v15 = vld [vmem:[#allocation81_spill] sm:$0xff]  ;;  %v6228_v27 = vpop.eup %3784 }
 0x243   : > { %2440 = vperm.xlu0 %3694, %v6171_v24   ;;  %2415 = vperm.xlu1 %3695, %v6169_v47   ;;  %3796 = vpow2.f32 %v1861_v29  ;;  %v1982_v12 = vsel %vm8033_vm6, %v6214_v40, 0.0  ;;  %v8036_v29 = vld [vmem:[#allocation40_spill] sm:$0xff]  ;;  %v8054_v47 = vld [vmem:[#allocation23_spill] sm:$0xff] }
 0x244   : > { %v1865_v8 = vmul.f32 1.442695, %v1793_v43  ;;  %v1867_v45 = vmul.f32 1.442695, %v1794_v31  ;;  %3798 = vpow2.f32 %v1863_v56  ;;  %v1925_v3 = vmul.f32 1.442695, %v1823_v7 }
 0x245   : > { %v1927_v1 = vmul.f32 1.442695, %v1824_v16  ;;  %v1728_v37 = vpop.permute.xlu0 %1727  ;;  %v8037_v31 = vld [vmem:[#allocation41_spill] sm:$0xff]  ;;  %v2111_v52 = vadd.f32 %v1982_v12, %v1981_v0  ;;  %v1979_v7 = vsel %vm8015_vm1, %v6177_v35, 0.0  ;;  %v1980_v0 = vsel %vm8011_vm9, %v6179_v53, 0.0  ;;  %v8051_v24 = vld [vmem:[#allocation92_spill] sm:$0xff] }
 0x246   : > { %3800 = vpow2.f32 %v1865_v8  ;;  %v1825_v6 = vsub.f32 %v8034_v9, %v1728_v37  ;;  %v1826_v38 = vsub.f32 %v8035_v15, %v1728_v37  ;;  %v8040_v35 = vld [vmem:[#allocation45_spill] sm:$0xff]  ;;  %vm8055_vm13 = vnez %v8054_v47 }
 0x247   : > { %2425 = vperm.xlu1 %3695, %v6173_v13   ;;  %3802 = vpow2.f32 %v1867_v45  ;;  %vm8041_vm1 = vnez %v8040_v35  ;;  %v8045_v53 = vld [vmem:[#allocation89_spill] sm:$0xff] }
 0x248   : > { %3804 = vpow2.f32 %v1925_v3  ;;  %v1929_v56 = vmul.f32 1.442695, %v1825_v6  ;;  %v8038_v3 = vld [vmem:[#allocation42_spill] sm:$0xff]  ;;  %v8039_v6 = vld [vmem:[#allocation43_spill] sm:$0xff] }
 0x249   : > { %3806 = vpow2.f32 %v1927_v1 }
 0x24a   : > { %3808 = vpow2.f32 %v1929_v56 }
 0x24b   : > { %2435 = vperm.xlu1 %3695, %v6192_v21   ;;  %v1653_v41 = vpop.permute.xlu1 %1652 }
 0x24c   : > { %v1795_v43 = vsub.f32 %v8036_v29, %v1653_v41  ;;  %v1796_v4 = vsub.f32 %v8037_v31, %v1653_v41  ;;  %v8046_v29 = vld [vmem:[#allocation44_spill] sm:$0xff] }
 0x24d   : > { %vm8047_vm9 = vnez %v8046_v29 }
 0x24e   : > { %v1869_v8 = vmul.f32 1.442695, %v1795_v43  ;;  %v1871_v37 = vmul.f32 1.442695, %v1796_v4  ;;  %v8048_v43 = vld [vmem:[#allocation46_spill] sm:$0xff] }
 0x24f   : > { %2445 = vperm.xlu1 %3695, %v6197_v18   ;;  %v6232_v18 = vpop.eup %3786  ;;  %vm8049_vm12 = vnez %v8048_v43 }
 0x250   : > { %v6237_v16 = vpop.eup %3788  ;;  %v1733_v22 = vpop.permute.xlu1 %1732  ;;  %vm3456_vm11 = vmpackc.low %vm8049_vm12, %vm8047_vm9 }
 0x251   : > { %v6242_v12 = vpop.eup %3790  ;;  %v3457_v4 = vpack.c.bf16 %v6237_v16, %v6228_v27  ;;  %v1828_v1 = vsub.f32 %v8045_v53, %v1733_v22  ;;  %v8050_v53 = vld [vmem:[#allocation91_spill] sm:$0xff] }
 0x252   : > { %v1658_v45 = vpop.permute.xlu0 %1657  ;;  %v3454_v41 = vpack.c.bf16 %v6242_v12, %v6232_v18  ;;  %v6260_v31 = vpop.eup %3792 }
 0x253   : > { %v1797_v9 = vsub.f32 %v8038_v3, %v1658_v45  ;;  %v1798_v15 = vsub.f32 %v8039_v6, %v1658_v45  ;;  %v6262_v3 = vpop.eup %3794  ;;  %v1935_v6 = vmul.f32 1.442695, %v1828_v1  ;;  %v8053_v1 = vld [vmem:[#allocation49_spill] sm:$0xff] }
 0x255   : > { %v1873_v56 = vmul.f32 1.442695, %v1797_v9  ;;  %v1875_v45 = vmul.f32 1.442695, %v1798_v15  ;;  %v2108_v15 = vadd.f32 %v1980_v0, %v1979_v7 }
 0x259   : > { %v1663_v9 = vpop.permute.xlu1 %1662 }
 0x25a   : > { %v1800_v5 = vsub.f32 %v8053_v1, %v1663_v9 }
 0x262   : > { %2106 = vadd.xlane.f32.xlu0 %v2105_v42  ;;  %v1931_v42 = vmul.f32 1.442695, %v1826_v38  ;;  %v8042_v38 = vld [vmem:[#allocation47_spill] sm:$0xff] }
 0x263   : > { %vm8043_vm2 = vnez %v8042_v38 }
 0x264   : > { %vm3453_vm5 = vmpackc.low %vm8043_vm2, %vm8041_vm1  ;;  %3810 = vpow2.f32 %v1931_v42 }
 0x265   : > { %3812 = vpow2.f32 %v1869_v8  ;;  %3455 = vmatprep.mubr.msk.bf16.mxu1 %vm3453_vm5, %v3454_v41  ;;  %vm3411_vm5 = vmpackc.low %vm8055_vm13, %vm8033_vm6  ;;  %v8056_v41 = vld [vmem:[#allocation22_spill] sm:$0xff] }
 0x266   : > { %2112 = vadd.xlane.f32.xlu0 %v2111_v52  ;;  %v8044_v52 = vld [vmem:[#allocation88_spill] sm:$0xff]  ;;  %3814 = vpow2.f32 %v1871_v37  ;;  %3458 = vmatmul.mubr.msk.bf16.vlgmr.msra.gmra.mrb[0].mxu1 %vm3456_vm11, %v3457_v4  ;;  %vm8057_vm3 = vnez %v8056_v41  ;;  %v8074_v41 = vld [vmem:[#allocation26_spill] sm:$0xff] }
 0x267   : > { %v1827_v32 = vsub.f32 %v8044_v52, %v1733_v22  ;;  %v1738_v52 = vpop.permute.xlu0 %1737  ;;  %v3797_v22 = vpop.eup %3796  ;;  %3816 = vpow2.f32 %v1873_v56  ;;  %v8052_v37 = vld [vmem:[#allocation48_spill] sm:$0xff]  ;;  %vm8070_vm6 = vmpackc.low %vm8057_vm3, %vm8031_vm0 }
 0x268   : > { %v1829_v21 = vsub.f32 %v8050_v53, %v1738_v52  ;;  %v1830_v8 = vsub.f32 %v8051_v24, %v1738_v52  ;;  %v3799_v13 = vpop.eup %3798  ;;  %3818 = vpow2.f32 %v1875_v45  ;;  %v1983_v56 = vsel %vm8057_vm3, %v3797_v22, 0.0 }
 0x269   : > { %v1933_v42 = vmul.f32 1.442695, %v1827_v32  ;;  %v1799_v32 = vsub.f32 %v8052_v37, %v1663_v9  ;;  %v6279_v53 = vpop.eup %3800  ;;  %v3412_v7 = vpack.c.bf16 %v3799_v13, %v6214_v40  ;;  %v1879_v52 = vmul.f32 1.442695, %v1800_v5  ;;  %v1743_v5 = vpop.permute.xlu1 %1742  ;;  %v8060_v40 = vld [vmem:[#allocation96_spill] sm:$0xff] }
 0x26a   : > { %v1937_v24 = vmul.f32 1.442695, %v1829_v21  ;;  %v1939_v4 = vmul.f32 1.442695, %v1830_v8  ;;  %v6282_v0 = vpop.eup %3802  ;;  %v1984_v37 = vsel %vm8055_vm13, %v3799_v13, 0.0  ;;  %v8062_v8 = vld [vmem:[#allocation59_spill] sm:$0xff]  ;;  %vm8065_vm13 = vnez %v8064_v55 }
 0x26b   : > { %3820 = vpow2.f32 %v1933_v42  ;;  %v1877_v45 = vmul.f32 1.442695, %v1799_v32  ;;  %v1668_v9 = vpop.permute.xlu0 %1667  ;;  %v6286_v1 = vpop.eup %3804  ;;  %3413 = vmatprep.mubr.msk.bf16.mxu0 %vm3411_vm5, %v3412_v7  ;;  %v2114_v21 = vadd.f32 %v1984_v37, %v1983_v56  ;;  %vm8063_vm4 = vnez %v8062_v8  ;;  %v8066_v7 = vld [vmem:[#allocation58_spill] sm:$0xff] }
 0x26c   : > { %3822 = vpow2.f32 %v1935_v6  ;;  %v1801_v17 = vsub.f32 %v8058_v54, %v1668_v9  ;;  %v1802_v42 = vsub.f32 %v8059_v57, %v1668_v9  ;;  %v6299_v13 = vpop.eup %3806  ;;  %v3415_v54 = vpack.c.bf16 %v3797_v22, %v6212_v63  ;;  %v8061_v6 = vld [vmem:[#allocation101_spill] sm:$0xff]  ;;  %v8068_v63 = vld [vmem:[#allocation60_spill] sm:$0xff]  ;;  %vm8073_vm1 = vmpackc.low %vm8065_vm13, %vm8063_vm4 }
 0x26d   : > { %3824 = vpow2.f32 %v1937_v24  ;;  %v1831_v57 = vsub.f32 %v8060_v40, %v1743_v5  ;;  %v1832_v47 = vsub.f32 %v8061_v6, %v1743_v5  ;;  %v6308_v32 = vpop.eup %3808  ;;  %2115 = vadd.xlane.f32.xlu0 %v2114_v21  ;;  %vm8067_vm5 = vnez %v8066_v7  ;;  %v8071_v21 = vld [vmem:[#allocation102_spill] sm:$0xff]  ;;  %v8072_v40 = vld [vmem:[#allocation103_spill] sm:$0xff]  ;;  %v1673_v36 = vpop.permute.xlu1 %1672 }
 0x26e   : > { %3826 = vpow2.f32 %v1939_v4  ;;  %v1881_v56 = vmul.f32 1.442695, %v1801_v17  ;;  %v1883_v24 = vmul.f32 1.442695, %v1802_v42  ;;  %v3460_v4 = vpack.c.bf16 %v6299_v13, %v6262_v3  ;;  %v6316_v22 = vpop.eup %3810  ;;  %3416 = vmatmul.mubr.msk.bf16.gmra.mrb[4].mxu0 %vm8070_vm6, %v3415_v54 }
 0x26f   : > { %3828 = vpow2.f32 %v1877_v45  ;;  %vm8069_vm11 = vnez %v8068_v63  ;;  %v1941_v17 = vmul.f32 1.442695, %v1831_v57  ;;  %v1943_v45 = vmul.f32 1.442695, %v1832_v47  ;;  %v1748_v9 = vpop.permute.xlu0 %1747  ;;  %v3813_v42 = vpop.eup %3812  ;;  %v8077_v57 = vld [vmem:[#allocation83_spill] sm:$0xff] }
 0x270   : > { %3830 = vpow2.f32 %v1879_v52  ;;  %v3463_v37 = vpack.c.bf16 %v6286_v1, %v6260_v31  ;;  %v1833_v5 = vsub.f32 %v8071_v21, %v1748_v9  ;;  %v1834_v6 = vsub.f32 %v8072_v40, %v1748_v9  ;;  %3461 = vmatprep.mubr.msk.bf16.mxu1 %vm8073_vm1, %v3460_v4  ;;  %v3815_v54 = vpop.eup %3814  ;;  %vm8076_vm0 = vmpackc.low %vm8069_vm11, %vm8067_vm5  ;;  %v8079_v21 = vld [vmem:[#allocation27_spill] sm:$0xff]  ;;  %v8081_v4 = vld [vmem:[#allocation29_spill] sm:$0xff] }
 0x271   : > { %3832 = vpow2.f32 %v1881_v56  ;;  %vm8075_vm3 = vnez %v8074_v41  ;;  %v1803_v47 = vsub.f32 %v8077_v57, %v1673_v36  ;;  %v8078_v56 = vld [vmem:[#allocation84_spill] sm:$0xff]  ;;  %vm8080_vm1 = vnez %v8079_v21  ;;  %v8095_v21 = vld [vmem:[#allocation66_spill] sm:$0xff] }
 0x272   : > { %v1985_v52 = vsel %vm8075_vm3, %v6279_v53, 0.0  ;;  %3834 = vpow2.f32 %v1883_v24  ;;  %3464 = vmatmul.mubr.msk.bf16.gmra.mrb[4].mxu1 %vm8076_vm0, %v3463_v37  ;;  %v1804_v9 = vsub.f32 %v8078_v56, %v1673_v36  ;;  %vm8082_vm6 = vnez %v8081_v4  ;;  %v8083_v40 = vld [vmem:[#allocation28_spill] sm:$0xff]  ;;  %v6348_v24 = vpop.eup %3816 }
 0x273   : > { %2109 = vadd.xlane.f32.xlu1 %v2108_v15  ;;  %vm3417_vm13 = vmpackc.low %vm8082_vm6, %vm8080_vm1  ;;  %vm8084_vm4 = vnez %v8083_v40  ;;  %3836 = vpow2.f32 %v1941_v17  ;;  %v1945_v19 = vmul.f32 1.442695, %v1833_v5  ;;  %v1947_v58 = vmul.f32 1.442695, %v1834_v6  ;;  %v6351_v39 = vpop.eup %3818  ;;  %v1678_v57 = vpop.permute.xlu0 %1677 }
 0x274   : > { %v1987_v2 = vsel %vm8084_vm4, %v3813_v42, 0.0  ;;  %v3418_v37 = vpack.c.bf16 %v3815_v54, %v6282_v0  ;;  %3838 = vpow2.f32 %v1943_v45  ;;  %v1885_v36 = vmul.f32 1.442695, %v1803_v47  ;;  %vm3420_vm0 = vmpackc.low %vm8084_vm4, %vm8075_vm3  ;;  %v1753_v5 = vpop.permute.xlu1 %1752 }
 0x275   : > { %v1887_v15 = vmul.f32 1.442695, %v1804_v9  ;;  %v1988_v56 = vsel %vm8082_vm6, %v3815_v54, 0.0  ;;  %v6355_v10 = vpop.eup %3820  ;;  %3840 = vpow2.f32 %v1945_v19  ;;  %v1805_v49 = vsub.f32 %v8085_v50, %v1678_v57  ;;  %v8087_v19 = vld [vmem:[#allocation108_spill] sm:$0xff]  ;;  %v8088_v54 = vld [vmem:[#allocation109_spill] sm:$0xff] }
 0x276   : > { %v1806_v17 = vsub.f32 %v8086_v46, %v1678_v57  ;;  %3419 = vmatprep.mubr.msk.bf16.mxu0 %vm3417_vm13, %v3418_v37  ;;  %v2120_v45 = vadd.f32 %v1988_v56, %v1987_v2  ;;  %v6368_v6 = vpop.eup %3822  ;;  %3842 = vpow2.f32 %v1947_v58  ;;  %v3421_v50 = vpack.c.bf16 %v3813_v42, %v6279_v53  ;;  %v8089_v37 = vld [vmem:[#allocation67_spill] sm:$0xff]  ;;  %v8091_v57 = vld [vmem:[#allocation73_spill] sm:$0xff]  ;;  %v8093_v56 = vld [vmem:[#allocation110_spill] sm:$0xff] }
 0x277   : > { %v1835_v46 = vsub.f32 %v8087_v19, %v1753_v5  ;;  %v1836_v47 = vsub.f32 %v8088_v54, %v1753_v5  ;;  %v6373_v9 = vpop.eup %3824  ;;  %3844 = vpow2.f32 %v1885_v36  ;;  %v1889_v4 = vmul.f32 1.442695, %v1805_v49  ;;  %v1758_v53 = vpop.permute.xlu0 %1757 }
 0x278   : > { %v1891_v2 = vmul.f32 1.442695, %v1806_v17  ;;  %2121 = vadd.xlane.f32.xlu0 %v2120_v45  ;;  %v1986_v41 = vsel %vm8080_vm1, %v6282_v0, 0.0  ;;  %v6378_v40 = vpop.eup %3826  ;;  %3846 = vpow2.f32 %v1887_v15  ;;  %3422 = vmatmul.mubr.msk.bf16.gmra.mrb[8].mxu0 %vm3420_vm0, %v3421_v50  ;;  %vm8090_vm4 = vnez %v8089_v37  ;;  %v8094_v45 = vld [vmem:[#allocation111_spill] sm:$0xff]  ;;  %v8097_v15 = vld [vmem:[#allocation72_spill] sm:$0xff] }
 0x279   : > { %v1949_v58 = vmul.f32 1.442695, %v1835_v46  ;;  %v2117_v42 = vadd.f32 %v1986_v41, %v1985_v52  ;;  %vm8092_vm13 = vnez %v8091_v57  ;;  %v3829_v36 = vpop.eup %3828  ;;  %v1951_v49 = vmul.f32 1.442695, %v1836_v47  ;;  %v1683_v52 = vpop.permute.xlu1 %1682  ;;  %v8099_v46 = vld [vmem:[#allocation112_spill] sm:$0xff]  ;;  %v8100_v47 = vld [vmem:[#allocation113_spill] sm:$0xff] }
 0x27a   : > { %vm3465_vm3 = vmpackc.low %vm8092_vm13, %vm8090_vm4  ;;  %v1837_v17 = vsub.f32 %v8093_v56, %v1758_v53  ;;  %v1838_v5 = vsub.f32 %v8094_v45, %v1758_v53  ;;  %v3466_v0 = vpack.c.bf16 %v6368_v6, %v6316_v22  ;;  %vm8096_vm1 = vnez %v8095_v21  ;;  %v3831_v50 = vpop.eup %3830 }
 0x27b   : > { %vm8098_vm6 = vnez %v8097_v15  ;;  %3848 = vpow2.f32 %v1889_v4  ;;  %2118 = vadd.xlane.f32.xlu1 %v2117_v42  ;;  %v3469_v19 = vpack.c.bf16 %v6355_v10, %v6308_v32  ;;  %v1807_v54 = vsub.f32 %v8099_v46, %v1683_v52  ;;  %v6396_v53 = vpop.eup %3832  ;;  %v8101_v4 = vld [vmem:[#allocation30_spill] sm:$0xff] }
 0x27c   : > { %v1808_v41 = vsub.f32 %v8100_v47, %v1683_v52  ;;  %3850 = vpow2.f32 %v1891_v2  ;;  %v1953_v56 = vmul.f32 1.442695, %v1837_v17  ;;  %v6398_v45 = vmul.f32 1.442695, %v1838_v5  ;;  %3467 = vmatprep.mubr.msk.bf16.mxu1 %vm3465_vm3, %v3466_v0  ;;  %v6408_v11 = vpop.eup %3834  ;;  %vm8103_vm11 = vmpackc.low %vm8098_vm6, %vm8096_vm1  ;;  %v1688_v5 = vpop.permute.xlu0 %1687  ;;  %v8104_v52 = vld [vmem:[#allocation31_spill] sm:$0xff] }
 0x27d   : > { %vm8102_vm0 = vnez %v8101_v4  ;;  %3852 = vpow2.f32 %v1949_v58  ;;  %3470 = vmatmul.mubr.msk.bf16.gmra.mrb[8].mxu1 %vm8103_vm11, %v3469_v19  ;;  %v1893_v2 = vmul.f32 1.442695, %v1807_v54  ;;  %vm8105_vm13 = vnez %v8104_v52  ;;  %v6418_v46 = vpop.eup %3836  ;;  %v8106_v47 = vld [vmem:[#allocation7_spill] sm:$0xff]  ;;  %v1763_v19 = vpop.permute.xlu1 %1762  ;;  %v8127_v4 = vld [vmem:[#allocation76_spill] sm:$0xff] }
 0x27e   : > { %v1989_v42 = vsel %vm8102_vm0, %v6348_v24, 0.0  ;;  %v1895_v17 = vmul.f32 1.442695, %v1808_v41  ;;  %v1990_v0 = vsel %vm8105_vm13, %v6351_v39, 0.0  ;;  %3854 = vpow2.f32 %v1951_v49  ;;  %v6426_v54 = vpop.eup %3838 }
 0x27f   : > { %v1809_v28 = vsub.f32 %v8106_v47, %v1688_v5  ;;  %v1810_v58 = vsub.f32 %v8107_v62, %v1688_v5  ;;  %v2123_v14 = vadd.f32 %v1990_v0, %v1989_v42  ;;  %vm8109_vm3 = vnez %v8108_v20  ;;  %8110 = vst [vmem:[#allocation8_spill] sm:$0xff] %v6426_v54  ;;  %v6433_v47 = vpop.eup %3840  ;;  %v8118_v20 = vld [vmem:[#allocation62_spill] sm:$0xff] }
 0x280   : > { %3856 = vpow2.f32 %v1953_v56  ;;  %v3424_v41 = vpack.c.bf16 %v3831_v50, %v6351_v39  ;;  %vm8112_vm6 = vnez %v8111_v25  ;;  %v1992_v49 = vsel %vm8109_vm3, %v3831_v50, 0.0  ;;  %v6439_v56 = vpop.eup %3842  ;;  %vm8113_vm4 = vmpackc.low %vm8109_vm3, %vm8105_vm13 }
 0x281   : > { %v1991_v51 = vsel %vm8112_vm6, %v3829_v36, 0.0  ;;  %3858 = vpow2.f32 %v1893_v2  ;;  %v1897_v62 = vmul.f32 1.442695, %v1809_v28  ;;  %v1899_v42 = vmul.f32 1.442695, %v1810_v58  ;;  %2124 = vadd.xlane.f32.xlu1 %v2123_v14  ;;  %v8114_v28 = vld [vmem:[#allocation116_spill] sm:$0xff]  ;;  %v1768_v2 = vpop.permute.xlu0 %1767  ;;  %v6449_v0 = vpop.eup %3844 }
 0x282   : > { %v2126_v5 = vadd.f32 %v1992_v49, %v1991_v51  ;;  %3860 = vpow2.f32 %v1895_v17  ;;  %3425 = vmatprep.mubr.msk.bf16.mxu0 %vm8113_vm4, %v3424_v41  ;;  %v3427_v39 = vpack.c.bf16 %v3829_v36, %v6348_v24  ;;  %v1839_v50 = vsub.f32 %v8114_v28, %v1763_v19  ;;  %v8115_v14 = vld [vmem:[#allocation117_spill] sm:$0xff]  ;;  %v8116_v58 = vld [vmem:[#allocation118_spill] sm:$0xff]  ;;  %v8117_v17 = vld [vmem:[#allocation119_spill] sm:$0xff]  ;;  %v1693_v41 = vpop.permute.xlu1 %1692  ;;  %v3847_v59 = vpop.eup %3846 }
 0x283   : > { %v1840_v51 = vsub.f32 %v8115_v14, %v1763_v19  ;;  %3862 = vpow2.f32 %v1897_v62  ;;  %v1841_v49 = vsub.f32 %v8116_v58, %v1768_v2  ;;  %v1842_v33 = vsub.f32 %v8117_v17, %v1768_v2  ;;  %vm8120_vm4 = vmpackc.low %vm8112_vm6, %vm8102_vm0  ;;  %v8121_v19 = vld [vmem:[#allocation63_spill] sm:$0xff]  ;;  %v8125_v28 = vld [vmem:[#allocation85_spill] sm:$0xff] }
 0x284   : > { %2127 = vadd.xlane.f32.xlu0 %v2126_v5  ;;  %vm8119_vm11 = vnez %v8118_v20  ;;  %3864 = vpow2.f32 %v1899_v42  ;;  %3428 = vmatmul.mubr.msk.bf16.gmra.mrb[12].mxu0 %vm8120_vm4, %v3427_v39  ;;  %v1957_v24 = vmul.f32 1.442695, %v1839_v50  ;;  %vm8122_vm13 = vnez %v8121_v19  ;;  %v8123_v5 = vld [vmem:[#allocation77_spill] sm:$0xff]  ;;  %v8129_v39 = vld [vmem:[#allocation82_spill] sm:$0xff]  ;;  %v8131_v58 = vld [vmem:[#allocation120_spill] sm:$0xff] }
 0x285   : > { %v1993_v52 = vsel %vm8119_vm11, %v6396_v53, 0.0  ;;  %v1959_v36 = vmul.f32 1.442695, %v1840_v51  ;;  %v1994_v62 = vsel %vm8122_vm13, %v6408_v11, 0.0  ;;  %vm8124_vm3 = vnez %v8123_v5  ;;  %v6474_v50 = vpop.eup %3848  ;;  %v8161_v20 = vld [vmem:[#allocation100_spill] sm:$0xff] }
 0x286   : > { %vm8126_vm1 = vnez %v8125_v28  ;;  %v1961_v14 = vmul.f32 1.442695, %v1841_v49  ;;  %v1963_v2 = vmul.f32 1.442695, %v1842_v33  ;;  %v2129_v42 = vadd.f32 %v1994_v62, %v1993_v52  ;;  %v1698_v33 = vpop.permute.xlu0 %1697  ;;  %v8133_v52 = vld [vmem:[#allocation69_spill] sm:$0xff]  ;;  %v6484_v62 = vpop.eup %3850 }
 0x287   : > { %v3472_v25 = vpack.c.bf16 %v6426_v54, %v6378_v40  ;;  %vm8128_vm6 = vnez %v8127_v4  ;;  %vm8130_vm0 = vnez %v8129_v39  ;;  %3866 = vpow2.f32 %v1957_v24  ;;  %vm8135_vm4 = vmpackc.low %vm8126_vm1, %vm8124_vm3  ;;  %v8136_v24 = vld [vmem:[#allocation54_spill] sm:$0xff]  ;;  %v1773_v48 = vpop.permute.xlu1 %1772  ;;  %v6494_v26 = vpop.eup %3852  ;;  %v8151_v54 = vld [vmem:[#allocation87_spill] sm:$0xff] }
 0x288   : > { %v3475_v51 = vpack.c.bf16 %v6418_v46, %v6373_v9  ;;  %v1811_v17 = vsub.f32 %v8131_v58, %v1693_v41  ;;  %v1812_v49 = vsub.f32 %v8132_v30, %v1693_v41  ;;  %vm8134_vm5 = vnez %v8133_v52  ;;  %2130 = vadd.xlane.f32.xlu1 %v2129_v42  ;;  %vm8139_vm9 = vmpackc.low %vm8130_vm0, %vm8128_vm6  ;;  %v8153_v39 = vld [vmem:[#allocation95_spill] sm:$0xff] }
 0x289   : > { %3868 = vpow2.f32 %v1959_v36  ;;  %3473 = vmatprep.mubr.msk.bf16.mxu1 %vm8135_vm4, %v3472_v25  ;;  %v1813_v58 = vsub.f32 %v8136_v24, %v1698_v33  ;;  %v1814_v30 = vsub.f32 %v8137_v60, %v1698_v33  ;;  %v3430_v41 = vpack.c.bf16 %v3847_v59, %v6408_v11  ;;  %8138 = vst [vmem:[#allocation12_spill] sm:$0xff] %v6494_v26  ;;  %v8140_v25 = vld [vmem:[#allocation68_spill] sm:$0xff]  ;;  %v6505_v60 = vpop.eup %3854  ;;  %vm8143_vm1 = vmpackc.low %vm8134_vm5, %vm8122_vm13 }
 0x28a   : > { %3870 = vpow2.f32 %v6398_v45  ;;  %3476 = vmatmul.mubr.msk.bf16.gmra.mrb[12].mxu1 %vm8139_vm9, %v3475_v51  ;;  %v1901_v36 = vmul.f32 1.442695, %v1811_v17  ;;  %v1903_v42 = vmul.f32 1.442695, %v1812_v49  ;;  %vm8141_vm4 = vnez %v8140_v25  ;;  %8142 = vst [vmem:[#allocation24_spill] sm:$0xff] %v6505_v60  ;;  %v6514_v51 = vpop.eup %3856  ;;  %v8144_v49 = vld [vmem:[#allocation90_spill] sm:$0xff]  ;;  %v1778_v19 = vpop.permute.xlu0 %1777 }
 0x28b   : > { %v1995_v24 = vsel %vm8141_vm4, %v6449_v0, 0.0  ;;  %3872 = vpow2.f32 %v1961_v14  ;;  %v1905_v11 = vmul.f32 1.442695, %v1813_v58  ;;  %v1907_v33 = vmul.f32 1.442695, %v1814_v30  ;;  %3431 = vmatprep.mubr.msk.bf16.mxu0 %vm8143_vm1, %v3430_v41  ;;  %v8146_v14 = vld [vmem:[#allocation93_spill] sm:$0xff]  ;;  %v6526_v52 = vpop.eup %3858  ;;  %vm8155_vm3 = vmpackc.low %vm8141_vm4, %vm8119_vm11 }
 0x28c   : > { %v1996_v45 = vsel %vm8134_vm5, %v3847_v59, 0.0  ;;  %3874 = vpow2.f32 %v1901_v36  ;;  %vm8145_vm9 = vnez %v8144_v49  ;;  %vm8147_vm0 = vnez %v8146_v14  ;;  %v8148_v41 = vld [vmem:[#allocation39_spill] sm:$0xff]  ;;  %v8160_v25 = vld [vmem:[#allocation125_spill] sm:$0xff] }
 0x28d   : > { %v2132_v17 = vadd.f32 %v1996_v45, %v1995_v24  ;;  %v1997_v34 = vsel %vm8145_vm9, %v6474_v50, 0.0  ;;  %v1998_v58 = vsel %vm8147_vm0, %v6484_v62, 0.0  ;;  %3876 = vpow2.f32 %v1903_v42  ;;  %v1703_v24 = vpop.permute.xlu1 %1702  ;;  %v3861_v45 = vpop.eup %3860  ;;  %v8171_v14 = vld [vmem:[#allocation129_spill] sm:$0xff] }
 0x28e   : > { %v2135_v59 = vadd.f32 %v1998_v58, %v1997_v34  ;;  %v3433_v30 = vpack.c.bf16 %v6449_v0, %v6396_v53  ;;  %v1843_v36 = vsub.f32 %v8148_v41, %v1773_v48  ;;  %3878 = vpow2.f32 %v1905_v11  ;;  %v6537_v42 = vpop.eup %3862 }
 0x28f   : > { %2133 = vadd.xlane.f32.xlu0 %v2132_v17  ;;  %v1844_v61 = vsub.f32 %v8149_v44, %v1773_v48  ;;  %v1846_v28 = vsub.f32 %v8150_v23, %v1778_v19  ;;  %vm8152_vm5 = vnez %v8151_v54  ;;  %vm8154_vm13 = vnez %v8153_v39  ;;  %v8156_v23 = vld [vmem:[#allocation86_spill] sm:$0xff]  ;;  %v3865_v0 = vpop.eup %3864  ;;  %v8163_v17 = vld [vmem:[#allocation123_spill] sm:$0xff] }
 0x290   : > { %vm3477_vm1 = vmpackc.low %vm8154_vm13, %vm8152_vm5  ;;  %3880 = vpow2.f32 %v1907_v33  ;;  %2136 = vadd.xlane.f32.xlu1 %v2135_v59  ;;  %3434 = vmatmul.mubr.msk.bf16.gmra.mrb[16].mxu0 %vm8155_vm3, %v3433_v30  ;;  %v1965_v34 = vmul.f32 1.442695, %v1843_v36  ;;  %v3478_v44 = vpack.c.bf16 %v6505_v60, %v6439_v56  ;;  %vm8157_vm6 = vnez %v8156_v23  ;;  %v8158_v48 = vld [vmem:[#allocation94_spill] sm:$0xff] }
 0x291   : > { %vm8159_vm7 = vnez %v8158_v48  ;;  %v3481_v53 = vpack.c.bf16 %v6494_v26, %v6433_v47  ;;  %3882 = vpow2.f32 %v1963_v2  ;;  %v1967_v11 = vmul.f32 1.442695, %v1844_v61  ;;  %v8164_v59 = vld [vmem:[#allocation126_spill] sm:$0xff]  ;;  %v1783_v2 = vpop.permute.xlu1 %1782  ;;  %v6565_v41 = vpop.eup %3866 }
 0x292   : > { %vm3480_vm2 = vmpackc.low %vm8159_vm7, %vm8157_vm6  ;;  %v1815_v33 = vsub.f32 %v8160_v25, %v1703_v24  ;;  %vm8162_vm11 = vnez %v8161_v20  ;;  %3884 = vpow2.f32 %v1965_v34  ;;  %v1845_v58 = vsub.f32 %v8163_v17, %v1778_v19  ;;  %3479 = vmatprep.mubr.msk.bf16.mxu1 %vm3477_vm1, %v3478_v44  ;;  %v8165_v34 = vld [vmem:[#allocation99_spill] sm:$0xff]  ;;  %v8175_v60 = vld [vmem:[#allocation106_spill] sm:$0xff] }
 0x293   : > { %vm3435_vm3 = vmpackc.low %vm8162_vm11, %vm8147_vm0  ;;  %v1816_v30 = vsub.f32 %v8164_v59, %v1703_v24  ;;  %v3436_v61 = vpack.c.bf16 %v3861_v45, %v6484_v62  ;;  %3886 = vpow2.f32 %v1967_v11  ;;  %3482 = vmatmul.mubr.msk.bf16.gmra.mrb[16].mxu1 %vm3480_vm2, %v3481_v53  ;;  %vm8166_vm4 = vnez %v8165_v34  ;;  %v6572_v17 = vpop.eup %3868  ;;  %v8167_v24 = vld [vmem:[#allocation5_spill] sm:$0xff] }
 0x294   : > { %v1909_v36 = vmul.f32 1.442695, %v1815_v33  ;;  %v1999_v19 = vsel %vm8166_vm4, %v6526_v52, 0.0  ;;  %v2000_v25 = vsel %vm8162_vm11, %v3861_v45, 0.0  ;;  %v1971_v44 = vmul.f32 1.442695, %v1846_v28  ;;  %v6582_v11 = vpop.eup %3870 }
 0x295   : > { %v1911_v39 = vmul.f32 1.442695, %v1816_v30  ;;  %3437 = vmatprep.mubr.msk.bf16.mxu0 %vm3435_vm3, %v3436_v61  ;;  %v2138_v62 = vadd.f32 %v2000_v25, %v1999_v19  ;;  %vm8168_vm2 = vnez %v8167_v24  ;;  %v8169_v33 = vld [vmem:[#allocation105_spill] sm:$0xff]  ;;  %v3439_v28 = vpack.c.bf16 %v6526_v52, %v6474_v50  ;;  %v6593_v59 = vpop.eup %3872  ;;  %v8172_v61 = vld [vmem:[#allocation130_spill] sm:$0xff]  ;;  %vm8181_vm3 = vmpackc.low %vm8166_vm4, %vm8145_vm9 }
 0x296   : > { %v2001_v53 = vsel %vm8168_vm2, %v6537_v42, 0.0  ;;  %vm8170_vm1 = vnez %v8169_v33  ;;  %v1847_v20 = vsub.f32 %v8171_v14, %v1783_v2  ;;  %3888 = vpow2.f32 %v1909_v36  ;;  %v8173_v25 = vld [vmem:[#allocation98_spill] sm:$0xff]  ;;  %v3875_v48 = vpop.eup %3874  ;;  %v8177_v52 = vld [vmem:[#allocation97_spill] sm:$0xff] }
 0x297   : > { %v2002_v45 = vsel %vm8170_vm1, %v3865_v0, 0.0  ;;  %2139 = vadd.xlane.f32.xlu0 %v2138_v62  ;;  %v1848_v19 = vsub.f32 %v8172_v61, %v1783_v2  ;;  %vm8174_vm0 = vnez %v8173_v25  ;;  %vm8176_vm11 = vnez %v8175_v60  ;;  %v8179_v14 = vld [vmem:[#allocation10_spill] sm:$0xff]  ;;  %v3877_v2 = vpop.eup %3876  ;;  %vm3441_vm6 = vmpackc.low %vm5479_vm14, %vm8170_vm1 }
 0x298   : > { %v2141_v30 = vadd.f32 %v2002_v45, %v2001_v53  ;;  %3890 = vpow2.f32 %v1911_v39  ;;  %v1973_v26 = vmul.f32 1.442695, %v1847_v20  ;;  %v3484_v50 = vpack.c.bf16 %v6572_v17, %v6582_v11  ;;  %3440 = vmatmul.mubr.msk.bf16.gmra.mrb[20].mxu0 %vm8181_vm3, %v3439_v28  ;;  %v6619_v61 = vpop.eup %3878  ;;  %vm8184_vm5 = vmpackc.low %vm8176_vm11, %vm8174_vm0  ;;  %v8189_v53 = vld [vmem:[#allocation53_spill] sm:$0xff] }
 0x299   : > { %vm8178_vm13 = vnez %v8177_v52  ;;  %vm8180_vm7 = vnez %v8179_v14  ;;  %v3487_v36 = vpack.c.bf16 %v6565_v41, %v6514_v51  ;;  %v1969_v62 = vmul.f32 1.442695, %v1845_v58 }
 0x29a   : > { %3892 = vpow2.f32 %v1971_v44  ;;  %2142 = vadd.xlane.f32.xlu1 %v2141_v30  ;;  %v1975_v39 = vmul.f32 1.442695, %v1848_v19  ;;  %v2003_v20 = vsel %vm5473_vm10, %v3875_v48, 0.0  ;;  %3485 = vmatprep.mubr.msk.bf16.mxu1 %vm8184_vm5, %v3484_v50  ;;  %v3442_v49 = vpack.c.bf16 %v3877_v2, %v3865_v0  ;;  %v3881_v44 = vpop.eup %3880  ;;  %vm8186_vm9 = vmpackc.low %vm8180_vm7, %vm8178_vm13 }
 0x29b   : > { %3894 = vpow2.f32 %v1973_v26  ;;  %v2004_v58 = vsel %vm5479_vm14, %v3877_v2, 0.0  ;;  %v2011_v34 = vsel %vm8049_vm12, %v6237_v16, 0.0  ;;  %v2005_v26 = vsel %vm5522_vm8, %v6619_v61, 0.0  ;;  %v6634_v30 = vpop.eup %3882  ;;  %3488 = vmatmul.mubr.msk.bf16.gmra.mrb[20].mxu1 %vm8186_vm9, %v3487_v36  ;;  %vm3444_vm12 = vmpackc.low %vm5473_vm10, %vm8168_vm2 }
 0x29c   : > { %3896 = vpow2.f32 %v1975_v39  ;;  %v2144_v33 = vadd.f32 %v2004_v58, %v2003_v20  ;;  %3443 = vmatprep.mubr.msk.bf16.mxu0 %vm3441_vm6, %v3442_v49  ;;  %v2006_v43 = vsel %vm5528_vm15, %v3881_v44, 0.0  ;;  %vm8188_vm14 = vnez %v8042_v38  ;;  %v6646_v19 = vpop.eup %3884  ;;  %v8191_v20 = vld [vmem:[#allocation114_spill] sm:$0xff]  ;;  %v8195_v49 = vld [vmem:[#allocation52_spill] sm:$0xff] }
 0x29d   : > { %v2012_v16 = vsel %vm8188_vm14, %v6242_v12, 0.0  ;;  %3898 = vpow2.f32 %v1969_v62  ;;  %v2147_v50 = vadd.f32 %v2006_v43, %v2005_v26  ;;  %v3445_v36 = vpack.c.bf16 %v3875_v48, %v6537_v42  ;;  %v6653_v39 = vpop.eup %3886  ;;  %v6669_v62 = vpop.permute.xlu0 %2305 }
 0x29e   : > { %2145 = vadd.xlane.f32.xlu0 %v2144_v33  ;;  %v2156_v2 = vadd.f32 %v2012_v16, %v2011_v34  ;;  %vm8190_vm6 = vnez %v8189_v53  ;;  %vm8192_vm5 = vnez %v8191_v20  ;;  %vm8193_vm1 = vnez %v8046_v29  ;;  %v8201_v29 = vld [vmem:[#allocation32_spill] sm:$0xff] }
 0x29f   : > { %vm3489_vm4 = vmpackc.low %vm8192_vm5, %vm8190_vm6  ;;  %v2009_v12 = vsel %vm8193_vm1, %v6228_v27, 0.0  ;;  %vm8194_vm3 = vnez %v8040_v35  ;;  %2148 = vadd.xlane.f32.xlu1 %v2147_v50  ;;  %v3490_v42 = vpack.c.bf16 %v6653_v39, %v6634_v30  ;;  %v3493_v48 = vpack.c.bf16 %v6646_v19, %v6593_v59  ;;  %v8197_v27 = vld [vmem:[#allocation19_spill] sm:$0xff] }
 0x2a0   : > { %v2010_v38 = vsel %vm8194_vm3, %v6232_v18, 0.0  ;;  %v3889_v24 = vpop.eup %3888  ;;  %3446 = vmatmul.mubr.msk.bf16.gmra.mrb[24].mxu0 %vm3444_vm12, %v3445_v36  ;;  %vm8196_vm10 = vnez %v8195_v49  ;;  %vm8198_vm2 = vnez %v8197_v27  ;;  %v8199_v18 = vld [vmem:[#allocation11_spill] sm:$0xff]  ;;  %vm8202_vm3 = vnez %v8201_v29 }
 0x2a1   : > { %3491 = vmatprep.mubr.msk.bf16.mxu1 %vm3489_vm4, %v3490_v42  ;;  %v2153_v45 = vadd.f32 %v2010_v38, %v2009_v12  ;;  %vm3492_vm9 = vmpackc.low %vm8198_vm2, %vm8196_vm10  ;;  %vm8200_vm14 = vnez %v8199_v18  ;;  %v2007_v58 = vsel %vm8202_vm3, %v3889_v24, 0.0  ;;  %vm8203_vm5 = vnez %v8066_v7  ;;  %v8205_v12 = vld [vmem:[#allocation57_spill] sm:$0xff]  ;;  %v6712_v42 = vpop.permute.xlu0 %2320 }
 0x2a2   : > { %v3891_v35 = vpop.eup %3890  ;;  %vm3447_vm1 = vmpackc.low %vm8200_vm14, %vm5528_vm15  ;;  %v2013_v34 = vsel %vm8203_vm5, %v6260_v31, 0.0  ;;  %vm8204_vm12 = vnez %v8062_v8  ;;  %v3451_v31 = vpack.c.bf16 %v3889_v24, %v6619_v61  ;;  %vm8206_vm15 = vnez %v8205_v12  ;;  %v8235_v12 = vld [vmem:[#allocation133_spill] sm:$0xff] }
 0x2a3   : > { %v2014_v33 = vsel %vm8204_vm12, %v6262_v3, 0.0  ;;  %2154 = vadd.xlane.f32.xlu1 %v2153_v45  ;;  %v3448_v43 = vpack.c.bf16 %v3891_v35, %v3881_v44  ;;  %v2008_v0 = vsel %vm8200_vm14, %v3891_v35, 0.0  ;;  %3494 = vmatmul.mubr.msk.bf16.gmra.mrb[24].mxu1 %vm3492_vm9, %v3493_v48  ;;  %v8207_v3 = vld [vmem:[#allocation128_spill] sm:$0xff]  ;;  %vm3450_vm14 = vmpackc.low %vm8202_vm3, %vm5522_vm8  ;;  %vm8209_vm9 = vnez %v8095_v21  ;;  %v6714_v48 = vpop.permute.xlu1 %2300  ;;  %v8213_v35 = vld [vmem:[#allocation127_spill] sm:$0xff] }
 0x2a4   : > { %v6687_v26 = vpop.eup %3892  ;;  %v2150_v50 = vadd.f32 %v2008_v0, %v2007_v58  ;;  %v2159_v7 = vadd.f32 %v2014_v33, %v2013_v34  ;;  %vm8208_vm5 = vnez %v8207_v3  ;;  %v2017_v44 = vsel %vm8209_vm9, %v6308_v32, 0.0  ;;  %v8211_v45 = vld [vmem:[#allocation56_spill] sm:$0xff]  ;;  %v8226_v58 = vld [vmem:[#allocation85_spill] sm:$0xff]  ;;  %v8229_v33 = vld [vmem:[#allocation94_spill] sm:$0xff] }
 0x2a5   : > { %v6691_v16 = vpop.eup %3894  ;;  %3449 = vmatprep.mubr.msk.bf16.mxu0 %vm3447_vm1, %v3448_v43  ;;  %vm3495_vm4 = vmpackc.low %vm8208_vm5, %vm8206_vm15  ;;  %vm8210_vm1 = vnez %v8089_v37  ;;  %vm8212_vm8 = vnez %v8211_v45  ;;  %vm8214_vm3 = vnez %v8213_v35  ;;  %vm8215_vm9 = vnez %v8068_v63  ;;  %v6733_v29 = vpop.permute.xlu0 %2330  ;;  %v8228_v34 = vld [vmem:[#allocation12_spill] sm:$0xff] }
 0x2a6   : > { %v6693_v36 = vpop.eup %3896  ;;  %2151 = vadd.xlane.f32.xlu0 %v2150_v50  ;;  %v2018_v61 = vsel %vm8210_vm1, %v6316_v22, 0.0  ;;  %vm3498_vm12 = vmpackc.low %vm8214_vm3, %vm8212_vm8  ;;  %v2015_v32 = vsel %vm8215_vm9, %v6286_v1, 0.0  ;;  %vm8216_vm1 = vnez %v8064_v55  ;;  %vm8219_vm9 = vnez %v8097_v15  ;;  %v8225_v15 = vld [vmem:[#allocation8_spill] sm:$0xff]  ;;  %v8232_v50 = vld [vmem:[#allocation95_spill] sm:$0xff] }
 0x2a7   : > { %v3496_v8 = vpack.c.bf16 %v6693_v36, %v6687_v26  ;;  %v3899_v38 = vpop.eup %3898  ;;  %2160 = vadd.xlane.f32.xlu1 %v2159_v7  ;;  %v2165_v24 = vadd.f32 %v2018_v61, %v2017_v44  ;;  %v2016_v22 = vsel %vm8216_vm1, %v6299_v13, 0.0  ;;  %v6735_v63 = vpop.permute.xlu1 %2310  ;;  %v2019_v13 = vsel %vm8219_vm9, %v6355_v10, 0.0  ;;  %v8231_v0 = vld [vmem:[#allocation24_spill] sm:$0xff] }
 0x2a8   : > { %v3499_v28 = vpack.c.bf16 %v6691_v16, %v3899_v38  ;;  %3452 = vmatmul.mubr.msk.bf16.gmra.mrb[28].mxu0 %vm3450_vm14, %v3451_v31  ;;  %vm8218_vm14 = vnez %v8123_v5  ;;  %v2162_v18 = vadd.f32 %v2016_v22, %v2015_v32  ;;  %vm8220_vm1 = vnez %v8091_v57 }
 0x2a9   : > { %3497 = vmatprep.mubr.msk.bf16.mxu1 %vm3495_vm4, %v3496_v8  ;;  %vm8217_vm4 = vnez %v8127_v4  ;;  %v2022_v21 = vsel %vm8218_vm14, %v6378_v40, 0.0  ;;  %v2020_v55 = vsel %vm8220_vm1, %v6368_v6, 0.0  ;;  %vm8227_vm9 = vnez %v8226_v58 }
 0x2aa   : > { %2157 = vadd.xlane.f32.xlu0 %v2156_v2  ;;  %v2021_v37 = vsel %vm8217_vm4, %v6373_v9, 0.0  ;;  %vm8221_vm4 = vnez %v8156_v23  ;;  %v2168_v5 = vadd.f32 %v2020_v55, %v2019_v13  ;;  %v8223_v2 = vld [vmem:[#allocation82_spill] sm:$0xff]  ;;  %v2024_v6 = vsel %vm8227_vm9, %v8225_v15, 0.0 }
 0x2ab   : > { %2166 = vadd.xlane.f32.xlu1 %v2165_v24  ;;  %3500 = vmatmul.mubr.msk.bf16.gmra.mrb[28].mxu1 %vm3498_vm12, %v3499_v28  ;;  %v2171_v1 = vadd.f32 %v2022_v21, %v2021_v37  ;;  %v2025_v9 = vsel %vm8221_vm4, %v6433_v47, 0.0  ;;  %vm8222_vm12 = vnez %v8151_v54  ;;  %vm8224_vm14 = vnez %v8223_v2  ;;  %v6761_v47 = vpop.permute.xlu0 %2340  ;;  %v8238_v37 = vld [vmem:[#allocation131_spill] sm:$0xff]  ;;  %v8239_v21 = vld [vmem:[#allocation132_spill] sm:$0xff] }
 0x2ac   : > { %v2026_v40 = vsel %vm8222_vm12, %v6439_v56, 0.0  ;;  %v2023_v10 = vsel %vm8224_vm14, %v6418_v46, 0.0  ;;  %v2029_v57 = vsel %vm8178_vm13, %v6514_v51, 0.0  ;;  %v2030_v54 = vsel %vm8174_vm0, %v6582_v11, 0.0  ;;  %v6763_v56 = vpop.permute.xlu1 %2315 }
 0x2ad   : > { %v2177_v4 = vadd.f32 %v2026_v40, %v2025_v9  ;;  %v2174_v23 = vadd.f32 %v2024_v6, %v2023_v10  ;;  %v2183_v46 = vadd.f32 %v2030_v54, %v2029_v57  ;;  %vm8230_vm1 = vnez %v8229_v33  ;;  %v2041_v6 = vld [vmem:[#allocation3] sm:$0xff] }
 0x2ae   : > { %2163 = vadd.xlane.f32.xlu0 %v2162_v18  ;;  %v2027_v43 = vsel %vm8230_vm1, %v8228_v34, 0.0  ;;  %vm8233_vm4 = vnez %v8232_v50  ;;  %v2033_v51 = vsel %vm8196_vm10, %v6593_v59, 0.0  ;;  %v2034_v11 = vsel %vm8190_vm6, %v6634_v30, 0.0  ;;  %v8241_v57 = vld [vmem:[#allocation137_spill] sm:$0xff] }
 0x2af   : > { %2172 = vadd.xlane.f32.xlu1 %v2171_v1  ;;  %v2028_v52 = vsel %vm8233_vm4, %v8231_v0, 0.0  ;;  %v6777_v7 = vpop.permute.xlu0 %2350  ;;  %v2189_v8 = vadd.f32 %v2034_v11, %v2033_v51  ;;  %v2031_v44 = vsel %vm8180_vm7, %v6565_v41, 0.0  ;;  %v2032_v49 = vsel %vm8176_vm11, %v6572_v17, 0.0  ;;  %v2044_v11 = vld [vmem:[#allocation3 + $0x18] sm:$0xff] }
 0x2b0   : > { %v2180_v25 = vadd.f32 %v2028_v52, %v2027_v43  ;;  %v6779_v31 = vpop.permute.xlu1 %2325  ;;  %v2037_v59 = vsel %vm8212_vm8, %v3899_v38, 0.0  ;;  %v2038_v30 = vsel %vm8206_vm15, %v6687_v26, 0.0  ;;  %v2186_v53 = vadd.f32 %v2032_v49, %v2031_v44  ;;  %v8236_v26 = vld [vmem:[#allocation135_spill] sm:$0xff]  ;;  %v2042_v49 = vld [vmem:[#allocation3 + $0x8] sm:$0xff] }
 0x2b1   : > { %v2195_v61 = vadd.f32 %v2038_v30, %v2037_v59  ;;  %v2035_v14 = vsel %vm8198_vm2, %v6646_v19, 0.0  ;;  %vm8234_vm7 = vnez %v8191_v20  ;;  %v8237_v28 = vsub.f32 %v8235_v12, %v8236_v26  ;;  %v8243_v43 = vld [vmem:[#allocation139_spill] sm:$0xff] }
 0x2b2   : > { %2169 = vadd.xlane.f32.xlu0 %v2168_v5  ;;  %v2036_v60 = vsel %vm8234_vm7, %v6653_v39, 0.0  ;;  %v2039_v27 = vsel %vm8214_vm3, %v6691_v16, 0.0  ;;  %v2040_v19 = vsel %vm8208_vm5, %v6693_v36, 0.0  ;;  %v8240_v35 = vsub.f32 %v8238_v37, %v8239_v21  ;;  %v8249_v12 = vld [vmem:[#allocation143_spill] sm:$0xff] }
 0x2b3   : > { %2178 = vadd.xlane.f32.xlu1 %v2177_v4  ;;  %v6798_v41 = vpop.permute.xlu0 %2360  ;;  %v2192_v38 = vadd.f32 %v2036_v60, %v2035_v14  ;;  %v1623_v24 = vmul.f32 1.442695, %v8237_v28  ;;  %v2198_v39 = vadd.f32 %v2040_v19, %v2039_v27  ;;  %v2073_v54 = vmul.f32 %v8241_v57, %v2041_v6  ;;  %v2045_v28 = vld [vmem:[#allocation3 + $0x20] sm:$0xff]  ;;  %v8250_v19 = vld [vmem:[#allocation136_spill] sm:$0xff]  ;;  %v8253_v6 = vld [vmem:[#allocation138_spill] sm:$0xff] }
 0x2b4   : > { %v6800_v17 = vpop.permute.xlu1 %2335  ;;  %v1621_v16 = vmul.f32 1.442695, %v8240_v35  ;;  %vm8242_vm13 = vcmask 7168   ;;  %v2047_v35 = vld [vmem:[#allocation3 + $0x30] sm:$0xff] }
 0x2b5   : > { %3900 = vpow2.f32 %v1623_v24  ;;  %vm8244_vm0 = vmmov %vm8242_vm13  ;;  %v2079_v57 = vmul.f32 %v8253_v6, %v2047_v35 }
 0x2b6   : > { %2175 = vadd.xlane.f32.xlu0 %v2174_v23  ;;  %3902 = vpow2.f32 %v1621_v16  ;;  %vm8247_vm11 = vmmov %vm8244_vm0  ;;  %v2048_v16 = vld [vmem:[#allocation3 + $0x38] sm:$0xff] }
 0x2b7   : > { %2184 = vadd.xlane.f32.xlu1 %v2183_v46  ;;  %v6811_v20 = vpop.permute.xlu0 %2370  ;;  %v2043_v46 = vld [vmem:[#allocation3 + $0x10] sm:$0xff]  ;;  %vm8248_vm6 = vmmov %vm8244_vm0 }
 0x2b8   : > { %v6813_v45 = vpop.permute.xlu1 %2345  ;;  %v2075_v0 = vmul.f32 %v8243_v43, %v2043_v46  ;;  %vm8251_vm10 = vmmov %vm8244_vm0  ;;  %v8254_v46 = vld [vmem:[#allocation145_spill] sm:$0xff] }
 0x2b9   : > { %vm8252_vm2 = vmmov %vm8244_vm0 }
 0x2ba   : > { %2181 = vadd.xlane.f32.xlu0 %v2180_v25  ;;  %vm8255_vm15 = vmmov %vm8244_vm0 }
 0x2bb   : > { %2190 = vadd.xlane.f32.xlu1 %v2189_v8  ;;  %v6815_v32 = vpop.permute.xlu0 %2380  ;;  %v8245_v8 = vld [vmem:[#allocation141_spill] sm:$0xff]  ;;  %vm8256_vm5 = vmmov %vm8244_vm0 }
 0x2bc   : > { %v6817_v22 = vpop.permute.xlu1 %2355  ;;  %v2076_v44 = vmul.f32 %v8245_v8, %v2044_v11  ;;  %vm8258_vm8 = vmmov %vm8244_vm0 }
 0x2bd   : > { %vm8261_vm3 = vmmov %vm8244_vm0 }
 0x2be   : > { %2187 = vadd.xlane.f32.xlu0 %v2186_v53  ;;  %v8246_v53 = vld [vmem:[#allocation134_spill] sm:$0xff]  ;;  %vm8262_vm12 = vmmov %vm8244_vm0 }
 0x2bf   : > { %2196 = vadd.xlane.f32.xlu1 %v2195_v61  ;;  %v6822_v18 = vpop.eup %3900  ;;  %v6825_v36 = vpop.permute.xlu0 %2390  ;;  %v2074_v61 = vmul.f32 %v8246_v53, %v2042_v49  ;;  %v2050_v49 = vld [vmem:[#allocation3 + $0x48] sm:$0xff]  ;;  %vm8265_vm14 = vmmov %vm8244_vm0 }
 0x2c0   : > { %v6827_v3 = vpop.permute.xlu1 %2365  ;;  %v6833_v55 = vpop.eup %3902  ;;  %vm8266_vm9 = vmmov %vm8244_vm0 }
 0x2c1   : > { %vm8269_vm1 = vmmov %vm8244_vm0 }
 0x2c2   : > { %2193 = vadd.xlane.f32.xlu0 %v2192_v38  ;;  %v2046_v38 = vld [vmem:[#allocation3 + $0x28] sm:$0xff]  ;;  %vm8270_vm4 = vmmov %vm8244_vm0 }
 0x2c3   : > { %v6829_v1 = vpop.permute.xlu0 %2400  ;;  %v2078_v26 = vmul.f32 %v8249_v12, %v2046_v38  ;;  %vm8273_vm7 = vmmov %vm8244_vm0 }
 0x2c4   : > { %v6831_v13 = vpop.permute.xlu1 %2375 }
 0x2c6   : > { %2199 = vadd.xlane.f32.xlu0 %v2198_v39  ;;  %v2077_v39 = vmul.f32 %v8250_v19, %v2045_v28  ;;  %v2052_v28 = vld [vmem:[#allocation3 + $0x58] sm:$0xff] }
 0x2c7   : > { %v6836_v9 = vpop.permute.xlu0 %2410 }
 0x2c8   : > { %v6838_v40 = vpop.permute.xlu1 %2385 }
 0x2cb   : > { %v6840_v5 = vpop.permute.xlu0 %2420 }
 0x2cc   : > { %v6842_v4 = vpop.permute.xlu1 %2395 }
 0x2cf   : > { %v6844_v2 = vpop.permute.xlu0 %2430 }
 0x2d0   : > { %2455 = vperm.xlu1 %3695, %v6822_v18   ;;  %v6846_v10 = vpop.permute.xlu1 %2405 }
 0x2d3   : > { %v6848_v15 = vpop.permute.xlu0 %2440 }
 0x2d4   : > { %v6850_v58 = vpop.permute.xlu1 %2415 }
 0x2d8   : > { %v6853_v33 = vpop.permute.xlu1 %2425 }
 0x2dc   : > { %2450 = vperm.xlu0 %3694, %v6833_v55   ;;  %v6858_v51 = vpop.permute.xlu1 %2435 }
 0x2e0   : > { %v6860_v25 = vpop.permute.xlu1 %2445 }
 0x2ef   : > { %v2107_v23 = vpop.xlane.xlu0 %2106 }
 0x2f0   : > { %v2201_v34 = vadd.f32 %v2107_v23, %v2073_v54 }
 0x2f2   : > { %2234 = vst.msk [vmem:[#allocation3] sm:$0xff] %vm8242_vm13, %v2201_v34  ;;  %v2080_v34 = vmul.f32 %v8254_v46, %v2048_v16  ;;  %vm8275_vm13 = vmmov %vm8244_vm0 }
 0x2f3   : > { %v2113_v50 = vpop.xlane.xlu0 %2112 }
 0x2f4   : > { %v2203_v52 = vadd.f32 %v2113_v50, %v2075_v0  ;;  %v2049_v0 = vld [vmem:[#allocation3 + $0x40] sm:$0xff] }
 0x2f6   : > { %2236 = vst.msk [vmem:[#allocation3 + $0x10] sm:$0xff] %vm8244_vm0, %v2203_v52  ;;  %v8257_v52 = vld [vmem:[#allocation140_spill] sm:$0xff] }
 0x2f7   : > { %v2081_v11 = vmul.f32 %v8257_v52, %v2049_v0 }
 0x2fa   : > { %v2116_v59 = vpop.xlane.xlu0 %2115 }
 0x2fb   : > { %v2204_v30 = vadd.f32 %v2116_v59, %v2076_v44  ;;  %v2051_v59 = vld [vmem:[#allocation3 + $0x50] sm:$0xff] }
 0x2fd   : > { %2237 = vst.msk [vmem:[#allocation3 + $0x18] sm:$0xff] %vm8247_vm11, %v2204_v30  ;;  %v8259_v30 = vld [vmem:[#allocation147_spill] sm:$0xff]  ;;  %vm8278_vm11 = vmmov %vm8244_vm0 }
 0x2fe   : > { %v2082_v53 = vmul.f32 %v8259_v30, %v2050_v49 }
 0x300   : > { %v2110_v14 = vpop.xlane.xlu1 %2109 }
 0x301   : > { %v2202_v60 = vadd.f32 %v2110_v14, %v2074_v61  ;;  %v8260_v61 = vld [vmem:[#allocation142_spill] sm:$0xff] }
 0x302   : > { %v2083_v14 = vmul.f32 %v8260_v61, %v2051_v59  ;;  %v8267_v59 = vld [vmem:[#allocation151_spill] sm:$0xff]  ;;  %v8268_v61 = vld [vmem:[#allocation146_spill] sm:$0xff] }
 0x303   : > { %2235 = vst.msk [vmem:[#allocation3 + $0x8] sm:$0xff] %vm8248_vm6, %v2202_v60  ;;  %vm8280_vm6 = vmmov %vm8244_vm0 }
 0x305   : > { %v2122_v24 = vpop.xlane.xlu0 %2121  ;;  %v3522_v19 = vpop.f32.mrb[0].mxu0 }
 0x306   : > { %v2206_v27 = vadd.f32 %v2122_v24, %v2078_v26  ;;  %v2266_v24 = vld [vmem:[%s4151_s12] sm:$0xff]  ;;  %v3523_v35 = vpop.f32.mrb[1].mxu0 }
 0x307   : > { %v2458_v16 = vmul.f32 %v6714_v48, %v2266_v24  ;;  %v2055_v48 = vld [vmem:[#allocation3 + $0x70] sm:$0xff]  ;;  %v2056_v24 = vld [vmem:[#allocation3 + $0x78] sm:$0xff] }
 0x308   : > { %2239 = vst.msk [vmem:[#allocation3 + $0x28] sm:$0xff] %vm8251_vm10, %v2206_v27  ;;  %v2119_v37 = vpop.xlane.xlu1 %2118  ;;  %v2053_v27 = vld [vmem:[#allocation3 + $0x60] sm:$0xff]  ;;  %vm8282_vm10 = vmmov %vm8244_vm0 }
 0x309   : > { %v2205_v21 = vadd.f32 %v2119_v37, %v2077_v39  ;;  %v2267_v39 = vld [vmem:[%s4151_s12 + $0x8] sm:$0xff]  ;;  %v8263_v37 = vld [vmem:[#allocation149_spill] sm:$0xff] }
 0x30a   : > { %v2459_v0 = vmul.f32 %v6669_v62, %v2267_v39 }
 0x30b   : > { %2238 = vst.msk [vmem:[#allocation3 + $0x20] sm:$0xff] %vm8252_vm2, %v2205_v21  ;;  %v2084_v21 = vmul.f32 %v8263_v37, %v2052_v28  ;;  %v8272_v37 = vld [vmem:[#allocation153_spill] sm:$0xff]  ;;  %vm8284_vm2 = vmmov %vm8244_vm0 }
 0x30e   : > { %v2125_v54 = vpop.xlane.xlu1 %2124 }
 0x30f   : > { %v2207_v23 = vadd.f32 %v2125_v54, %v2079_v57  ;;  %v3524_v57 = vadd.f32 %v3523_v35, %v3522_v19  ;;  %v3525_v54 = vpop.f32.mrb[2].mxu0  ;;  %v2059_v19 = vld [vmem:[#allocation3 + $0x90] sm:$0xff]  ;;  %v8274_v35 = vld [vmem:[#allocation150_spill] sm:$0xff] }
 0x311   : > { %v2128_v43 = vpop.xlane.xlu0 %2127  ;;  %2240 = vst.msk [vmem:[#allocation3 + $0x30] sm:$0xff] %vm8255_vm15, %v2207_v23  ;;  %v8264_v23 = vld [vmem:[#allocation144_spill] sm:$0xff]  ;;  %v2779_v52 = vadd.f32 %v3524_v57, %v2458_v16  ;;  %v2091_v16 = vmul.f32 %v8274_v35, %v2059_v19  ;;  %v2058_v57 = vld [vmem:[#allocation3 + $0x88] sm:$0xff]  ;;  %vm8286_vm15 = vmmov %vm8244_vm0 }
 0x312   : > { %v2208_v50 = vadd.f32 %v2128_v43, %v2080_v34  ;;  %v2085_v46 = vmul.f32 %v8264_v23, %v2053_v27  ;;  %v3526_v43 = vpop.f32.mrb[3].mxu0  ;;  %v8285_v19 = vld [vmem:[#allocation20_spill] sm:$0xff] }
 0x313   : > { %2811 = vst [vmem:[%s4151_s12] sm:$0xff] %v2779_v52 }
 0x314   : > { %2241 = vst.msk [vmem:[#allocation3 + $0x38] sm:$0xff] %vm8256_vm5, %v2208_v50  ;;  %vm8288_vm5 = vmmov %vm8244_vm0 }
 0x315   : > { %v2131_v8 = vpop.xlane.xlu1 %2130 }
 0x316   : > { %v2209_v44 = vadd.f32 %v2131_v8, %v2081_v11  ;;  %v3527_v11 = vadd.f32 %v3526_v43, %v3525_v54  ;;  %v2054_v8 = vld [vmem:[#allocation3 + $0x68] sm:$0xff] }
 0x317   : > { %v2086_v30 = vmul.f32 %v8267_v59, %v2054_v8  ;;  %v8276_v43 = vld [vmem:[#allocation18_spill] sm:$0xff]  ;;  %v2060_v8 = vld [vmem:[#allocation3 + $0x98] sm:$0xff] }
 0x318   : > { %2242 = vst.msk [vmem:[#allocation3 + $0x40] sm:$0xff] %vm8258_vm8, %v2209_v44  ;;  %v2780_v49 = vadd.f32 %v3527_v11, %v2459_v0  ;;  %v2090_v0 = vmul.f32 %v8276_v43, %v2058_v57  ;;  %v2282_v57 = vld [vmem:[%s4151_s12 + $0x80] sm:$0xff]  ;;  %v2283_v43 = vld [vmem:[%s4151_s12 + $0x88] sm:$0xff]  ;;  %vm8290_vm8 = vmmov %vm8244_vm0 }
 0x31a   : > { %2812 = vst [vmem:[%s4151_s12 + $0x8] sm:$0xff] %v2780_v49 }
 0x31c   : > { %v2134_v60 = vpop.xlane.xlu0 %2133 }
 0x31d   : > { %v2137_v38 = vpop.xlane.xlu1 %2136  ;;  %v2210_v12 = vadd.f32 %v2134_v60, %v2082_v53 }
 0x31e   : > { %v2211_v26 = vadd.f32 %v2137_v38, %v2083_v14  ;;  %v2087_v14 = vmul.f32 %v8268_v61, %v2055_v48  ;;  %v2057_v38 = vld [vmem:[#allocation3 + $0x80] sm:$0xff]  ;;  %v2063_v48 = vld [vmem:[#allocation3 + $0xb0] sm:$0xff] }
 0x31f   : > { %2243 = vst.msk [vmem:[#allocation3 + $0x48] sm:$0xff] %vm8261_vm3, %v2210_v12  ;;  %v8281_v61 = vld [vmem:[#allocation17_spill] sm:$0xff]  ;;  %vm8292_vm3 = vmmov %vm8244_vm0 }
 0x320   : > { %2244 = vst.msk [vmem:[#allocation3 + $0x50] sm:$0xff] %vm8262_vm12, %v2211_v26  ;;  %v8271_v26 = vld [vmem:[#allocation148_spill] sm:$0xff]  ;;  %vm8294_vm12 = vmmov %vm8244_vm0 }
 0x321   : > { %v2089_v28 = vmul.f32 %v8271_v26, %v2057_v38  ;;  %v2065_v26 = vld [vmem:[#allocation3 + $0xc0] sm:$0xff] }
 0x324   : > { %v2140_v6 = vpop.xlane.xlu0 %2139 }
 0x325   : > { %v2212_v34 = vadd.f32 %v2140_v6, %v2084_v21  ;;  %v2088_v21 = vmul.f32 %v8272_v37, %v2056_v24  ;;  %v8283_v24 = vld [vmem:[#allocation155_spill] sm:$0xff] }
 0x327   : > { %v2143_v50 = vpop.xlane.xlu1 %2142  ;;  %2245 = vst.msk [vmem:[#allocation3 + $0x58] sm:$0xff] %vm8265_vm14, %v2212_v34  ;;  %vm8296_vm14 = vmmov %vm8244_vm0 }
 0x328   : > { %v2213_v44 = vadd.f32 %v2143_v50, %v2085_v46  ;;  %v2061_v46 = vld [vmem:[#allocation3 + $0xa0] sm:$0xff]  ;;  %v8277_v50 = vld [vmem:[#allocation152_spill] sm:$0xff] }
 0x329   : > { %v2093_v52 = vmul.f32 %v8277_v50, %v2061_v46 }
 0x32a   : > { %2246 = vst.msk [vmem:[#allocation3 + $0x60] sm:$0xff] %vm8266_vm9, %v2213_v44  ;;  %vm8297_vm9 = vmmov %vm8244_vm0 }
 0x32b   : > { %v2146_v53 = vpop.xlane.xlu0 %2145 }
 0x32c   : > { %v2214_v60 = vadd.f32 %v2146_v53, %v2086_v30  ;;  %v2149_v62 = vpop.xlane.xlu1 %2148  ;;  %v8279_v30 = vld [vmem:[#allocation21_spill] sm:$0xff] }
 0x32d   : > { %v2215_v12 = vadd.f32 %v2149_v62, %v2087_v14  ;;  %v2092_v53 = vmul.f32 %v8279_v30, %v2060_v8  ;;  %v2095_v14 = vmul.f32 %v8281_v61, %v2063_v48  ;;  %v2062_v62 = vld [vmem:[#allocation3 + $0xa8] sm:$0xff]  ;;  %v2069_v30 = vld [vmem:[#allocation3 + $0xe0] sm:$0xff] }
 0x32e   : > { %2247 = vst.msk [vmem:[#allocation3 + $0x68] sm:$0xff] %vm8269_vm1, %v2214_v60  ;;  %v2066_v8 = vld [vmem:[#allocation3 + $0xc8] sm:$0xff]  ;;  %vm8299_vm1 = vmmov %vm8244_vm0 }
 0x32f   : > { %2248 = vst.msk [vmem:[#allocation3 + $0x70] sm:$0xff] %vm8270_vm4, %v2215_v12  ;;  %vm8300_vm4 = vmmov %vm8244_vm0 }
 0x330   : > { %v2155_v27 = vpop.xlane.xlu1 %2154 }
 0x331   : > { %v2217_v39 = vadd.f32 %v2155_v27, %v2089_v28  ;;  %v2094_v27 = vmul.f32 %v8283_v24, %v2062_v62 }
 0x333   : > { %2250 = vst.msk [vmem:[#allocation3 + $0x80] sm:$0xff] %vm8273_vm7, %v2217_v39  ;;  %v2152_v6 = vpop.xlane.xlu0 %2151  ;;  %v2097_v39 = vmul.f32 %v8285_v19, %v2065_v26  ;;  %v2268_v19 = vld [vmem:[%s4151_s12 + $0x10] sm:$0xff]  ;;  %vm8301_vm7 = vmmov %vm8244_vm0 }
 0x334   : > { %v2161_v54 = vpop.xlane.xlu1 %2160  ;;  %v2216_v23 = vadd.f32 %v2152_v6, %v2088_v21  ;;  %v2064_v21 = vld [vmem:[#allocation3 + $0xb8] sm:$0xff]  ;;  %v2067_v6 = vld [vmem:[#allocation3 + $0xd0] sm:$0xff] }
 0x335   : > { %v2219_v34 = vadd.f32 %v2161_v54, %v2091_v16 }
 0x336   : > { %2249 = vst.msk [vmem:[#allocation3 + $0x78] sm:$0xff] %vm8275_vm13, %v2216_v23  ;;  %v8287_v23 = vld [vmem:[#allocation156_spill] sm:$0xff] }
 0x337   : > { %2252 = vst.msk [vmem:[#allocation3 + $0x90] sm:$0xff] %vm8244_vm0, %v2219_v34  ;;  %v2158_v11 = vpop.xlane.xlu0 %2157  ;;  %v2096_v46 = vmul.f32 %v8287_v23, %v2064_v21 }
 0x338   : > { %v2167_v44 = vpop.xlane.xlu1 %2166  ;;  %v2218_v49 = vadd.f32 %v2158_v11, %v2090_v0  ;;  %v8289_v0 = vld [vmem:[#allocation154_spill] sm:$0xff] }
 0x339   : > { %v2221_v59 = vadd.f32 %v2167_v44, %v2093_v52  ;;  %v3570_v34 = vpop.f32.mrb[0].mxu1  ;;  %v2099_v50 = vmul.f32 %v8289_v0, %v2067_v6  ;;  %v2474_v44 = vmul.f32 %v6815_v32, %v2282_v57  ;;  %v8293_v32 = vld [vmem:[#allocation157_spill] sm:$0xff]  ;;  %v2269_v6 = vld [vmem:[%s4151_s12 + $0x18] sm:$0xff] }
 0x33a   : > { %2251 = vst.msk [vmem:[#allocation3 + $0x88] sm:$0xff] %vm8278_vm11, %v2218_v49  ;;  %v3571_v11 = vpop.f32.mrb[1].mxu1 }
 0x33b   : > { %2254 = vst.msk [vmem:[#allocation3 + $0xa0] sm:$0xff] %vm8280_vm6, %v2221_v59  ;;  %v2164_v60 = vpop.xlane.xlu0 %2163  ;;  %v3572_v59 = vadd.f32 %v3571_v11, %v3570_v34  ;;  %v2284_v11 = vld [vmem:[%s4151_s12 + $0x90] sm:$0xff] }
 0x33c   : > { %v2173_v38 = vpop.xlane.xlu1 %2172  ;;  %v2220_v12 = vadd.f32 %v2164_v60, %v2092_v53  ;;  %v3573_v53 = vpop.f32.mrb[2].mxu1  ;;  %v2475_v60 = vmul.f32 %v6838_v40, %v2283_v43  ;;  %v2071_v40 = vld [vmem:[#allocation3 + $0xf0] sm:$0xff] }
 0x33d   : > { %v2223_v28 = vadd.f32 %v2173_v38, %v2095_v14  ;;  %v3574_v14 = vpop.f32.mrb[3].mxu1  ;;  %v2795_v62 = vadd.f32 %v3572_v59, %v2474_v44  ;;  %v8291_v38 = vld [vmem:[#allocation158_spill] sm:$0xff]  ;;  %v2103_v43 = vmul.f32 %v6833_v55, %v2071_v40 }
 0x33e   : > { %2253 = vst.msk [vmem:[#allocation3 + $0x98] sm:$0xff] %vm8282_vm10, %v2220_v12  ;;  %v2098_v12 = vmul.f32 %v8291_v38, %v2066_v8  ;;  %v3575_v26 = vadd.f32 %v3574_v14, %v3573_v53  ;;  %v8298_v14 = vld [vmem:[#allocation13_spill] sm:$0xff] }
 0x33f   : > { %2256 = vst.msk [vmem:[#allocation3 + $0xb0] sm:$0xff] %vm8284_vm2, %v2223_v28  ;;  %v2170_v37 = vpop.xlane.xlu0 %2169  ;;  %v2101_v28 = vmul.f32 %v8293_v32, %v2069_v30  ;;  %2827 = vst [vmem:[%s4151_s12 + $0x80] sm:$0xff] %v2795_v62  ;;  %v2476_v62 = vmul.f32 %v6825_v36, %v2284_v11  ;;  %v2072_v32 = vld [vmem:[#allocation3 + $0xf8] sm:$0xff] }
 0x340   : > { %v2179_v35 = vpop.xlane.xlu1 %2178  ;;  %v2222_v16 = vadd.f32 %v2170_v37, %v2094_v27  ;;  %v2068_v27 = vld [vmem:[#allocation3 + $0xd8] sm:$0xff]  ;;  %v2796_v21 = vadd.f32 %v3575_v26, %v2475_v60 }
 0x341   : > { %v2225_v54 = vadd.f32 %v2179_v35, %v2097_v39 }
 0x342   : > { %2255 = vst.msk [vmem:[#allocation3 + $0xa8] sm:$0xff] %vm8286_vm15, %v2222_v16  ;;  %v3528_v16 = vpop.f32.mrb[4].mxu0  ;;  %2828 = vst [vmem:[%s4151_s12 + $0x88] sm:$0xff] %v2796_v21  ;;  %v2271_v21 = vld [vmem:[%s4151_s12 + $0x28] sm:$0xff] }
 0x343   : > { %2258 = vst.msk [vmem:[#allocation3 + $0xc0] sm:$0xff] %vm8288_vm5, %v2225_v54  ;;  %v2176_v52 = vpop.xlane.xlu0 %2175  ;;  %v3529_v57 = vpop.f32.mrb[5].mxu0  ;;  %v8295_v54 = vld [vmem:[#allocation9_spill] sm:$0xff] }
 0x344   : > { %v2185_v49 = vpop.xlane.xlu1 %2184  ;;  %v2224_v48 = vadd.f32 %v2176_v52, %v2096_v46  ;;  %v2100_v23 = vmul.f32 %v8295_v54, %v2068_v27  ;;  %v2460_v46 = vmul.f32 %v6735_v63, %v2268_v19  ;;  %v3530_v34 = vadd.f32 %v3529_v57, %v3528_v16  ;;  %v2070_v52 = vld [vmem:[#allocation3 + $0xe8] sm:$0xff] }
 0x345   : > { %v2227_v61 = vadd.f32 %v2185_v49, %v2099_v50  ;;  %v3531_v50 = vpop.f32.mrb[6].mxu0  ;;  %v3576_v53 = vpop.f32.mrb[4].mxu1  ;;  %v2102_v60 = vmul.f32 %v8298_v14, %v2070_v52  ;;  %v2287_v52 = vld [vmem:[%s4151_s12 + $0xa8] sm:$0xff] }
 0x346   : > { %2257 = vst.msk [vmem:[#allocation3 + $0xb8] sm:$0xff] %vm8290_vm8, %v2224_v48  ;;  %v3532_v49 = vpop.f32.mrb[7].mxu0  ;;  %v2461_v48 = vmul.f32 %v6763_v56, %v2269_v6  ;;  %v2781_v59 = vadd.f32 %v3530_v34, %v2460_v46  ;;  %v3577_v55 = vpop.f32.mrb[5].mxu1 }
 0x347   : > { %2260 = vst.msk [vmem:[#allocation3 + $0xd0] sm:$0xff] %vm8292_vm3, %v2227_v61  ;;  %v2182_v24 = vpop.xlane.xlu0 %2181  ;;  %v3533_v63 = vadd.f32 %v3532_v49, %v3531_v50  ;;  %v2285_v61 = vld [vmem:[%s4151_s12 + $0x98] sm:$0xff]  ;;  %v3578_v56 = vadd.f32 %v3577_v55, %v3576_v53  ;;  %v3579_v26 = vpop.f32.mrb[6].mxu1 }
 0x348   : > { %v2191_v39 = vpop.xlane.xlu1 %2190  ;;  %v2226_v37 = vadd.f32 %v2182_v24, %v2098_v12  ;;  %2813 = vst [vmem:[%s4151_s12 + $0x10] sm:$0xff] %v2781_v59  ;;  %v3580_v27 = vpop.f32.mrb[7].mxu1  ;;  %v2477_v19 = vmul.f32 %v6842_v4, %v2285_v61  ;;  %v2273_v55 = vld [vmem:[%s4151_s12 + $0x38] sm:$0xff] }
 0x349   : > { %v2229_v35 = vadd.f32 %v2191_v39, %v2101_v28  ;;  %v2782_v38 = vadd.f32 %v3533_v63, %v2461_v48  ;;  %v2270_v28 = vld [vmem:[%s4151_s12 + $0x20] sm:$0xff]  ;;  %v2797_v39 = vadd.f32 %v3578_v56, %v2476_v62  ;;  %v2479_v48 = vmul.f32 %v6846_v10, %v2287_v52  ;;  %v2272_v63 = vld [vmem:[%s4151_s12 + $0x30] sm:$0xff] }
 0x34a   : > { %2259 = vst.msk [vmem:[#allocation3 + $0xc8] sm:$0xff] %vm8294_vm12, %v2226_v37  ;;  %v3581_v37 = vadd.f32 %v3580_v27, %v3579_v26  ;;  %v2462_v16 = vmul.f32 %v6712_v42, %v2270_v28  ;;  %v2464_v14 = vmul.f32 %v6733_v29, %v2272_v63  ;;  %v2465_v56 = vmul.f32 %v6800_v17, %v2273_v55  ;;  %v2289_v28 = vld [vmem:[%s4151_s12 + $0xb8] sm:$0xff] }
 0x34b   : > { %2262 = vst.msk [vmem:[#allocation3 + $0xe0] sm:$0xff] %vm8296_vm14, %v2229_v35  ;;  %v2188_v0 = vpop.xlane.xlu0 %2187  ;;  %2814 = vst [vmem:[%s4151_s12 + $0x18] sm:$0xff] %v2782_v38  ;;  %v3534_v36 = vpop.f32.mrb[8].mxu0  ;;  %v2104_v35 = vmul.f32 %v6822_v18, %v2072_v32  ;;  %v2288_v38 = vld [vmem:[%s4151_s12 + $0xb0] sm:$0xff] }
 0x34c   : > { %v2197_v8 = vpop.xlane.xlu1 %2196  ;;  %v2228_v44 = vadd.f32 %v2188_v0, %v2100_v23  ;;  %v3535_v40 = vpop.f32.mrb[9].mxu0  ;;  %2829 = vst [vmem:[%s4151_s12 + $0x90] sm:$0xff] %v2797_v39  ;;  %v2798_v6 = vadd.f32 %v3581_v37, %v2477_v19  ;;  %v2286_v23 = vld [vmem:[%s4151_s12 + $0xa0] sm:$0xff]  ;;  %v2480_v27 = vmul.f32 %v6836_v9, %v2288_v38 }
 0x34d   : > { %v2231_v30 = vadd.f32 %v2197_v8, %v2103_v43  ;;  %v3536_v57 = vadd.f32 %v3535_v40, %v3534_v36  ;;  %v3537_v4 = vpop.f32.mrb[10].mxu0  ;;  %v2463_v43 = vmul.f32 %v6779_v31, %v2271_v21  ;;  %v2478_v11 = vmul.f32 %v6829_v1, %v2286_v23  ;;  %v2274_v36 = vld [vmem:[%s4151_s12 + $0x40] sm:$0xff] }
 0x34e   : > { %2261 = vst.msk [vmem:[#allocation3 + $0xd8] sm:$0xff] %vm8297_vm9, %v2228_v44  ;;  %v3538_v34 = vpop.f32.mrb[11].mxu0  ;;  %2830 = vst [vmem:[%s4151_s12 + $0x98] sm:$0xff] %v2798_v6  ;;  %v2481_v21 = vmul.f32 %v6850_v58, %v2289_v28  ;;  %v2466_v9 = vmul.f32 %v6761_v47, %v2274_v36  ;;  %v2278_v28 = vld [vmem:[%s4151_s12 + $0x60] sm:$0xff] }
 0x34f   : > { %2264 = vst.msk [vmem:[#allocation3 + $0xf0] sm:$0xff] %vm8299_vm1, %v2231_v30  ;;  %v2194_v12 = vpop.xlane.xlu0 %2193  ;;  %v2783_v0 = vadd.f32 %v3536_v57, %v2462_v16  ;;  %v3539_v50 = vadd.f32 %v3538_v34, %v3537_v4  ;;  %v2275_v16 = vld [vmem:[%s4151_s12 + $0x48] sm:$0xff]  ;;  %v2294_v36 = vld [vmem:[%s4151_s12 + $0xe0] sm:$0xff] }
 0x350   : > { %v2230_v24 = vadd.f32 %v2194_v12, %v2102_v60  ;;  %v3582_v18 = vpop.f32.mrb[8].mxu1  ;;  %v2467_v58 = vmul.f32 %v6813_v45, %v2275_v16  ;;  %v2295_v16 = vld [vmem:[%s4151_s12 + $0xe8] sm:$0xff] }
 0x351   : > { %v3583_v42 = vpop.f32.mrb[9].mxu1  ;;  %2815 = vst [vmem:[%s4151_s12 + $0x20] sm:$0xff] %v2783_v0  ;;  %v2784_v8 = vadd.f32 %v3539_v50, %v2463_v43  ;;  %v2291_v43 = vld [vmem:[%s4151_s12 + $0xc8] sm:$0xff] }
 0x352   : > { %2263 = vst.msk [vmem:[#allocation3 + $0xe8] sm:$0xff] %vm8300_vm4, %v2230_v24  ;;  %v3584_v44 = vadd.f32 %v3583_v42, %v3582_v18  ;;  %v3585_v49 = vpop.f32.mrb[10].mxu1 }
 0x353   : > { %v2200_v54 = vpop.xlane.xlu0 %2199  ;;  %v3586_v31 = vpop.f32.mrb[11].mxu1  ;;  %2816 = vst [vmem:[%s4151_s12 + $0x28] sm:$0xff] %v2784_v8 }
 0x354   : > { %v2232_v46 = vadd.f32 %v2200_v54, %v2104_v35  ;;  %v2799_v59 = vadd.f32 %v3584_v44, %v2478_v11  ;;  %v3587_v30 = vadd.f32 %v3586_v31, %v3585_v49  ;;  %v2290_v54 = vld [vmem:[%s4151_s12 + $0xc0] sm:$0xff]  ;;  %v2276_v44 = vld [vmem:[%s4151_s12 + $0x50] sm:$0xff]  ;;  %v2483_v49 = vmul.f32 %v6853_v33, %v2291_v43 }
 0x355   : > { %v2482_v52 = vmul.f32 %v6840_v5, %v2290_v54  ;;  %v2468_v5 = vmul.f32 %v6777_v7, %v2276_v44  ;;  %v2486_v54 = vmul.f32 %v6848_v15, %v2294_v36  ;;  %v2892_v36 = vld [vmem:[#allocation3 + $0x68] sm:$0xff] (!%p3501_p13) }
 0x356   : > { %2265 = vst.msk [vmem:[#allocation3 + $0xf8] sm:$0xff] %vm8301_vm7, %v2232_v46  ;;  %2831 = vst [vmem:[%s4151_s12 + $0xa0] sm:$0xff] %v2799_v59  ;;  %v2800_v53 = vadd.f32 %v3587_v30, %v2479_v48  ;;  %v2277_v59 = vld [vmem:[%s4151_s12 + $0x58] sm:$0xff] }
 0x357   : > { %v3540_v61 = vpop.f32.mrb[12].mxu0  ;;  %v2469_v33 = vmul.f32 %v6817_v22, %v2277_v59 }
 0x358   : > { %v3541_v1 = vpop.f32.mrb[13].mxu0  ;;  %2832 = vst [vmem:[%s4151_s12 + $0xa8] sm:$0xff] %v2800_v53  ;;  %v2292_v53 = vld [vmem:[%s4151_s12 + $0xd0] sm:$0xff] }
 0x359   : > { %v3542_v60 = vadd.f32 %v3541_v1, %v3540_v61  ;;  %v3543_v62 = vpop.f32.mrb[14].mxu0 }
 0x35a   : > { %v3544_v10 = vpop.f32.mrb[15].mxu0 }
 0x35b   : > { %v2785_v12 = vadd.f32 %v3542_v60, %v2464_v14  ;;  %v3545_v26 = vadd.f32 %v3544_v10, %v3543_v62  ;;  %v2293_v60 = vld [vmem:[%s4151_s12 + $0xd8] sm:$0xff] }
 0x35d   : > { %v3588_v32 = vpop.f32.mrb[12].mxu1  ;;  %2817 = vst [vmem:[%s4151_s12 + $0x30] sm:$0xff] %v2785_v12  ;;  %v2786_v29 = vadd.f32 %v3545_v26, %v2465_v56  ;;  %v2484_v56 = vmul.f32 %v6844_v2, %v2292_v53  ;;  %v2470_v2 = vmul.f32 %v6798_v41, %v2278_v28 }
 0x35e   : > { %v3589_v24 = vpop.f32.mrb[13].mxu1 }
 0x35f   : > { %v3590_v19 = vadd.f32 %v3589_v24, %v3588_v32  ;;  %v3591_v39 = vpop.f32.mrb[14].mxu1  ;;  %2818 = vst [vmem:[%s4151_s12 + $0x38] sm:$0xff] %v2786_v29  ;;  %v2485_v24 = vmul.f32 %v6858_v51, %v2293_v60  ;;  %v2879_v60 = vld [vmem:[#allocation3] sm:$0xff] (!%p3501_p13) }
 0x360   : > { %v3592_v37 = vpop.f32.mrb[15].mxu1 }
 0x361   : > { %v2801_v17 = vadd.f32 %v3590_v19, %v2480_v27  ;;  %v3593_v40 = vadd.f32 %v3592_v37, %v3591_v39  ;;  %v2279_v19 = vld [vmem:[%s4151_s12 + $0x68] sm:$0xff] }
 0x362   : > { %v2471_v51 = vmul.f32 %v6827_v3, %v2279_v19  ;;  %v2890_v19 = vld [vmem:[#allocation3 + $0x58] sm:$0xff] (!%p3501_p13) }
 0x363   : > { %v3546_v35 = vpop.f32.mrb[16].mxu0  ;;  %2833 = vst [vmem:[%s4151_s12 + $0xb0] sm:$0xff] %v2801_v17  ;;  %v2802_v6 = vadd.f32 %v3593_v40, %v2481_v21 }
 0x364   : > { %v3547_v57 = vpop.f32.mrb[17].mxu0 }
 0x365   : > { %v3548_v4 = vadd.f32 %v3547_v57, %v3546_v35  ;;  %v3549_v23 = vpop.f32.mrb[18].mxu0  ;;  %2834 = vst [vmem:[%s4151_s12 + $0xb8] sm:$0xff] %v2802_v6 }
 0x366   : > { %v3550_v46 = vpop.f32.mrb[19].mxu0  ;;  %v3594_v34 = vpop.f32.mrb[16].mxu1 }
 0x367   : > { %v2787_v0 = vadd.f32 %v3548_v4, %v2466_v9  ;;  %v3551_v50 = vadd.f32 %v3550_v46, %v3549_v23  ;;  %v3595_v18 = vpop.f32.mrb[17].mxu1 }
 0x368   : > { %v3596_v42 = vadd.f32 %v3595_v18, %v3594_v34  ;;  %v3597_v47 = vpop.f32.mrb[18].mxu1  ;;  %v2280_v34 = vld [vmem:[%s4151_s12 + $0x70] sm:$0xff] }
 0x369   : > { %2819 = vst [vmem:[%s4151_s12 + $0x40] sm:$0xff] %v2787_v0  ;;  %v2788_v11 = vadd.f32 %v3551_v50, %v2467_v58  ;;  %v3598_v8 = vpop.f32.mrb[19].mxu1  ;;  %v2487_v58 = vmul.f32 %v6860_v25, %v2295_v16  ;;  %v2281_v50 = vld [vmem:[%s4151_s12 + $0x78] sm:$0xff]  ;;  %v2472_v15 = vmul.f32 %v6811_v20, %v2280_v34  ;;  %v2893_v16 = vld [vmem:[#allocation3 + $0x70] sm:$0xff] (!%p3501_p13) }
 0x36a   : > { %v2803_v31 = vadd.f32 %v3596_v42, %v2482_v52  ;;  %v3599_v45 = vadd.f32 %v3598_v8, %v3597_v47  ;;  %v2296_v42 = vld [vmem:[%s4151_s12 + $0xf0] sm:$0xff]  ;;  %v2451_v47 = vpop.permute.xlu0 %2450  ;;  %v2473_v25 = vmul.f32 %v6831_v13, %v2281_v50  ;;  %v2902_v50 = vld [vmem:[#allocation3 + $0xb8] sm:$0xff] (!%p3501_p13) }
 0x36b   : > { %2820 = vst [vmem:[%s4151_s12 + $0x48] sm:$0xff] %v2788_v11  ;;  %v3552_v48 = vpop.f32.mrb[20].mxu0  ;;  %v2881_v13 = vld [vmem:[#allocation3 + $0x10] sm:$0xff] (!%p3501_p13) }
 0x36c   : > { %2835 = vst [vmem:[%s4151_s12 + $0xc0] sm:$0xff] %v2803_v31  ;;  %v2804_v30 = vadd.f32 %v3599_v45, %v2483_v49  ;;  %v3553_v63 = vpop.f32.mrb[21].mxu0  ;;  %v2297_v31 = vld [vmem:[%s4151_s12 + $0xf8] sm:$0xff]  ;;  %v2456_v45 = vpop.permute.xlu1 %2455  ;;  %3906 = vrcp.f32 (!%p3501_p13), %v2881_v13 }
 0x36d   : > { %v3554_v61 = vadd.f32 %v3553_v63, %v3552_v48  ;;  %v3555_v55 = vpop.f32.mrb[22].mxu0  ;;  %v2488_v63 = vmul.f32 %v2451_v47, %v2296_v42  ;;  %3908 = vrcp.f32 (!%p3501_p13), %v2879_v60  ;;  %v2904_v42 = vld [vmem:[#allocation3 + $0xc8] sm:$0xff] (!%p3501_p13)  ;;  %v2945_v60 = vld [vmem:[%s4151_s12 + $0x10] sm:$0xff] (!%p3501_p13) }
 0x36e   : > { %2836 = vst [vmem:[%s4151_s12 + $0xc8] sm:$0xff] %v2804_v30  ;;  %v3556_v1 = vpop.f32.mrb[23].mxu0  ;;  %v3600_v14 = vpop.f32.mrb[20].mxu1 }
 0x36f   : > { %v2789_v62 = vadd.f32 %v3554_v61, %v2468_v5  ;;  %v3557_v38 = vadd.f32 %v3556_v1, %v3555_v55  ;;  %v3601_v10 = vpop.f32.mrb[21].mxu1  ;;  %v2489_v55 = vmul.f32 %v2456_v45, %v2297_v31  ;;  %v2908_v45 = vld [vmem:[#allocation3 + $0xe8] sm:$0xff] (!%p3501_p13) }
 0x370   : > { %v3602_v12 = vadd.f32 %v3601_v10, %v3600_v14  ;;  %v3603_v7 = vpop.f32.mrb[22].mxu1  ;;  %v2880_v10 = vld [vmem:[#allocation3 + $0x8] sm:$0xff] (!%p3501_p13) }
 0x371   : > { %2821 = vst [vmem:[%s4151_s12 + $0x50] sm:$0xff] %v2789_v62  ;;  %v2790_v26 = vadd.f32 %v3557_v38, %v2469_v33  ;;  %v3604_v32 = vpop.f32.mrb[23].mxu1  ;;  %v2882_v62 = vld [vmem:[#allocation3 + $0x18] sm:$0xff] (!%p3501_p13)  ;;  %v4029_v38 = vmov (!%p3501_p13), 0  }
 0x372   : > { %v2805_v27 = vadd.f32 %v3602_v12, %v2484_v56  ;;  %v3605_v22 = vadd.f32 %v3604_v32, %v3603_v7  ;;  %3905 = vset.pattern.permute.xlu1 (!%p3501_p13), %v4029_v38  ;;  %3904 = vset.pattern.permute.xlu0 (!%p3501_p13), %v4029_v38  ;;  %3910 = vrcp.f32 (!%p3501_p13), %v2882_v62  ;;  %v2884_v56 = vld [vmem:[#allocation3 + $0x28] sm:$0xff] (!%p3501_p13)  ;;  %v2883_v12 = vld [vmem:[#allocation3 + $0x20] sm:$0xff] (!%p3501_p13)  ;;  %v2886_v7 = vld [vmem:[#allocation3 + $0x38] sm:$0xff] (!%p3501_p13) }
 0x373   : > { %2822 = vst [vmem:[%s4151_s12 + $0x58] sm:$0xff] %v2790_v26  ;;  %v3558_v29 = vpop.f32.mrb[24].mxu0  ;;  %3912 = vrcp.f32 (!%p3501_p13), %v2880_v10  ;;  %v2885_v26 = vld [vmem:[#allocation3 + $0x30] sm:$0xff] (!%p3501_p13)  ;;  %v2943_v62 = vld [vmem:[%s4151_s12] sm:$0xff] (!%p3501_p13) }
 0x374   : > { %2837 = vst [vmem:[%s4151_s12 + $0xd0] sm:$0xff] %v2805_v27  ;;  %v2806_v39 = vadd.f32 %v3605_v22, %v2485_v24  ;;  %v3559_v37 = vpop.f32.mrb[25].mxu0  ;;  %3914 = vrcp.f32 (!%p3501_p13), %v2884_v56  ;;  %v2888_v24 = vld [vmem:[#allocation3 + $0x48] sm:$0xff] (!%p3501_p13)  ;;  %v2887_v22 = vld [vmem:[#allocation3 + $0x40] sm:$0xff] (!%p3501_p13) }
 0x375   : > { %v3560_v21 = vadd.f32 %v3559_v37, %v3558_v29  ;;  %v3561_v17 = vpop.f32.mrb[26].mxu0  ;;  %3916 = vrcp.f32 (!%p3501_p13), %v2883_v12  ;;  %v2889_v37 = vld [vmem:[#allocation3 + $0x50] sm:$0xff] (!%p3501_p13)  ;;  %v7022_v38 = vld [vmem:[%s7143_s4] ss:$0 sm:$0xff] (!%p3501_p13) }
 0x376   : > { %2838 = vst [vmem:[%s4151_s12 + $0xd8] sm:$0xff] %v2806_v39  ;;  %v3562_v40 = vpop.f32.mrb[27].mxu0  ;;  %v3606_v35 = vpop.f32.mrb[24].mxu1  ;;  %3918 = vrcp.f32 (!%p3501_p13), %v2886_v7 }
 0x377   : > { %v2791_v6 = vadd.f32 %v3560_v21, %v2470_v2  ;;  %v3563_v57 = vadd.f32 %v3562_v40, %v3561_v17  ;;  %v3607_v9 = vpop.f32.mrb[25].mxu1  ;;  %v3907_v32 = vpop.eup (!%p3501_p13), %3906  ;;  %3920 = vrcp.f32 (!%p3501_p13), %v2885_v26  ;;  %v2891_v17 = vld [vmem:[#allocation3 + $0x60] sm:$0xff] (!%p3501_p13)  ;;  %v2946_v26 = vld [vmem:[%s4151_s12 + $0x18] sm:$0xff] (!%p3501_p13) }
 0x378   : > { %v3608_v4 = vadd.f32 %v3607_v9, %v3606_v35  ;;  %v3609_v41 = vpop.f32.mrb[26].mxu1  ;;  %v3909_v28 = vpop.eup (!%p3501_p13), %3908  ;;  %2987 = vperm.xlu1 (!%p3501_p13), %3905, %v3907_v32   ;;  %3922 = vrcp.f32 (!%p3501_p13), %v2888_v24  ;;  %v2894_v35 = vld [vmem:[#allocation3 + $0x78] sm:$0xff] (!%p3501_p13) }
 0x379   : > { %2823 = vst [vmem:[%s4151_s12 + $0x60] sm:$0xff] %v2791_v6  ;;  %v2792_v23 = vadd.f32 %v3563_v57, %v2471_v51  ;;  %v3610_v46 = vpop.f32.mrb[27].mxu1  ;;  %2977 = vperm.xlu0 (!%p3501_p13), %3904, %v3909_v28   ;;  %3924 = vrcp.f32 (!%p3501_p13), %v2887_v22  ;;  %v2896_v57 = vld [vmem:[#allocation3 + $0x88] sm:$0xff] (!%p3501_p13) }
 0x37a   : > { %v2807_v43 = vadd.f32 %v3608_v4, %v2486_v54  ;;  %v3611_v3 = vadd.f32 %v3610_v46, %v3609_v41  ;;  %3926 = vrcp.f32 (!%p3501_p13), %v2890_v19  ;;  %v2895_v54 = vld [vmem:[#allocation3 + $0x80] sm:$0xff] (!%p3501_p13)  ;;  %v2898_v41 = vld [vmem:[#allocation3 + $0x98] sm:$0xff] (!%p3501_p13)  ;;  %v2897_v46 = vld [vmem:[#allocation3 + $0x90] sm:$0xff] (!%p3501_p13) }
 0x37b   : > { %2824 = vst [vmem:[%s4151_s12 + $0x68] sm:$0xff] %v2792_v23  ;;  %v3564_v0 = vpop.f32.mrb[28].mxu0  ;;  %3928 = vrcp.f32 (!%p3501_p13), %v2889_v37  ;;  %v2944_v28 = vld [vmem:[%s4151_s12 + $0x8] sm:$0xff] (!%p3501_p13) }
 0x37c   : > { %2839 = vst [vmem:[%s4151_s12 + $0xe0] sm:$0xff] %v2807_v43  ;;  %v2808_v18 = vadd.f32 %v3611_v3, %v2487_v58  ;;  %v3565_v52 = vpop.f32.mrb[29].mxu0  ;;  %v3911_v27 = vpop.eup (!%p3501_p13), %3910  ;;  %3930 = vrcp.f32 (!%p3501_p13), %v2892_v36  ;;  %v2900_v58 = vld [vmem:[#allocation3 + $0xa8] sm:$0xff] (!%p3501_p13)  ;;  %v2899_v3 = vld [vmem:[#allocation3 + $0xa0] sm:$0xff] (!%p3501_p13) }
 0x37d   : > { %v3566_v11 = vadd.f32 %v3565_v52, %v3564_v0  ;;  %v3567_v8 = vpop.f32.mrb[30].mxu0  ;;  %v3913_v29 = vpop.eup (!%p3501_p13), %3912  ;;  %2992 = vperm.xlu1 (!%p3501_p13), %3905, %v3911_v27   ;;  %3932 = vrcp.f32 (!%p3501_p13), %v2891_v17  ;;  %v2901_v52 = vld [vmem:[#allocation3 + $0xb0] sm:$0xff] (!%p3501_p13) }
 0x37e   : > { %2840 = vst [vmem:[%s4151_s12 + $0xe8] sm:$0xff] %v2808_v18  ;;  %v3568_v44 = vpop.f32.mrb[31].mxu0  ;;  %v3612_v49 = vpop.f32.mrb[28].mxu1  ;;  %2982 = vperm.xlu0 (!%p3501_p13), %3904, %v3913_v29   ;;  %3934 = vrcp.f32 (!%p3501_p13), %v2894_v35 }
 0x37f   : > { %v2793_v48 = vadd.f32 %v3566_v11, %v2472_v15  ;;  %v3569_v59 = vadd.f32 %v3568_v44, %v3567_v8  ;;  %v3613_v30 = vpop.f32.mrb[29].mxu1  ;;  %v3915_v39 = vpop.eup (!%p3501_p13), %3914  ;;  %3936 = vrcp.f32 (!%p3501_p13), %v2893_v16  ;;  %v2903_v11 = vld [vmem:[#allocation3 + $0xc0] sm:$0xff] (!%p3501_p13)  ;;  %v2906_v44 = vld [vmem:[#allocation3 + $0xd8] sm:$0xff] (!%p3501_p13) }
 0x380   : > { %v3614_v20 = vadd.f32 %v3613_v30, %v3612_v49  ;;  %v3615_v5 = vpop.f32.mrb[30].mxu1  ;;  %2878 = sbr.rel (%p3501_p13) target bundleno = 1085 (0x43d), region = 71  ;;  %v3917_v2 = vpop.eup (!%p3501_p13), %3916  ;;  %3938 = vrcp.f32 (!%p3501_p13), %v2896_v57 }
 0x381   : > { %2825 = vst [vmem:[%s4151_s12 + $0x70] sm:$0xff] %v2793_v48  ;;  %v2794_v53 = vadd.f32 %v3569_v59, %v2473_v25  ;;  %v3616_v61 = vpop.f32.mrb[31].mxu1  ;;  %3002 = vperm.xlu1 (!%p3501_p13), %3905, %v3915_v39   ;;  %v3919_v21 = vpop.eup (!%p3501_p13), %3918  ;;  %3940 = vrcp.f32 (!%p3501_p13), %v2895_v54  ;;  %v2905_v25 = vld [vmem:[#allocation3 + $0xd0] sm:$0xff] (!%p3501_p13)  ;;  %v2907_v59 = vld [vmem:[#allocation3 + $0xe0] sm:$0xff] (!%p3501_p13) }
 0x382   : > { %v2809_v1 = vadd.f32 %v3614_v20, %v2488_v63  ;;  %v3617_v14 = vadd.f32 %v3616_v61, %v3615_v5  ;;  %2997 = vperm.xlu0 (!%p3501_p13), %3904, %v3917_v2   ;;  %v3921_v40 = vpop.eup (!%p3501_p13), %3920  ;;  %3942 = vrcp.f32 (!%p3501_p13), %v2898_v41  ;;  %v2910_v63 = vld [vmem:[#allocation3 + $0xf8] sm:$0xff] (!%p3501_p13)  ;;  %v2909_v5 = vld [vmem:[#allocation3 + $0xf0] sm:$0xff] (!%p3501_p13)  ;;  %v2948_v2 = vld [vmem:[%s4151_s12 + $0x28] sm:$0xff] (!%p3501_p13) }
 0x383   : > { %2826 = vst [vmem:[%s4151_s12 + $0x78] sm:$0xff] %v2794_v53  ;;  %v3923_v51 = vpop.eup (!%p3501_p13), %3922  ;;  %3944 = vrcp.f32 (!%p3501_p13), %v2897_v46 }
 0x384   : > { %2841 = vst [vmem:[%s4151_s12 + $0xf0] sm:$0xff] %v2809_v1  ;;  %v2810_v33 = vadd.f32 %v3617_v14, %v2489_v55  ;;  %v3925_v6 = vpop.eup (!%p3501_p13), %3924  ;;  %3946 = vrcp.f32 (!%p3501_p13), %v2900_v58 }
 0x385   : > { %3012 = vperm.xlu1 (!%p3501_p13), %3905, %v3919_v21   ;;  %v3927_v9 = vpop.eup (!%p3501_p13), %3926  ;;  %3948 = vrcp.f32 (!%p3501_p13), %v2899_v3  ;;  %v2947_v21 = vld [vmem:[%s4151_s12 + $0x20] sm:$0xff] (!%p3501_p13) }
 0x386   : > { %2842 = vst [vmem:[%s4151_s12 + $0xf8] sm:$0xff] %v2810_v33  ;;  %3007 = vperm.xlu0 (!%p3501_p13), %3904, %v3921_v40   ;;  %v3929_v4 = vpop.eup (!%p3501_p13), %3928  ;;  %3950 = vrcp.f32 (!%p3501_p13), %v2902_v50 }
 0x387   : > { %v3931_v23 = vpop.eup %3930  ;;  %3952 = vrcp.f32 %v2901_v52 }
 0x388   : > { %v3933_v34 = vpop.eup %3932  ;;  %3954 = vrcp.f32 %v2904_v42 }
 0x389   : > { %3022 = vperm.xlu1 %3905, %v3923_v51   ;;  %v3935_v43 = vpop.eup %3934  ;;  %3956 = vrcp.f32 %v2903_v11 }
 0x38a   : > { %3017 = vperm.xlu0 %3904, %v3925_v6   ;;  %v3937_v0 = vpop.eup %3936  ;;  %3958 = vrcp.f32 %v2906_v44 }
 0x38b   : > { %v3939_v18 = vpop.eup %3938  ;;  %3960 = vrcp.f32 %v2905_v25 }
 0x38c   : > { %v3941_v15 = vpop.eup %3940  ;;  %3962 = vrcp.f32 %v2908_v45 }
 0x38d   : > { %3032 = vperm.xlu1 %3905, %v3927_v9   ;;  %v3943_v47 = vpop.eup %3942  ;;  %3964 = vrcp.f32 %v2907_v59  ;;  %v2950_v9 = vld [vmem:[%s4151_s12 + $0x38] sm:$0xff] }
 0x38e   : > { %3027 = vperm.xlu0 %3904, %v3929_v4   ;;  %v3945_v8 = vpop.eup %3944  ;;  %3966 = vrcp.f32 %v2910_v63  ;;  %v2949_v4 = vld [vmem:[%s4151_s12 + $0x30] sm:$0xff] }
 0x38f   : > { %v3947_v49 = vpop.eup %3946  ;;  %3968 = vrcp.f32 %v2909_v5 }
 0x390   : > { %v3949_v31 = vpop.eup %3948 }
 0x391   : > { %3042 = vperm.xlu1 %3905, %v3931_v23   ;;  %v3951_v48 = vpop.eup %3950 }
 0x392   : > { %3037 = vperm.xlu0 %3904, %v3933_v34   ;;  %v3953_v30 = vpop.eup %3952 }
 0x393   : > { %v3955_v20 = vpop.eup %3954 }
 0x394   : > { %v3957_v53 = vpop.eup %3956 }
 0x395   : > { %3052 = vperm.xlu1 %3905, %v3935_v43   ;;  %v3959_v61 = vpop.eup %3958 }
 0x396   : > { %3047 = vperm.xlu0 %3904, %v3937_v0   ;;  %v3961_v55 = vpop.eup %3960  ;;  %v2952_v0 = vld [vmem:[%s4151_s12 + $0x48] sm:$0xff] }
 0x397   : > { %v3963_v1 = vpop.eup %3962 }
 0x398   : > { %v3965_v14 = vpop.eup %3964 }
 0x399   : > { %3062 = vperm.xlu1 %3905, %v3939_v18   ;;  %v3967_v33 = vpop.eup %3966  ;;  %v2951_v18 = vld [vmem:[%s4151_s12 + $0x40] sm:$0xff] }
 0x39a   : > { %3057 = vperm.xlu0 %3904, %v3941_v15   ;;  %v3969_v13 = vpop.eup %3968 }
 0x39d   : > { %3072 = vperm.xlu1 %3905, %v3943_v47  }
 0x39e   : > { %3067 = vperm.xlu0 %3904, %v3945_v8  }
 0x3a1   : > { %3082 = vperm.xlu1 %3905, %v3947_v49   ;;  %v2954_v49 = vld [vmem:[%s4151_s12 + $0x58] sm:$0xff] }
 0x3a2   : > { %3077 = vperm.xlu0 %3904, %v3949_v31   ;;  %v2953_v31 = vld [vmem:[%s4151_s12 + $0x50] sm:$0xff] }
 0x3a5   : > { %3092 = vperm.xlu1 %3905, %v3951_v48  }
 0x3a6   : > { %3087 = vperm.xlu0 %3904, %v3953_v30  }
 0x3a9   : > { %3102 = vperm.xlu1 %3905, %v3955_v20  }
 0x3aa   : > { %3097 = vperm.xlu0 %3904, %v3957_v53   ;;  %v2956_v53 = vld [vmem:[%s4151_s12 + $0x68] sm:$0xff] }
 0x3ad   : > { %3112 = vperm.xlu1 %3905, %v3959_v61  }
 0x3ae   : > { %3107 = vperm.xlu0 %3904, %v3961_v55   ;;  %v2955_v55 = vld [vmem:[%s4151_s12 + $0x60] sm:$0xff] }
 0x3b1   : > { %3122 = vperm.xlu1 %3905, %v3963_v1  }
 0x3b2   : > { %3117 = vperm.xlu0 %3904, %v3965_v14  }
 0x3b5   : > { %3132 = vperm.xlu1 %3905, %v3967_v33  }
 0x3b6   : > { %3127 = vperm.xlu0 %3904, %v3969_v13  }
 0x3f7   : > { %v2988_v10 = vpop.permute.xlu1 %2987 }
 0x3f8   : > { %v3137_v56 = vmul.f32 %v2988_v10, %v2945_v60  ;;  %v2978_v12 = vpop.permute.xlu0 %2977 }
 0x3f9   : > { %v3135_v7 = vmul.f32 %v2978_v12, %v2943_v62 }
 0x3fa   : > { %v3176_v32 = vadd.f32 %v7022_v38, %v3137_v56  ;;  %v2958_v56 = vld [vmem:[%s4151_s12 + $0x78] sm:$0xff] }
 0x3fb   : > { %v3174_v24 = vadd.f32 %v7022_v38, %v3135_v7  ;;  %v2957_v7 = vld [vmem:[%s4151_s12 + $0x70] sm:$0xff] }
 0x3fc   : > { %v2993_v27 = vpop.permute.xlu1 %2992  ;;  %v3208_v22 = vmax.f32 %v3176_v32, 0.0 }
 0x3fd   : > { %v3138_v29 = vmul.f32 %v2993_v27, %v2946_v26  ;;  %v2983_v19 = vpop.permute.xlu0 %2982  ;;  %v3206_v39 = vmax.f32 %v3174_v24, 0.0 }
 0x3fe   : > { %v3136_v37 = vmul.f32 %v2983_v19, %v2944_v28  ;;  %3240 = vst [vmem:[%s4151_s12 + $0x10] sm:$0xff] %v3208_v22  ;;  %v2960_v19 = vld [vmem:[%s4151_s12 + $0x88] sm:$0xff] }
 0x3ff   : > { %v3177_v36 = vadd.f32 %v7022_v38, %v3138_v29  ;;  %3238 = vst [vmem:[%s4151_s12] sm:$0xff] %v3206_v39 }
 0x400   : > { %v3175_v17 = vadd.f32 %v7022_v38, %v3136_v37  ;;  %v3003_v40 = vpop.permute.xlu1 %3002  ;;  %v2959_v37 = vld [vmem:[%s4151_s12 + $0x80] sm:$0xff] }
 0x401   : > { %v3209_v35 = vmax.f32 %v3177_v36, 0.0  ;;  %v3140_v51 = vmul.f32 %v3003_v40, %v2948_v2  ;;  %v2998_v16 = vpop.permute.xlu0 %2997 }
 0x402   : > { %v3207_v6 = vmax.f32 %v3175_v17, 0.0  ;;  %v3139_v57 = vmul.f32 %v2998_v16, %v2947_v21  ;;  %v2962_v16 = vld [vmem:[%s4151_s12 + $0x98] sm:$0xff] }
 0x403   : > { %3241 = vst [vmem:[%s4151_s12 + $0x18] sm:$0xff] %v3209_v35  ;;  %v3179_v54 = vadd.f32 %v7022_v38, %v3140_v51 }
 0x404   : > { %3239 = vst [vmem:[%s4151_s12 + $0x8] sm:$0xff] %v3207_v6  ;;  %v3178_v41 = vadd.f32 %v7022_v38, %v3139_v57  ;;  %v3013_v23 = vpop.permute.xlu1 %3012  ;;  %v2961_v57 = vld [vmem:[%s4151_s12 + $0x90] sm:$0xff] }
 0x405   : > { %v3211_v46 = vmax.f32 %v3179_v54, 0.0  ;;  %v3142_v34 = vmul.f32 %v3013_v23, %v2950_v9  ;;  %v3008_v58 = vpop.permute.xlu0 %3007 }
 0x406   : > { %v3210_v43 = vmax.f32 %v3178_v41, 0.0  ;;  %v3141_v3 = vmul.f32 %v3008_v58, %v2949_v4  ;;  %v2964_v58 = vld [vmem:[%s4151_s12 + $0xa8] sm:$0xff] }
 0x407   : > { %3243 = vst [vmem:[%s4151_s12 + $0x28] sm:$0xff] %v3211_v46  ;;  %v3181_v50 = vadd.f32 %v7022_v38, %v3142_v34 }
 0x408   : > { %3242 = vst [vmem:[%s4151_s12 + $0x20] sm:$0xff] %v3210_v43  ;;  %v3180_v52 = vadd.f32 %v7022_v38, %v3141_v3  ;;  %v3023_v15 = vpop.permute.xlu1 %3022  ;;  %v2963_v3 = vld [vmem:[%s4151_s12 + $0xa0] sm:$0xff] }
 0x409   : > { %v3213_v42 = vmax.f32 %v3181_v50, 0.0  ;;  %v3144_v47 = vmul.f32 %v3023_v15, %v2952_v0  ;;  %v3018_v11 = vpop.permute.xlu0 %3017 }
 0x40a   : > { %v3212_v8 = vmax.f32 %v3180_v52, 0.0  ;;  %v3143_v44 = vmul.f32 %v3018_v11, %v2951_v18  ;;  %v2966_v11 = vld [vmem:[%s4151_s12 + $0xb8] sm:$0xff] }
 0x40b   : > { %3245 = vst [vmem:[%s4151_s12 + $0x38] sm:$0xff] %v3213_v42  ;;  %v3183_v25 = vadd.f32 %v7022_v38, %v3144_v47 }
 0x40c   : > { %3244 = vst [vmem:[%s4151_s12 + $0x30] sm:$0xff] %v3212_v8  ;;  %v3182_v45 = vadd.f32 %v7022_v38, %v3143_v44  ;;  %v3033_v48 = vpop.permute.xlu1 %3032  ;;  %v2965_v44 = vld [vmem:[%s4151_s12 + $0xb0] sm:$0xff] }
 0x40d   : > { %v3215_v59 = vmax.f32 %v3183_v25, 0.0  ;;  %v3146_v30 = vmul.f32 %v3033_v48, %v2954_v49  ;;  %v3028_v63 = vpop.permute.xlu0 %3027 }
 0x40e   : > { %v3214_v20 = vmax.f32 %v3182_v45, 0.0  ;;  %v3145_v5 = vmul.f32 %v3028_v63, %v2953_v31  ;;  %v2968_v63 = vld [vmem:[%s4151_s12 + $0xc8] sm:$0xff] }
 0x40f   : > { %3247 = vst [vmem:[%s4151_s12 + $0x48] sm:$0xff] %v3215_v59  ;;  %v3185_v61 = vadd.f32 %v7022_v38, %v3146_v30 }
 0x410   : > { %3246 = vst [vmem:[%s4151_s12 + $0x40] sm:$0xff] %v3214_v20  ;;  %v3184_v1 = vadd.f32 %v7022_v38, %v3145_v5  ;;  %v3043_v14 = vpop.permute.xlu1 %3042  ;;  %v2967_v5 = vld [vmem:[%s4151_s12 + $0xc0] sm:$0xff] }
 0x411   : > { %v3217_v33 = vmax.f32 %v3185_v61, 0.0  ;;  %v3148_v13 = vmul.f32 %v3043_v14, %v2956_v53  ;;  %v3038_v60 = vpop.permute.xlu0 %3037 }
 0x412   : > { %v3216_v62 = vmax.f32 %v3184_v1, 0.0  ;;  %v3147_v10 = vmul.f32 %v3038_v60, %v2955_v55  ;;  %v2970_v60 = vld [vmem:[%s4151_s12 + $0xd8] sm:$0xff] }
 0x413   : > { %3249 = vst [vmem:[%s4151_s12 + $0x58] sm:$0xff] %v3217_v33  ;;  %v3187_v12 = vadd.f32 %v7022_v38, %v3148_v13 }
 0x414   : > { %3248 = vst [vmem:[%s4151_s12 + $0x50] sm:$0xff] %v3216_v62  ;;  %v3186_v26 = vadd.f32 %v7022_v38, %v3147_v10  ;;  %v3053_v32 = vpop.permute.xlu1 %3052  ;;  %v2969_v10 = vld [vmem:[%s4151_s12 + $0xd0] sm:$0xff] }
 0x415   : > { %v3219_v28 = vmax.f32 %v3187_v12, 0.0  ;;  %v3150_v24 = vmul.f32 %v3053_v32, %v2958_v56  ;;  %v3048_v27 = vpop.permute.xlu0 %3047 }
 0x416   : > { %v3218_v22 = vmax.f32 %v3186_v26, 0.0  ;;  %v3149_v29 = vmul.f32 %v3048_v27, %v2957_v7  ;;  %v2972_v27 = vld [vmem:[%s4151_s12 + $0xe8] sm:$0xff] }
 0x417   : > { %3251 = vst [vmem:[%s4151_s12 + $0x68] sm:$0xff] %v3219_v28  ;;  %v3189_v39 = vadd.f32 %v7022_v38, %v3150_v24 }
 0x418   : > { %3250 = vst [vmem:[%s4151_s12 + $0x60] sm:$0xff] %v3218_v22  ;;  %v3188_v2 = vadd.f32 %v7022_v38, %v3149_v29  ;;  %v3063_v36 = vpop.permute.xlu1 %3062  ;;  %v2971_v29 = vld [vmem:[%s4151_s12 + $0xe0] sm:$0xff] }
 0x419   : > { %v3221_v21 = vmax.f32 %v3189_v39, 0.0  ;;  %v3152_v17 = vmul.f32 %v3063_v36, %v2960_v19  ;;  %v3058_v40 = vpop.permute.xlu0 %3057 }
 0x41a   : > { %v3220_v35 = vmax.f32 %v3188_v2, 0.0  ;;  %v3151_v51 = vmul.f32 %v3058_v40, %v2959_v37  ;;  %v2974_v40 = vld [vmem:[%s4151_s12 + $0xf8] sm:$0xff] }
 0x41b   : > { %3253 = vst [vmem:[%s4151_s12 + $0x78] sm:$0xff] %v3221_v21  ;;  %v3191_v6 = vadd.f32 %v7022_v38, %v3152_v17 }
 0x41c   : > { %3252 = vst [vmem:[%s4151_s12 + $0x70] sm:$0xff] %v3220_v35  ;;  %v3190_v9 = vadd.f32 %v7022_v38, %v3151_v51  ;;  %v3073_v54 = vpop.permute.xlu1 %3072  ;;  %v2973_v51 = vld [vmem:[%s4151_s12 + $0xf0] sm:$0xff] }
 0x41d   : > { %v3223_v4 = vmax.f32 %v3191_v6, 0.0  ;;  %v3154_v41 = vmul.f32 %v3073_v54, %v2962_v16  ;;  %v3068_v23 = vpop.permute.xlu0 %3067 }
 0x41e   : > { %v3222_v46 = vmax.f32 %v3190_v9, 0.0  ;;  %v3153_v34 = vmul.f32 %v3068_v23, %v2961_v57 }
 0x41f   : > { %3255 = vst [vmem:[%s4151_s12 + $0x88] sm:$0xff] %v3223_v4  ;;  %v3193_v43 = vadd.f32 %v7022_v38, %v3154_v41 }
 0x420   : > { %3254 = vst [vmem:[%s4151_s12 + $0x80] sm:$0xff] %v3222_v46  ;;  %v3192_v0 = vadd.f32 %v7022_v38, %v3153_v34  ;;  %v3083_v50 = vpop.permute.xlu1 %3082 }
 0x421   : > { %v3225_v18 = vmax.f32 %v3193_v43, 0.0  ;;  %v3156_v52 = vmul.f32 %v3083_v50, %v2964_v58  ;;  %v3078_v15 = vpop.permute.xlu0 %3077 }
 0x422   : > { %v3224_v42 = vmax.f32 %v3192_v0, 0.0  ;;  %v3155_v47 = vmul.f32 %v3078_v15, %v2963_v3 }
 0x423   : > { %3257 = vst [vmem:[%s4151_s12 + $0x98] sm:$0xff] %v3225_v18  ;;  %v3195_v8 = vadd.f32 %v7022_v38, %v3156_v52 }
 0x424   : > { %3256 = vst [vmem:[%s4151_s12 + $0x90] sm:$0xff] %v3224_v42  ;;  %v3194_v49 = vadd.f32 %v7022_v38, %v3155_v47  ;;  %v3093_v25 = vpop.permute.xlu1 %3092 }
 0x425   : > { %v3227_v31 = vmax.f32 %v3195_v8, 0.0  ;;  %v3158_v45 = vmul.f32 %v3093_v25, %v2966_v11  ;;  %v3088_v48 = vpop.permute.xlu0 %3087 }
 0x426   : > { %v3226_v59 = vmax.f32 %v3194_v49, 0.0  ;;  %v3157_v30 = vmul.f32 %v3088_v48, %v2965_v44 }
 0x427   : > { %3259 = vst [vmem:[%s4151_s12 + $0xa8] sm:$0xff] %v3227_v31  ;;  %v3197_v20 = vadd.f32 %v7022_v38, %v3158_v45 }
 0x428   : > { %3258 = vst [vmem:[%s4151_s12 + $0xa0] sm:$0xff] %v3226_v59  ;;  %v3196_v53 = vadd.f32 %v7022_v38, %v3157_v30  ;;  %v3103_v61 = vpop.permute.xlu1 %3102 }
 0x429   : > { %v3229_v55 = vmax.f32 %v3197_v20, 0.0  ;;  %v3160_v1 = vmul.f32 %v3103_v61, %v2968_v63  ;;  %v3098_v14 = vpop.permute.xlu0 %3097 }
 0x42a   : > { %v3228_v33 = vmax.f32 %v3196_v53, 0.0  ;;  %v3159_v13 = vmul.f32 %v3098_v14, %v2967_v5 }
 0x42b   : > { %3261 = vst [vmem:[%s4151_s12 + $0xb8] sm:$0xff] %v3229_v55  ;;  %v3199_v62 = vadd.f32 %v7022_v38, %v3160_v1 }
 0x42c   : > { %3260 = vst [vmem:[%s4151_s12 + $0xb0] sm:$0xff] %v3228_v33  ;;  %v3198_v56 = vadd.f32 %v7022_v38, %v3159_v13  ;;  %v3113_v12 = vpop.permute.xlu1 %3112 }
 0x42d   : > { %v3231_v7 = vmax.f32 %v3199_v62, 0.0  ;;  %v3162_v26 = vmul.f32 %v3113_v12, %v2970_v60  ;;  %v3108_v32 = vpop.permute.xlu0 %3107 }
 0x42e   : > { %v3230_v28 = vmax.f32 %v3198_v56, 0.0  ;;  %v3161_v24 = vmul.f32 %v3108_v32, %v2969_v10 }
 0x42f   : > { %3263 = vst [vmem:[%s4151_s12 + $0xc8] sm:$0xff] %v3231_v7  ;;  %v3201_v22 = vadd.f32 %v7022_v38, %v3162_v26 }
 0x430   : > { %3262 = vst [vmem:[%s4151_s12 + $0xc0] sm:$0xff] %v3230_v28  ;;  %v3200_v19 = vadd.f32 %v7022_v38, %v3161_v24  ;;  %v3123_v39 = vpop.permute.xlu1 %3122 }
 0x431   : > { %v3233_v37 = vmax.f32 %v3201_v22, 0.0  ;;  %v3164_v2 = vmul.f32 %v3123_v39, %v2972_v27  ;;  %v3118_v36 = vpop.permute.xlu0 %3117 }
 0x432   : > { %v3232_v21 = vmax.f32 %v3200_v19, 0.0  ;;  %v3163_v17 = vmul.f32 %v3118_v36, %v2971_v29 }
 0x433   : > { %3265 = vst [vmem:[%s4151_s12 + $0xd8] sm:$0xff] %v3233_v37  ;;  %v3203_v35 = vadd.f32 %v7022_v38, %v3164_v2 }
 0x434   : > { %3264 = vst [vmem:[%s4151_s12 + $0xd0] sm:$0xff] %v3232_v21  ;;  %v3202_v16 = vadd.f32 %v7022_v38, %v3163_v17  ;;  %v3133_v6 = vpop.permute.xlu1 %3132 }
 0x435   : > { %v3235_v57 = vmax.f32 %v3203_v35, 0.0  ;;  %v3166_v9 = vmul.f32 %v3133_v6, %v2974_v40  ;;  %v3128_v54 = vpop.permute.xlu0 %3127 }
 0x436   : > { %v3234_v4 = vmax.f32 %v3202_v16, 0.0  ;;  %v3165_v41 = vmul.f32 %v3128_v54, %v2973_v51 }
 0x437   : > { %3267 = vst [vmem:[%s4151_s12 + $0xe8] sm:$0xff] %v3235_v57  ;;  %v3205_v23 = vadd.f32 %v7022_v38, %v3166_v9 }
 0x438   : > { %3266 = vst [vmem:[%s4151_s12 + $0xe0] sm:$0xff] %v3234_v4  ;;  %v3204_v46 = vadd.f32 %v7022_v38, %v3165_v41 }
 0x439   : > { %v3237_v34 = vmax.f32 %v3205_v23, 0.0 }
 0x43a   : > { %v3236_v58 = vmax.f32 %v3204_v46, 0.0 }
 0x43b   : > { %3269 = vst [vmem:[%s4151_s12 + $0xf8] sm:$0xff] %v3237_v34 }
 0x43c   : > { %3268 = vst [vmem:[%s4151_s12 + $0xf0] sm:$0xff] %v3236_v58 }
 0x43d PF: > { %s15_s24 = sadd.s32 1, %s4024_s24   ;;  %s8302_s18 = smov %s4004_s19 }
 0x43e   : > { %p12_p0 = scmp.ge.s32.totalorder %s15_s24, 6   ;;  %s8303_s19 = smov %s4111_s6 }
 0x43f   : > { %s8304_s20 = smov %s4016_s22  ;;  %s8305_s21 = smov %s4020_s23 }
 0x440   : > { %s8306_s22 = smov %s8309_s25  ;;  %s8307_s23 = smov %s8313_s26 }
 0x441   :  { %14 = sbr.rel (!%p12_p0) target bundleno = 4 (0x4), region = 113 }

</bundles_post_ra>
